<compile_context>
chip_gen: v7x
topology: tpu7x:2x2x1
jax: 0.10.0
libtpu: 0.0.40
codegen_flags: <defaults>
</compile_context>

<pallas_src>
import jax
import jax.numpy as jnp
from jax.experimental import pallas as pl
from jax.experimental.pallas import tpu as pltpu


def _round_up(v, m):
    return (v + m - 1) // m * m


# ----------------------------- Pallas kernel --------------------------------
def _make_decoder_kernel(seq_len, input_dim, Dp, Hp, mm_dtype, out_lanes=128):
    """Build the kernel with all shape/dtype constants closed over (static)."""
    D4, H4 = 4 * Dp, 4 * Hp

    def kernel(x_ref, w_ref, v_ref, out_ref):
        # ---- unpack the packed slabs (static, lane/sublane aligned slices) --
        w_hh1 = w_ref[pl.ds(1 * Dp, Dp), pl.ds(0, D4)]        # (Dp, 4Dp)
        w_ih2 = w_ref[pl.ds(2 * Dp, Dp), pl.ds(0, H4)]        # (Dp, 4Hp)
        w_hh2 = w_ref[pl.ds(3 * Dp, Hp), pl.ds(0, H4)]        # (Hp, 4Hp)
        b1 = v_ref[pl.ds(0, 1), pl.ds(0, D4)]                 # (1, 4Dp)  f32
        b2 = v_ref[pl.ds(1, 1), pl.ds(0, H4)]                 # (1, 4Hp)  f32
        w_out = v_ref[pl.ds(2, 1), pl.ds(0, Hp)]              # (1, Hp)   f32
        b_out_row = v_ref[pl.ds(3, 1), pl.ds(0, out_lanes)]   # (1, 128)  f32

        # Time-invariant input contribution of layer 1 -- hoisted (one matmul).
        x = x_ref[...]                                         # (1, input_dim)
        w_ih1 = w_ref[pl.ds(0, input_dim), pl.ds(0, D4)]       # (input_dim, 4Dp)
        pre_x1 = jnp.dot(x.astype(mm_dtype), w_ih1,
                         preferred_element_type=jnp.float32) + b1   # (1, 4Dp)

        def cell(g, c, hid):
            # Gate blocks along the last axis are [i, f, o | g]:
            # one contiguous, 128-lane aligned sigmoid slice + one tanh slice.
            sio = jax.nn.sigmoid(g[:, :3 * hid])
            gg = jnp.tanh(g[:, 3 * hid:])
            i = sio[:, 0 * hid:1 * hid]
            f = sio[:, 1 * hid:2 * hid]
            o = sio[:, 2 * hid:3 * hid]
            c_new = f * c + i * gg
            h_new = o * jnp.tanh(c_new)
            return h_new, c_new

        h1 = jnp.zeros((1, Dp), jnp.float32)
        c1 = jnp.zeros((1, Dp), jnp.float32)
        h2 = jnp.zeros((1, Hp), jnp.float32)
        c2 = jnp.zeros((1, Hp), jnp.float32)
        h1_mm = jnp.zeros((1, Dp), mm_dtype)
        h2_mm = jnp.zeros((1, Hp), mm_dtype)

        # Fully unrolled recurrence (seq_len is static and small).
        for t in range(seq_len):
            if t == 0:
                # h1 = h2 = 0: skip both hidden-to-hidden matmuls.
                g2_hh = jnp.zeros((1, H4), jnp.float32)
                g1 = pre_x1
            else:
                # Issue h2[t-1] @ W_hh2 first: it depends only on the previous
                # step, so the MXU can run it concurrently with layer-1's cell.
                g2_hh = jnp.dot(h2_mm, w_hh2, preferred_element_type=jnp.float32)
                g1 = pre_x1 + jnp.dot(h1_mm, w_hh1,
                                      preferred_element_type=jnp.float32)
            # ---- layer 1 LSTM cell ----
            h1, c1 = cell(g1, c1, Dp)
            h1_mm = h1.astype(mm_dtype)
            # ---- layer 2 LSTM cell (ih dot only; hh part already issued) ----
            g2 = jnp.dot(h1_mm, w_ih2, preferred_element_type=jnp.float32) \
                 + g2_hh + b2
            h2, c2 = cell(g2, c2, Hp)
            h2_mm = h2.astype(mm_dtype)
            # ---- output projection folded into the loop (VPU mul + XLU reduce)
            out_t = jnp.sum(h2 * w_out, axis=-1, keepdims=True)       # (1, 1)
            out_ref[pl.ds(t, 1), :] = (
                jnp.broadcast_to(out_t, (1, out_lanes)) + b_out_row)

    return kernel


# ------------------- one-time parameter preparation / packing ---------------
def _prep_gate_weight(w, hid, in_dim, hid_pad, in_pad):
    """PyTorch (4*hid, in_dim), gate rows [i,f,g,o] -> (in_pad, 4*hid_pad),
    gate blocks [i,f,o,g], zero-padded, transposed for row @ W matmuls."""
    w = w.reshape(4, hid, in_dim)
    w = w[jnp.array([0, 1, 3, 2])]                     # [i,f,g,o] -> [i,f,o,g]
    w = jnp.pad(w, ((0, 0), (0, hid_pad - hid), (0, in_pad - in_dim)))
    w = jnp.transpose(w, (2, 0, 1)).reshape(in_pad, 4 * hid_pad)
    return w.astype(jnp.float32)


def _prep_gate_bias(b_ih, b_hh, hid, hid_pad):
    b = (b_ih + b_hh).reshape(4, hid)
    b = b[jnp.array([0, 1, 3, 2])]
    b = jnp.pad(b, ((0, 0), (0, hid_pad - hid)))
    return b.reshape(1, 4 * hid_pad).astype(jnp.float32)


def prepare_decoder_params(params, input_dim, n_features=1,
                           matmul_dtype=jnp.bfloat16):
    """Run once per set of weights: permute/pad/cast and pack into two slabs.
    (NOT per forward call -- that was the main wrapper-overhead fix.)"""
    assert n_features == 1, "kernel implements the default n_features=1 path"
    hidden_dim = 2 * input_dim
    Dp = _round_up(input_dim, 128)      # layer-1 hidden / input, lane-padded
    Hp = _round_up(hidden_dim, 128)     # layer-2 hidden, lane-padded
    Wc = 4 * Hp                         # slab lane width (>= 4*Dp)

    w_ih1 = _prep_gate_weight(params["w_ih1"], input_dim, input_dim, Dp, Dp)
    w_hh1 = _prep_gate_weight(params["w_hh1"], input_dim, input_dim, Dp, Dp)
    w_ih2 = _prep_gate_weight(params["w_ih2"], hidden_dim, input_dim, Hp, Dp)
    w_hh2 = _prep_gate_weight(params["w_hh2"], hidden_dim, hidden_dim, Hp, Hp)

    def padc(a):
        return jnp.pad(a, ((0, 0), (0, Wc - a.shape[1])))

    # Weight slab (matmul dtype): rows [w_ih1 | w_hh1 | w_ih2 | w_hh2].
    w_slab = jnp.concatenate(
        [padc(w_ih1), padc(w_hh1), padc(w_ih2), padc(w_hh2)],
        axis=0).astype(matmul_dtype)                         # (3*Dp+Hp, 4*Hp)

    # Small f32 slab: row0=b1, row1=b2, row2=w_out, row3=b_out (broadcast).
    b1 = padc(_prep_gate_bias(params["b_ih1"], params["b_hh1"], input_dim, Dp))
    b2 = padc(_prep_gate_bias(params["b_ih2"], params["b_hh2"], hidden_dim, Hp))
    w_out = padc(params["w_out"].astype(jnp.float32))        # (1, Wc)
    b_out = jnp.full((1, Wc), params["b_out"][0], jnp.float32)
    v_slab = jnp.concatenate(
        [b1, b2, w_out, b_out, jnp.zeros((4, Wc), jnp.float32)], axis=0)  # (8,Wc)

    return dict(w_slab=w_slab, v_slab=v_slab, input_dim=input_dim,
                hidden_dim=hidden_dim, Dp=Dp, Hp=Hp, n_features=n_features)


# ------------------------------ per-call wrapper -----------------------------
def decoder_forward(x, prepped, seq_len, n_features=1, out_lanes=128):
    """x: (1, input_dim) float32 latent.  Returns (seq_len, n_features) f32."""
    assert n_features == 1 and prepped["n_features"] == 1
    kernel = _make_decoder_kernel(seq_len, prepped["input_dim"],
                                  prepped["Dp"], prepped["Hp"],
                                  prepped["w_slab"].dtype, out_lanes)
    vmem = pl.BlockSpec(memory_space=pltpu.MemorySpace.VMEM)
    out_pad = pl.pallas_call(
        kernel,
        out_shape=jax.ShapeDtypeStruct((seq_len, out_lanes), jnp.float32),
        in_specs=[vmem, vmem, vmem],
        out_specs=vmem,
    )(x.astype(jnp.float32), prepped["w_slab"], prepped["v_slab"])
    return out_pad[:, :n_features]


# ----------------------- parameter init (PyTorch-like) ----------------------
def make_decoder_params(seq_len, input_dim, n_features=1, seed=0):
    hidden_dim = 2 * input_dim
    key = jax.random.PRNGKey(seed)
    ks = jax.random.split(key, 10)

    def u(k, shape, fan):
        bound = 1.0 / jnp.sqrt(fan)
        return jax.random.uniform(k, shape, jnp.float32, -bound, bound)

    return dict(
        # rnn1: LSTM(input_dim -> input_dim); PyTorch layout (4H, in).
        w_ih1=u(ks[0], (4 * input_dim, input_dim), input_dim),
        w_hh1=u(ks[1], (4 * input_dim, input_dim), input_dim),
        b_ih1=u(ks[2], (4 * input_dim,), input_dim),
        b_hh1=u(ks[3], (4 * input_dim,), input_dim),
        # rnn2: LSTM(input_dim -> hidden_dim)
        w_ih2=u(ks[4], (4 * hidden_dim, input_dim), hidden_dim),
        w_hh2=u(ks[5], (4 * hidden_dim, hidden_dim), hidden_dim),
        b_ih2=u(ks[6], (4 * hidden_dim,), hidden_dim),
        b_hh2=u(ks[7], (4 * hidden_dim,), hidden_dim),
        # output Linear(hidden_dim -> n_features)
        w_out=u(ks[8], (n_features, hidden_dim), hidden_dim),
        b_out=u(ks[9], (n_features,), hidden_dim),
    )


# ---------------- pure-JAX reference (for correctness check) ----------------
def decoder_reference(x, params, seq_len, input_dim, n_features=1):
    hidden_dim = 2 * input_dim

    def lstm_cell(xt, h, c, w_ih, w_hh, b_ih, b_hh, hid):
        g = xt @ w_ih.T + b_ih + h @ w_hh.T + b_hh
        i = jax.nn.sigmoid(g[:, 0 * hid:1 * hid])
        f = jax.nn.sigmoid(g[:, 1 * hid:2 * hid])
        gg = jnp.tanh(g[:, 2 * hid:3 * hid])
        o = jax.nn.sigmoid(g[:, 3 * hid:4 * hid])
        c = f * c + i * gg
        h = o * jnp.tanh(c)
        return h, c

    xt = x.astype(jnp.float32)
    h1 = jnp.zeros((1, input_dim), jnp.float32)
    c1 = jnp.zeros((1, input_dim), jnp.float32)
    h2 = jnp.zeros((1, hidden_dim), jnp.float32)
    c2 = jnp.zeros((1, hidden_dim), jnp.float32)
    outs = []
    for _ in range(seq_len):
        h1, c1 = lstm_cell(xt, h1, c1, params["w_ih1"], params["w_hh1"],
                           params["b_ih1"], params["b_hh1"], input_dim)
        h2, c2 = lstm_cell(h1, h2, c2, params["w_ih2"], params["w_hh2"],
                           params["b_ih2"], params["b_hh2"], hidden_dim)
        outs.append(h2)
    H2 = jnp.concatenate(outs, axis=0)
    return H2 @ params["w_out"].T + params["b_out"][None, :]


if __name__ == "__main__":
    seq_len, input_dim, n_features = 8, 32, 1

    key = jax.random.PRNGKey(0)
    x = jax.random.normal(key, (1, input_dim), jnp.float32)   # encoder latent
    params = make_decoder_params(seq_len, input_dim, n_features, seed=0)

    ref = decoder_reference(x, params, seq_len, input_dim, n_features)

    # f32 matmul operands: tight check against the pure-JAX reference.
    prepped_f32 = prepare_decoder_params(params, input_dim, n_features,
                                         matmul_dtype=jnp.float32)
    out_f32 = jax.block_until_ready(
        decoder_forward(x, prepped_f32, seq_len, n_features))
    assert out_f32.shape == (seq_len, n_features)
    assert jnp.allclose(out_f32, ref, atol=1e-3, rtol=1e-3), \
        "f32 mismatch vs reference"

    # bf16 matmul operands (f32 accumulation & gate math): looser tolerance,
    # since the 8-step recurrence amplifies bf16 weight rounding.
    prepped_bf16 = prepare_decoder_params(params, input_dim, n_features,
                                          matmul_dtype=jnp.bfloat16)
    out_bf16 = jax.block_until_ready(
        decoder_forward(x, prepped_bf16, seq_len, n_features))
    assert out_bf16.shape == (seq_len, n_features)
    assert jnp.allclose(out_bf16, ref, atol=5e-2, rtol=5e-2), \
        "bf16 mismatch vs reference"

    print("KERNEL_OK")
</pallas_src>

<mosaic_0001>
module attributes {stable_mosaic.version = 11 : i64} {
  func.func @kernel(%arg0: memref<1x32xf32, #tpu.memory_space<vmem>>, %arg1: memref<512x512xf32, #tpu.memory_space<vmem>>, %arg2: memref<8x512xf32, #tpu.memory_space<vmem>>, %arg3: memref<8x128xf32, #tpu.memory_space<vmem>>) attributes {dimension_semantics = [], scalar_prefetch = 0 : i64, scratch_operands = 0 : i64, tpu.core_type = #tpu.core_type<tc>} {
    %c128 = arith.constant 128 : index
    %c0 = arith.constant 0 : index
    %0 = vector.load %arg1[%c128, %c0] : memref<512x512xf32, #tpu.memory_space<vmem>>, vector<128x512xf32>
    %c256 = arith.constant 256 : index
    %c0_0 = arith.constant 0 : index
    %1 = vector.load %arg1[%c256, %c0_0] : memref<512x512xf32, #tpu.memory_space<vmem>>, vector<128x512xf32>
    %c384 = arith.constant 384 : index
    %c0_1 = arith.constant 0 : index
    %2 = vector.load %arg1[%c384, %c0_1] : memref<512x512xf32, #tpu.memory_space<vmem>>, vector<128x512xf32>
    %c0_2 = arith.constant 0 : index
    %c0_3 = arith.constant 0 : index
    %3 = vector.load %arg2[%c0_2, %c0_3] : memref<8x512xf32, #tpu.memory_space<vmem>>, vector<1x512xf32>
    %c1 = arith.constant 1 : index
    %c0_4 = arith.constant 0 : index
    %4 = vector.load %arg2[%c1, %c0_4] : memref<8x512xf32, #tpu.memory_space<vmem>>, vector<1x512xf32>
    %c2 = arith.constant 2 : index
    %c0_5 = arith.constant 0 : index
    %5 = vector.load %arg2[%c2, %c0_5] : memref<8x512xf32, #tpu.memory_space<vmem>>, vector<1x128xf32>
    %c3 = arith.constant 3 : index
    %c0_6 = arith.constant 0 : index
    %6 = vector.load %arg2[%c3, %c0_6] : memref<8x512xf32, #tpu.memory_space<vmem>>, vector<1x128xf32>
    %c0_7 = arith.constant 0 : index
    %c0_8 = arith.constant 0 : index
    %7 = vector.load %arg0[%c0_7, %c0_8] : memref<1x32xf32, #tpu.memory_space<vmem>>, vector<1x32xf32>
    %c0_9 = arith.constant 0 : index
    %c0_10 = arith.constant 0 : index
    %8 = vector.load %arg1[%c0_9, %c0_10] : memref<512x512xf32, #tpu.memory_space<vmem>>, vector<32x512xf32>
    %cst = arith.constant dense<0.000000e+00> : vector<1x512xf32>
    %9 = tpu.matmul %7, %8, %cst {dimension_numbers = #tpu.dot_dimension_numbers<[1], [0], [0], [1], [0, 0, 1, 1], [], []>} : vector<1x32xf32>, vector<32x512xf32>, vector<1x512xf32> -> vector<1x512xf32>
    %10 = arith.addf %9, %3 : vector<1x512xf32>
    %cst_11 = arith.constant 0.000000e+00 : f32
    %11 = vector.broadcast %cst_11 : f32 to vector<1x128xf32>
    %cst_12 = arith.constant 0.000000e+00 : f32
    %12 = vector.broadcast %cst_12 : f32 to vector<1x128xf32>
    %cst_13 = arith.constant 0.000000e+00 : f32
    %13 = vector.broadcast %cst_13 : f32 to vector<1x512xf32>
    %14 = vector.extract_strided_slice %10 {offsets = [0, 0], sizes = [1, 384], strides = [1, 1]} : vector<1x512xf32> to vector<1x384xf32>
    %15 = arith.negf %14 : vector<1x384xf32>
    %16 = math.exp %15 : vector<1x384xf32>
    %cst_14 = arith.constant 1.000000e+00 : f32
    %17 = vector.broadcast %cst_14 : f32 to vector<1x384xf32>
    %18 = arith.addf %17, %16 : vector<1x384xf32>
    %19 = arith.divf %17, %18 : vector<1x384xf32>
    %20 = vector.extract_strided_slice %10 {offsets = [0, 384], sizes = [1, 128], strides = [1, 1]} : vector<1x512xf32> to vector<1x128xf32>
    %21 = math.tanh %20 : vector<1x128xf32>
    %22 = vector.extract_strided_slice %19 {offsets = [0, 0], sizes = [1, 128], strides = [1, 1]} : vector<1x384xf32> to vector<1x128xf32>
    %23 = vector.extract_strided_slice %19 {offsets = [0, 128], sizes = [1, 128], strides = [1, 1]} : vector<1x384xf32> to vector<1x128xf32>
    %24 = vector.extract_strided_slice %19 {offsets = [0, 256], sizes = [1, 128], strides = [1, 1]} : vector<1x384xf32> to vector<1x128xf32>
    %25 = arith.mulf %23, %11 : vector<1x128xf32>
    %26 = arith.mulf %22, %21 : vector<1x128xf32>
    %27 = arith.addf %25, %26 : vector<1x128xf32>
    %28 = math.tanh %27 : vector<1x128xf32>
    %29 = arith.mulf %24, %28 : vector<1x128xf32>
    %cst_15 = arith.constant dense<0.000000e+00> : vector<1x512xf32>
    %30 = tpu.matmul %29, %1, %cst_15 {dimension_numbers = #tpu.dot_dimension_numbers<[1], [0], [0], [1], [0, 0, 1, 1], [], []>} : vector<1x128xf32>, vector<128x512xf32>, vector<1x512xf32> -> vector<1x512xf32>
    %31 = arith.addf %30, %13 : vector<1x512xf32>
    %32 = arith.addf %31, %4 : vector<1x512xf32>
    %33 = vector.extract_strided_slice %32 {offsets = [0, 0], sizes = [1, 384], strides = [1, 1]} : vector<1x512xf32> to vector<1x384xf32>
    %34 = arith.negf %33 : vector<1x384xf32>
    %35 = math.exp %34 : vector<1x384xf32>
    %cst_16 = arith.constant 1.000000e+00 : f32
    %36 = vector.broadcast %cst_16 : f32 to vector<1x384xf32>
    %37 = arith.addf %36, %35 : vector<1x384xf32>
    %38 = arith.divf %36, %37 : vector<1x384xf32>
    %39 = vector.extract_strided_slice %32 {offsets = [0, 384], sizes = [1, 128], strides = [1, 1]} : vector<1x512xf32> to vector<1x128xf32>
    %40 = math.tanh %39 : vector<1x128xf32>
    %41 = vector.extract_strided_slice %38 {offsets = [0, 0], sizes = [1, 128], strides = [1, 1]} : vector<1x384xf32> to vector<1x128xf32>
    %42 = vector.extract_strided_slice %38 {offsets = [0, 128], sizes = [1, 128], strides = [1, 1]} : vector<1x384xf32> to vector<1x128xf32>
    %43 = vector.extract_strided_slice %38 {offsets = [0, 256], sizes = [1, 128], strides = [1, 1]} : vector<1x384xf32> to vector<1x128xf32>
    %44 = arith.mulf %42, %12 : vector<1x128xf32>
    %45 = arith.mulf %41, %40 : vector<1x128xf32>
    %46 = arith.addf %44, %45 : vector<1x128xf32>
    %47 = math.tanh %46 : vector<1x128xf32>
    %48 = arith.mulf %43, %47 : vector<1x128xf32>
    %49 = arith.mulf %48, %5 : vector<1x128xf32>
    %cst_17 = arith.constant dense<0.000000e+00> : vector<1xf32>
    %50 = vector.multi_reduction <add>, %49, %cst_17 [1] : vector<1x128xf32> to vector<1xf32>
    %51 = vector.shape_cast %50 : vector<1xf32> to vector<1x1xf32>
    %52 = vector.shape_cast %51 : vector<1x1xf32> to vector<1x1xf32>
    %53 = vector.broadcast %52 : vector<1x1xf32> to vector<1x128xf32>
    %54 = arith.addf %53, %6 : vector<1x128xf32>
    %c0_18 = arith.constant 0 : index
    %c0_19 = arith.constant 0 : index
    %55 = vector.load %arg3[%c0_18, %c0_19] : memref<8x128xf32, #tpu.memory_space<vmem>>, vector<1x128xf32>
    tpu.vector_store %arg3[%c0_18, %c0_19], %54 {strides = array<i32>} : memref<8x128xf32, #tpu.memory_space<vmem>>, vector<1x128xf32>,
    %cst_20 = arith.constant dense<0.000000e+00> : vector<1x512xf32>
    %56 = tpu.matmul %48, %2, %cst_20 {dimension_numbers = #tpu.dot_dimension_numbers<[1], [0], [0], [1], [0, 0, 1, 1], [], []>} : vector<1x128xf32>, vector<128x512xf32>, vector<1x512xf32> -> vector<1x512xf32>
    %cst_21 = arith.constant dense<0.000000e+00> : vector<1x512xf32>
    %57 = tpu.matmul %29, %0, %cst_21 {dimension_numbers = #tpu.dot_dimension_numbers<[1], [0], [0], [1], [0, 0, 1, 1], [], []>} : vector<1x128xf32>, vector<128x512xf32>, vector<1x512xf32> -> vector<1x512xf32>
    %58 = arith.addf %10, %57 : vector<1x512xf32>
    %59 = vector.extract_strided_slice %58 {offsets = [0, 0], sizes = [1, 384], strides = [1, 1]} : vector<1x512xf32> to vector<1x384xf32>
    %60 = arith.negf %59 : vector<1x384xf32>
    %61 = math.exp %60 : vector<1x384xf32>
    %cst_22 = arith.constant 1.000000e+00 : f32
    %62 = vector.broadcast %cst_22 : f32 to vector<1x384xf32>
    %63 = arith.addf %62, %61 : vector<1x384xf32>
    %64 = arith.divf %62, %63 : vector<1x384xf32>
    %65 = vector.extract_strided_slice %58 {offsets = [0, 384], sizes = [1, 128], strides = [1, 1]} : vector<1x512xf32> to vector<1x128xf32>
    %66 = math.tanh %65 : vector<1x128xf32>
    %67 = vector.extract_strided_slice %64 {offsets = [0, 0], sizes = [1, 128], strides = [1, 1]} : vector<1x384xf32> to vector<1x128xf32>
    %68 = vector.extract_strided_slice %64 {offsets = [0, 128], sizes = [1, 128], strides = [1, 1]} : vector<1x384xf32> to vector<1x128xf32>
    %69 = vector.extract_strided_slice %64 {offsets = [0, 256], sizes = [1, 128], strides = [1, 1]} : vector<1x384xf32> to vector<1x128xf32>
    %70 = arith.mulf %68, %27 : vector<1x128xf32>
    %71 = arith.mulf %67, %66 : vector<1x128xf32>
    %72 = arith.addf %70, %71 : vector<1x128xf32>
    %73 = math.tanh %72 : vector<1x128xf32>
    %74 = arith.mulf %69, %73 : vector<1x128xf32>
    %cst_23 = arith.constant dense<0.000000e+00> : vector<1x512xf32>
    %75 = tpu.matmul %74, %1, %cst_23 {dimension_numbers = #tpu.dot_dimension_numbers<[1], [0], [0], [1], [0, 0, 1, 1], [], []>} : vector<1x128xf32>, vector<128x512xf32>, vector<1x512xf32> -> vector<1x512xf32>
    %76 = arith.addf %75, %56 : vector<1x512xf32>
    %77 = arith.addf %76, %4 : vector<1x512xf32>
    %78 = vector.extract_strided_slice %77 {offsets = [0, 0], sizes = [1, 384], strides = [1, 1]} : vector<1x512xf32> to vector<1x384xf32>
    %79 = arith.negf %78 : vector<1x384xf32>
    %80 = math.exp %79 : vector<1x384xf32>
    %cst_24 = arith.constant 1.000000e+00 : f32
    %81 = vector.broadcast %cst_24 : f32 to vector<1x384xf32>
    %82 = arith.addf %81, %80 : vector<1x384xf32>
    %83 = arith.divf %81, %82 : vector<1x384xf32>
    %84 = vector.extract_strided_slice %77 {offsets = [0, 384], sizes = [1, 128], strides = [1, 1]} : vector<1x512xf32> to vector<1x128xf32>
    %85 = math.tanh %84 : vector<1x128xf32>
    %86 = vector.extract_strided_slice %83 {offsets = [0, 0], sizes = [1, 128], strides = [1, 1]} : vector<1x384xf32> to vector<1x128xf32>
    %87 = vector.extract_strided_slice %83 {offsets = [0, 128], sizes = [1, 128], strides = [1, 1]} : vector<1x384xf32> to vector<1x128xf32>
    %88 = vector.extract_strided_slice %83 {offsets = [0, 256], sizes = [1, 128], strides = [1, 1]} : vector<1x384xf32> to vector<1x128xf32>
    %89 = arith.mulf %87, %46 : vector<1x128xf32>
    %90 = arith.mulf %86, %85 : vector<1x128xf32>
    %91 = arith.addf %89, %90 : vector<1x128xf32>
    %92 = math.tanh %91 : vector<1x128xf32>
    %93 = arith.mulf %88, %92 : vector<1x128xf32>
    %94 = arith.mulf %93, %5 : vector<1x128xf32>
    %cst_25 = arith.constant dense<0.000000e+00> : vector<1xf32>
    %95 = vector.multi_reduction <add>, %94, %cst_25 [1] : vector<1x128xf32> to vector<1xf32>
    %96 = vector.shape_cast %95 : vector<1xf32> to vector<1x1xf32>
    %97 = vector.shape_cast %96 : vector<1x1xf32> to vector<1x1xf32>
    %98 = vector.broadcast %97 : vector<1x1xf32> to vector<1x128xf32>
    %99 = arith.addf %98, %6 : vector<1x128xf32>
    %c1_26 = arith.constant 1 : index
    %c0_27 = arith.constant 0 : index
    %100 = vector.load %arg3[%c1_26, %c0_27] : memref<8x128xf32, #tpu.memory_space<vmem>>, vector<1x128xf32>
    tpu.vector_store %arg3[%c1_26, %c0_27], %99 {strides = array<i32>} : memref<8x128xf32, #tpu.memory_space<vmem>>, vector<1x128xf32>,
    %cst_28 = arith.constant dense<0.000000e+00> : vector<1x512xf32>
    %101 = tpu.matmul %93, %2, %cst_28 {dimension_numbers = #tpu.dot_dimension_numbers<[1], [0], [0], [1], [0, 0, 1, 1], [], []>} : vector<1x128xf32>, vector<128x512xf32>, vector<1x512xf32> -> vector<1x512xf32>
    %cst_29 = arith.constant dense<0.000000e+00> : vector<1x512xf32>
    %102 = tpu.matmul %74, %0, %cst_29 {dimension_numbers = #tpu.dot_dimension_numbers<[1], [0], [0], [1], [0, 0, 1, 1], [], []>} : vector<1x128xf32>, vector<128x512xf32>, vector<1x512xf32> -> vector<1x512xf32>
    %103 = arith.addf %10, %102 : vector<1x512xf32>
    %104 = vector.extract_strided_slice %103 {offsets = [0, 0], sizes = [1, 384], strides = [1, 1]} : vector<1x512xf32> to vector<1x384xf32>
    %105 = arith.negf %104 : vector<1x384xf32>
    %106 = math.exp %105 : vector<1x384xf32>
    %cst_30 = arith.constant 1.000000e+00 : f32
    %107 = vector.broadcast %cst_30 : f32 to vector<1x384xf32>
    %108 = arith.addf %107, %106 : vector<1x384xf32>
    %109 = arith.divf %107, %108 : vector<1x384xf32>
    %110 = vector.extract_strided_slice %103 {offsets = [0, 384], sizes = [1, 128], strides = [1, 1]} : vector<1x512xf32> to vector<1x128xf32>
    %111 = math.tanh %110 : vector<1x128xf32>
    %112 = vector.extract_strided_slice %109 {offsets = [0, 0], sizes = [1, 128], strides = [1, 1]} : vector<1x384xf32> to vector<1x128xf32>
    %113 = vector.extract_strided_slice %109 {offsets = [0, 128], sizes = [1, 128], strides = [1, 1]} : vector<1x384xf32> to vector<1x128xf32>
    %114 = vector.extract_strided_slice %109 {offsets = [0, 256], sizes = [1, 128], strides = [1, 1]} : vector<1x384xf32> to vector<1x128xf32>
    %115 = arith.mulf %113, %72 : vector<1x128xf32>
    %116 = arith.mulf %112, %111 : vector<1x128xf32>
    %117 = arith.addf %115, %116 : vector<1x128xf32>
    %118 = math.tanh %117 : vector<1x128xf32>
    %119 = arith.mulf %114, %118 : vector<1x128xf32>
    %cst_31 = arith.constant dense<0.000000e+00> : vector<1x512xf32>
    %120 = tpu.matmul %119, %1, %cst_31 {dimension_numbers = #tpu.dot_dimension_numbers<[1], [0], [0], [1], [0, 0, 1, 1], [], []>} : vector<1x128xf32>, vector<128x512xf32>, vector<1x512xf32> -> vector<1x512xf32>
    %121 = arith.addf %120, %101 : vector<1x512xf32>
    %122 = arith.addf %121, %4 : vector<1x512xf32>
    %123 = vector.extract_strided_slice %122 {offsets = [0, 0], sizes = [1, 384], strides = [1, 1]} : vector<1x512xf32> to vector<1x384xf32>
    %124 = arith.negf %123 : vector<1x384xf32>
    %125 = math.exp %124 : vector<1x384xf32>
    %cst_32 = arith.constant 1.000000e+00 : f32
    %126 = vector.broadcast %cst_32 : f32 to vector<1x384xf32>
    %127 = arith.addf %126, %125 : vector<1x384xf32>
    %128 = arith.divf %126, %127 : vector<1x384xf32>
    %129 = vector.extract_strided_slice %122 {offsets = [0, 384], sizes = [1, 128], strides = [1, 1]} : vector<1x512xf32> to vector<1x128xf32>
    %130 = math.tanh %129 : vector<1x128xf32>
    %131 = vector.extract_strided_slice %128 {offsets = [0, 0], sizes = [1, 128], strides = [1, 1]} : vector<1x384xf32> to vector<1x128xf32>
    %132 = vector.extract_strided_slice %128 {offsets = [0, 128], sizes = [1, 128], strides = [1, 1]} : vector<1x384xf32> to vector<1x128xf32>
    %133 = vector.extract_strided_slice %128 {offsets = [0, 256], sizes = [1, 128], strides = [1, 1]} : vector<1x384xf32> to vector<1x128xf32>
    %134 = arith.mulf %132, %91 : vector<1x128xf32>
    %135 = arith.mulf %131, %130 : vector<1x128xf32>
    %136 = arith.addf %134, %135 : vector<1x128xf32>
    %137 = math.tanh %136 : vector<1x128xf32>
    %138 = arith.mulf %133, %137 : vector<1x128xf32>
    %139 = arith.mulf %138, %5 : vector<1x128xf32>
    %cst_33 = arith.constant dense<0.000000e+00> : vector<1xf32>
    %140 = vector.multi_reduction <add>, %139, %cst_33 [1] : vector<1x128xf32> to vector<1xf32>
    %141 = vector.shape_cast %140 : vector<1xf32> to vector<1x1xf32>
    %142 = vector.shape_cast %141 : vector<1x1xf32> to vector<1x1xf32>
    %143 = vector.broadcast %142 : vector<1x1xf32> to vector<1x128xf32>
    %144 = arith.addf %143, %6 : vector<1x128xf32>
    %c2_34 = arith.constant 2 : index
    %c0_35 = arith.constant 0 : index
    %145 = vector.load %arg3[%c2_34, %c0_35] : memref<8x128xf32, #tpu.memory_space<vmem>>, vector<1x128xf32>
    tpu.vector_store %arg3[%c2_34, %c0_35], %144 {strides = array<i32>} : memref<8x128xf32, #tpu.memory_space<vmem>>, vector<1x128xf32>,
    %cst_36 = arith.constant dense<0.000000e+00> : vector<1x512xf32>
    %146 = tpu.matmul %138, %2, %cst_36 {dimension_numbers = #tpu.dot_dimension_numbers<[1], [0], [0], [1], [0, 0, 1, 1], [], []>} : vector<1x128xf32>, vector<128x512xf32>, vector<1x512xf32> -> vector<1x512xf32>
    %cst_37 = arith.constant dense<0.000000e+00> : vector<1x512xf32>
    %147 = tpu.matmul %119, %0, %cst_37 {dimension_numbers = #tpu.dot_dimension_numbers<[1], [0], [0], [1], [0, 0, 1, 1], [], []>} : vector<1x128xf32>, vector<128x512xf32>, vector<1x512xf32> -> vector<1x512xf32>
    %148 = arith.addf %10, %147 : vector<1x512xf32>
    %149 = vector.extract_strided_slice %148 {offsets = [0, 0], sizes = [1, 384], strides = [1, 1]} : vector<1x512xf32> to vector<1x384xf32>
    %150 = arith.negf %149 : vector<1x384xf32>
    %151 = math.exp %150 : vector<1x384xf32>
    %cst_38 = arith.constant 1.000000e+00 : f32
    %152 = vector.broadcast %cst_38 : f32 to vector<1x384xf32>
    %153 = arith.addf %152, %151 : vector<1x384xf32>
    %154 = arith.divf %152, %153 : vector<1x384xf32>
    %155 = vector.extract_strided_slice %148 {offsets = [0, 384], sizes = [1, 128], strides = [1, 1]} : vector<1x512xf32> to vector<1x128xf32>
    %156 = math.tanh %155 : vector<1x128xf32>
    %157 = vector.extract_strided_slice %154 {offsets = [0, 0], sizes = [1, 128], strides = [1, 1]} : vector<1x384xf32> to vector<1x128xf32>
    %158 = vector.extract_strided_slice %154 {offsets = [0, 128], sizes = [1, 128], strides = [1, 1]} : vector<1x384xf32> to vector<1x128xf32>
    %159 = vector.extract_strided_slice %154 {offsets = [0, 256], sizes = [1, 128], strides = [1, 1]} : vector<1x384xf32> to vector<1x128xf32>
    %160 = arith.mulf %158, %117 : vector<1x128xf32>
    %161 = arith.mulf %157, %156 : vector<1x128xf32>
    %162 = arith.addf %160, %161 : vector<1x128xf32>
    %163 = math.tanh %162 : vector<1x128xf32>
    %164 = arith.mulf %159, %163 : vector<1x128xf32>
    %cst_39 = arith.constant dense<0.000000e+00> : vector<1x512xf32>
    %165 = tpu.matmul %164, %1, %cst_39 {dimension_numbers = #tpu.dot_dimension_numbers<[1], [0], [0], [1], [0, 0, 1, 1], [], []>} : vector<1x128xf32>, vector<128x512xf32>, vector<1x512xf32> -> vector<1x512xf32>
    %166 = arith.addf %165, %146 : vector<1x512xf32>
    %167 = arith.addf %166, %4 : vector<1x512xf32>
    %168 = vector.extract_strided_slice %167 {offsets = [0, 0], sizes = [1, 384], strides = [1, 1]} : vector<1x512xf32> to vector<1x384xf32>
    %169 = arith.negf %168 : vector<1x384xf32>
    %170 = math.exp %169 : vector<1x384xf32>
    %cst_40 = arith.constant 1.000000e+00 : f32
    %171 = vector.broadcast %cst_40 : f32 to vector<1x384xf32>
    %172 = arith.addf %171, %170 : vector<1x384xf32>
    %173 = arith.divf %171, %172 : vector<1x384xf32>
    %174 = vector.extract_strided_slice %167 {offsets = [0, 384], sizes = [1, 128], strides = [1, 1]} : vector<1x512xf32> to vector<1x128xf32>
    %175 = math.tanh %174 : vector<1x128xf32>
    %176 = vector.extract_strided_slice %173 {offsets = [0, 0], sizes = [1, 128], strides = [1, 1]} : vector<1x384xf32> to vector<1x128xf32>
    %177 = vector.extract_strided_slice %173 {offsets = [0, 128], sizes = [1, 128], strides = [1, 1]} : vector<1x384xf32> to vector<1x128xf32>
    %178 = vector.extract_strided_slice %173 {offsets = [0, 256], sizes = [1, 128], strides = [1, 1]} : vector<1x384xf32> to vector<1x128xf32>
    %179 = arith.mulf %177, %136 : vector<1x128xf32>
    %180 = arith.mulf %176, %175 : vector<1x128xf32>
    %181 = arith.addf %179, %180 : vector<1x128xf32>
    %182 = math.tanh %181 : vector<1x128xf32>
    %183 = arith.mulf %178, %182 : vector<1x128xf32>
    %184 = arith.mulf %183, %5 : vector<1x128xf32>
    %cst_41 = arith.constant dense<0.000000e+00> : vector<1xf32>
    %185 = vector.multi_reduction <add>, %184, %cst_41 [1] : vector<1x128xf32> to vector<1xf32>
    %186 = vector.shape_cast %185 : vector<1xf32> to vector<1x1xf32>
    %187 = vector.shape_cast %186 : vector<1x1xf32> to vector<1x1xf32>
    %188 = vector.broadcast %187 : vector<1x1xf32> to vector<1x128xf32>
    %189 = arith.addf %188, %6 : vector<1x128xf32>
    %c3_42 = arith.constant 3 : index
    %c0_43 = arith.constant 0 : index
    %190 = vector.load %arg3[%c3_42, %c0_43] : memref<8x128xf32, #tpu.memory_space<vmem>>, vector<1x128xf32>
    tpu.vector_store %arg3[%c3_42, %c0_43], %189 {strides = array<i32>} : memref<8x128xf32, #tpu.memory_space<vmem>>, vector<1x128xf32>,
    %cst_44 = arith.constant dense<0.000000e+00> : vector<1x512xf32>
    %191 = tpu.matmul %183, %2, %cst_44 {dimension_numbers = #tpu.dot_dimension_numbers<[1], [0], [0], [1], [0, 0, 1, 1], [], []>} : vector<1x128xf32>, vector<128x512xf32>, vector<1x512xf32> -> vector<1x512xf32>
    %cst_45 = arith.constant dense<0.000000e+00> : vector<1x512xf32>
    %192 = tpu.matmul %164, %0, %cst_45 {dimension_numbers = #tpu.dot_dimension_numbers<[1], [0], [0], [1], [0, 0, 1, 1], [], []>} : vector<1x128xf32>, vector<128x512xf32>, vector<1x512xf32> -> vector<1x512xf32>
    %193 = arith.addf %10, %192 : vector<1x512xf32>
    %194 = vector.extract_strided_slice %193 {offsets = [0, 0], sizes = [1, 384], strides = [1, 1]} : vector<1x512xf32> to vector<1x384xf32>
    %195 = arith.negf %194 : vector<1x384xf32>
    %196 = math.exp %195 : vector<1x384xf32>
    %cst_46 = arith.constant 1.000000e+00 : f32
    %197 = vector.broadcast %cst_46 : f32 to vector<1x384xf32>
    %198 = arith.addf %197, %196 : vector<1x384xf32>
    %199 = arith.divf %197, %198 : vector<1x384xf32>
    %200 = vector.extract_strided_slice %193 {offsets = [0, 384], sizes = [1, 128], strides = [1, 1]} : vector<1x512xf32> to vector<1x128xf32>
    %201 = math.tanh %200 : vector<1x128xf32>
    %202 = vector.extract_strided_slice %199 {offsets = [0, 0], sizes = [1, 128], strides = [1, 1]} : vector<1x384xf32> to vector<1x128xf32>
    %203 = vector.extract_strided_slice %199 {offsets = [0, 128], sizes = [1, 128], strides = [1, 1]} : vector<1x384xf32> to vector<1x128xf32>
    %204 = vector.extract_strided_slice %199 {offsets = [0, 256], sizes = [1, 128], strides = [1, 1]} : vector<1x384xf32> to vector<1x128xf32>
    %205 = arith.mulf %203, %162 : vector<1x128xf32>
    %206 = arith.mulf %202, %201 : vector<1x128xf32>
    %207 = arith.addf %205, %206 : vector<1x128xf32>
    %208 = math.tanh %207 : vector<1x128xf32>
    %209 = arith.mulf %204, %208 : vector<1x128xf32>
    %cst_47 = arith.constant dense<0.000000e+00> : vector<1x512xf32>
    %210 = tpu.matmul %209, %1, %cst_47 {dimension_numbers = #tpu.dot_dimension_numbers<[1], [0], [0], [1], [0, 0, 1, 1], [], []>} : vector<1x128xf32>, vector<128x512xf32>, vector<1x512xf32> -> vector<1x512xf32>
    %211 = arith.addf %210, %191 : vector<1x512xf32>
    %212 = arith.addf %211, %4 : vector<1x512xf32>
    %213 = vector.extract_strided_slice %212 {offsets = [0, 0], sizes = [1, 384], strides = [1, 1]} : vector<1x512xf32> to vector<1x384xf32>
    %214 = arith.negf %213 : vector<1x384xf32>
    %215 = math.exp %214 : vector<1x384xf32>
    %cst_48 = arith.constant 1.000000e+00 : f32
    %216 = vector.broadcast %cst_48 : f32 to vector<1x384xf32>
    %217 = arith.addf %216, %215 : vector<1x384xf32>
    %218 = arith.divf %216, %217 : vector<1x384xf32>
    %219 = vector.extract_strided_slice %212 {offsets = [0, 384], sizes = [1, 128], strides = [1, 1]} : vector<1x512xf32> to vector<1x128xf32>
    %220 = math.tanh %219 : vector<1x128xf32>
    %221 = vector.extract_strided_slice %218 {offsets = [0, 0], sizes = [1, 128], strides = [1, 1]} : vector<1x384xf32> to vector<1x128xf32>
    %222 = vector.extract_strided_slice %218 {offsets = [0, 128], sizes = [1, 128], strides = [1, 1]} : vector<1x384xf32> to vector<1x128xf32>
    %223 = vector.extract_strided_slice %218 {offsets = [0, 256], sizes = [1, 128], strides = [1, 1]} : vector<1x384xf32> to vector<1x128xf32>
    %224 = arith.mulf %222, %181 : vector<1x128xf32>
    %225 = arith.mulf %221, %220 : vector<1x128xf32>
    %226 = arith.addf %224, %225 : vector<1x128xf32>
    %227 = math.tanh %226 : vector<1x128xf32>
    %228 = arith.mulf %223, %227 : vector<1x128xf32>
    %229 = arith.mulf %228, %5 : vector<1x128xf32>
    %cst_49 = arith.constant dense<0.000000e+00> : vector<1xf32>
    %230 = vector.multi_reduction <add>, %229, %cst_49 [1] : vector<1x128xf32> to vector<1xf32>
    %231 = vector.shape_cast %230 : vector<1xf32> to vector<1x1xf32>
    %232 = vector.shape_cast %231 : vector<1x1xf32> to vector<1x1xf32>
    %233 = vector.broadcast %232 : vector<1x1xf32> to vector<1x128xf32>
    %234 = arith.addf %233, %6 : vector<1x128xf32>
    %c4 = arith.constant 4 : index
    %c0_50 = arith.constant 0 : index
    %235 = vector.load %arg3[%c4, %c0_50] : memref<8x128xf32, #tpu.memory_space<vmem>>, vector<1x128xf32>
    tpu.vector_store %arg3[%c4, %c0_50], %234 {strides = array<i32>} : memref<8x128xf32, #tpu.memory_space<vmem>>, vector<1x128xf32>,
    %cst_51 = arith.constant dense<0.000000e+00> : vector<1x512xf32>
    %236 = tpu.matmul %228, %2, %cst_51 {dimension_numbers = #tpu.dot_dimension_numbers<[1], [0], [0], [1], [0, 0, 1, 1], [], []>} : vector<1x128xf32>, vector<128x512xf32>, vector<1x512xf32> -> vector<1x512xf32>
    %cst_52 = arith.constant dense<0.000000e+00> : vector<1x512xf32>
    %237 = tpu.matmul %209, %0, %cst_52 {dimension_numbers = #tpu.dot_dimension_numbers<[1], [0], [0], [1], [0, 0, 1, 1], [], []>} : vector<1x128xf32>, vector<128x512xf32>, vector<1x512xf32> -> vector<1x512xf32>
    %238 = arith.addf %10, %237 : vector<1x512xf32>
    %239 = vector.extract_strided_slice %238 {offsets = [0, 0], sizes = [1, 384], strides = [1, 1]} : vector<1x512xf32> to vector<1x384xf32>
    %240 = arith.negf %239 : vector<1x384xf32>
    %241 = math.exp %240 : vector<1x384xf32>
    %cst_53 = arith.constant 1.000000e+00 : f32
    %242 = vector.broadcast %cst_53 : f32 to vector<1x384xf32>
    %243 = arith.addf %242, %241 : vector<1x384xf32>
    %244 = arith.divf %242, %243 : vector<1x384xf32>
    %245 = vector.extract_strided_slice %238 {offsets = [0, 384], sizes = [1, 128], strides = [1, 1]} : vector<1x512xf32> to vector<1x128xf32>
    %246 = math.tanh %245 : vector<1x128xf32>
    %247 = vector.extract_strided_slice %244 {offsets = [0, 0], sizes = [1, 128], strides = [1, 1]} : vector<1x384xf32> to vector<1x128xf32>
    %248 = vector.extract_strided_slice %244 {offsets = [0, 128], sizes = [1, 128], strides = [1, 1]} : vector<1x384xf32> to vector<1x128xf32>
    %249 = vector.extract_strided_slice %244 {offsets = [0, 256], sizes = [1, 128], strides = [1, 1]} : vector<1x384xf32> to vector<1x128xf32>
    %250 = arith.mulf %248, %207 : vector<1x128xf32>
    %251 = arith.mulf %247, %246 : vector<1x128xf32>
    %252 = arith.addf %250, %251 : vector<1x128xf32>
    %253 = math.tanh %252 : vector<1x128xf32>
    %254 = arith.mulf %249, %253 : vector<1x128xf32>
    %cst_54 = arith.constant dense<0.000000e+00> : vector<1x512xf32>
    %255 = tpu.matmul %254, %1, %cst_54 {dimension_numbers = #tpu.dot_dimension_numbers<[1], [0], [0], [1], [0, 0, 1, 1], [], []>} : vector<1x128xf32>, vector<128x512xf32>, vector<1x512xf32> -> vector<1x512xf32>
    %256 = arith.addf %255, %236 : vector<1x512xf32>
    %257 = arith.addf %256, %4 : vector<1x512xf32>
    %258 = vector.extract_strided_slice %257 {offsets = [0, 0], sizes = [1, 384], strides = [1, 1]} : vector<1x512xf32> to vector<1x384xf32>
    %259 = arith.negf %258 : vector<1x384xf32>
    %260 = math.exp %259 : vector<1x384xf32>
    %cst_55 = arith.constant 1.000000e+00 : f32
    %261 = vector.broadcast %cst_55 : f32 to vector<1x384xf32>
    %262 = arith.addf %261, %260 : vector<1x384xf32>
    %263 = arith.divf %261, %262 : vector<1x384xf32>
    %264 = vector.extract_strided_slice %257 {offsets = [0, 384], sizes = [1, 128], strides = [1, 1]} : vector<1x512xf32> to vector<1x128xf32>
    %265 = math.tanh %264 : vector<1x128xf32>
    %266 = vector.extract_strided_slice %263 {offsets = [0, 0], sizes = [1, 128], strides = [1, 1]} : vector<1x384xf32> to vector<1x128xf32>
    %267 = vector.extract_strided_slice %263 {offsets = [0, 128], sizes = [1, 128], strides = [1, 1]} : vector<1x384xf32> to vector<1x128xf32>
    %268 = vector.extract_strided_slice %263 {offsets = [0, 256], sizes = [1, 128], strides = [1, 1]} : vector<1x384xf32> to vector<1x128xf32>
    %269 = arith.mulf %267, %226 : vector<1x128xf32>
    %270 = arith.mulf %266, %265 : vector<1x128xf32>
    %271 = arith.addf %269, %270 : vector<1x128xf32>
    %272 = math.tanh %271 : vector<1x128xf32>
    %273 = arith.mulf %268, %272 : vector<1x128xf32>
    %274 = arith.mulf %273, %5 : vector<1x128xf32>
    %cst_56 = arith.constant dense<0.000000e+00> : vector<1xf32>
    %275 = vector.multi_reduction <add>, %274, %cst_56 [1] : vector<1x128xf32> to vector<1xf32>
    %276 = vector.shape_cast %275 : vector<1xf32> to vector<1x1xf32>
    %277 = vector.shape_cast %276 : vector<1x1xf32> to vector<1x1xf32>
    %278 = vector.broadcast %277 : vector<1x1xf32> to vector<1x128xf32>
    %279 = arith.addf %278, %6 : vector<1x128xf32>
    %c5 = arith.constant 5 : index
    %c0_57 = arith.constant 0 : index
    %280 = vector.load %arg3[%c5, %c0_57] : memref<8x128xf32, #tpu.memory_space<vmem>>, vector<1x128xf32>
    tpu.vector_store %arg3[%c5, %c0_57], %279 {strides = array<i32>} : memref<8x128xf32, #tpu.memory_space<vmem>>, vector<1x128xf32>,
    %cst_58 = arith.constant dense<0.000000e+00> : vector<1x512xf32>
    %281 = tpu.matmul %273, %2, %cst_58 {dimension_numbers = #tpu.dot_dimension_numbers<[1], [0], [0], [1], [0, 0, 1, 1], [], []>} : vector<1x128xf32>, vector<128x512xf32>, vector<1x512xf32> -> vector<1x512xf32>
    %cst_59 = arith.constant dense<0.000000e+00> : vector<1x512xf32>
    %282 = tpu.matmul %254, %0, %cst_59 {dimension_numbers = #tpu.dot_dimension_numbers<[1], [0], [0], [1], [0, 0, 1, 1], [], []>} : vector<1x128xf32>, vector<128x512xf32>, vector<1x512xf32> -> vector<1x512xf32>
    %283 = arith.addf %10, %282 : vector<1x512xf32>
    %284 = vector.extract_strided_slice %283 {offsets = [0, 0], sizes = [1, 384], strides = [1, 1]} : vector<1x512xf32> to vector<1x384xf32>
    %285 = arith.negf %284 : vector<1x384xf32>
    %286 = math.exp %285 : vector<1x384xf32>
    %cst_60 = arith.constant 1.000000e+00 : f32
    %287 = vector.broadcast %cst_60 : f32 to vector<1x384xf32>
    %288 = arith.addf %287, %286 : vector<1x384xf32>
    %289 = arith.divf %287, %288 : vector<1x384xf32>
    %290 = vector.extract_strided_slice %283 {offsets = [0, 384], sizes = [1, 128], strides = [1, 1]} : vector<1x512xf32> to vector<1x128xf32>
    %291 = math.tanh %290 : vector<1x128xf32>
    %292 = vector.extract_strided_slice %289 {offsets = [0, 0], sizes = [1, 128], strides = [1, 1]} : vector<1x384xf32> to vector<1x128xf32>
    %293 = vector.extract_strided_slice %289 {offsets = [0, 128], sizes = [1, 128], strides = [1, 1]} : vector<1x384xf32> to vector<1x128xf32>
    %294 = vector.extract_strided_slice %289 {offsets = [0, 256], sizes = [1, 128], strides = [1, 1]} : vector<1x384xf32> to vector<1x128xf32>
    %295 = arith.mulf %293, %252 : vector<1x128xf32>
    %296 = arith.mulf %292, %291 : vector<1x128xf32>
    %297 = arith.addf %295, %296 : vector<1x128xf32>
    %298 = math.tanh %297 : vector<1x128xf32>
    %299 = arith.mulf %294, %298 : vector<1x128xf32>
    %cst_61 = arith.constant dense<0.000000e+00> : vector<1x512xf32>
    %300 = tpu.matmul %299, %1, %cst_61 {dimension_numbers = #tpu.dot_dimension_numbers<[1], [0], [0], [1], [0, 0, 1, 1], [], []>} : vector<1x128xf32>, vector<128x512xf32>, vector<1x512xf32> -> vector<1x512xf32>
    %301 = arith.addf %300, %281 : vector<1x512xf32>
    %302 = arith.addf %301, %4 : vector<1x512xf32>
    %303 = vector.extract_strided_slice %302 {offsets = [0, 0], sizes = [1, 384], strides = [1, 1]} : vector<1x512xf32> to vector<1x384xf32>
    %304 = arith.negf %303 : vector<1x384xf32>
    %305 = math.exp %304 : vector<1x384xf32>
    %cst_62 = arith.constant 1.000000e+00 : f32
    %306 = vector.broadcast %cst_62 : f32 to vector<1x384xf32>
    %307 = arith.addf %306, %305 : vector<1x384xf32>
    %308 = arith.divf %306, %307 : vector<1x384xf32>
    %309 = vector.extract_strided_slice %302 {offsets = [0, 384], sizes = [1, 128], strides = [1, 1]} : vector<1x512xf32> to vector<1x128xf32>
    %310 = math.tanh %309 : vector<1x128xf32>
    %311 = vector.extract_strided_slice %308 {offsets = [0, 0], sizes = [1, 128], strides = [1, 1]} : vector<1x384xf32> to vector<1x128xf32>
    %312 = vector.extract_strided_slice %308 {offsets = [0, 128], sizes = [1, 128], strides = [1, 1]} : vector<1x384xf32> to vector<1x128xf32>
    %313 = vector.extract_strided_slice %308 {offsets = [0, 256], sizes = [1, 128], strides = [1, 1]} : vector<1x384xf32> to vector<1x128xf32>
    %314 = arith.mulf %312, %271 : vector<1x128xf32>
    %315 = arith.mulf %311, %310 : vector<1x128xf32>
    %316 = arith.addf %314, %315 : vector<1x128xf32>
    %317 = math.tanh %316 : vector<1x128xf32>
    %318 = arith.mulf %313, %317 : vector<1x128xf32>
    %319 = arith.mulf %318, %5 : vector<1x128xf32>
    %cst_63 = arith.constant dense<0.000000e+00> : vector<1xf32>
    %320 = vector.multi_reduction <add>, %319, %cst_63 [1] : vector<1x128xf32> to vector<1xf32>
    %321 = vector.shape_cast %320 : vector<1xf32> to vector<1x1xf32>
    %322 = vector.shape_cast %321 : vector<1x1xf32> to vector<1x1xf32>
    %323 = vector.broadcast %322 : vector<1x1xf32> to vector<1x128xf32>
    %324 = arith.addf %323, %6 : vector<1x128xf32>
    %c6 = arith.constant 6 : index
    %c0_64 = arith.constant 0 : index
    %325 = vector.load %arg3[%c6, %c0_64] : memref<8x128xf32, #tpu.memory_space<vmem>>, vector<1x128xf32>
    tpu.vector_store %arg3[%c6, %c0_64], %324 {strides = array<i32>} : memref<8x128xf32, #tpu.memory_space<vmem>>, vector<1x128xf32>,
    %cst_65 = arith.constant dense<0.000000e+00> : vector<1x512xf32>
    %326 = tpu.matmul %318, %2, %cst_65 {dimension_numbers = #tpu.dot_dimension_numbers<[1], [0], [0], [1], [0, 0, 1, 1], [], []>} : vector<1x128xf32>, vector<128x512xf32>, vector<1x512xf32> -> vector<1x512xf32>
    %cst_66 = arith.constant dense<0.000000e+00> : vector<1x512xf32>
    %327 = tpu.matmul %299, %0, %cst_66 {dimension_numbers = #tpu.dot_dimension_numbers<[1], [0], [0], [1], [0, 0, 1, 1], [], []>} : vector<1x128xf32>, vector<128x512xf32>, vector<1x512xf32> -> vector<1x512xf32>
    %328 = arith.addf %10, %327 : vector<1x512xf32>
    %329 = vector.extract_strided_slice %328 {offsets = [0, 0], sizes = [1, 384], strides = [1, 1]} : vector<1x512xf32> to vector<1x384xf32>
    %330 = arith.negf %329 : vector<1x384xf32>
    %331 = math.exp %330 : vector<1x384xf32>
    %cst_67 = arith.constant 1.000000e+00 : f32
    %332 = vector.broadcast %cst_67 : f32 to vector<1x384xf32>
    %333 = arith.addf %332, %331 : vector<1x384xf32>
    %334 = arith.divf %332, %333 : vector<1x384xf32>
    %335 = vector.extract_strided_slice %328 {offsets = [0, 384], sizes = [1, 128], strides = [1, 1]} : vector<1x512xf32> to vector<1x128xf32>
    %336 = math.tanh %335 : vector<1x128xf32>
    %337 = vector.extract_strided_slice %334 {offsets = [0, 0], sizes = [1, 128], strides = [1, 1]} : vector<1x384xf32> to vector<1x128xf32>
    %338 = vector.extract_strided_slice %334 {offsets = [0, 128], sizes = [1, 128], strides = [1, 1]} : vector<1x384xf32> to vector<1x128xf32>
    %339 = vector.extract_strided_slice %334 {offsets = [0, 256], sizes = [1, 128], strides = [1, 1]} : vector<1x384xf32> to vector<1x128xf32>
    %340 = arith.mulf %338, %297 : vector<1x128xf32>
    %341 = arith.mulf %337, %336 : vector<1x128xf32>
    %342 = arith.addf %340, %341 : vector<1x128xf32>
    %343 = math.tanh %342 : vector<1x128xf32>
    %344 = arith.mulf %339, %343 : vector<1x128xf32>
    %cst_68 = arith.constant dense<0.000000e+00> : vector<1x512xf32>
    %345 = tpu.matmul %344, %1, %cst_68 {dimension_numbers = #tpu.dot_dimension_numbers<[1], [0], [0], [1], [0, 0, 1, 1], [], []>} : vector<1x128xf32>, vector<128x512xf32>, vector<1x512xf32> -> vector<1x512xf32>
    %346 = arith.addf %345, %326 : vector<1x512xf32>
    %347 = arith.addf %346, %4 : vector<1x512xf32>
    %348 = vector.extract_strided_slice %347 {offsets = [0, 0], sizes = [1, 384], strides = [1, 1]} : vector<1x512xf32> to vector<1x384xf32>
    %349 = arith.negf %348 : vector<1x384xf32>
    %350 = math.exp %349 : vector<1x384xf32>
    %cst_69 = arith.constant 1.000000e+00 : f32
    %351 = vector.broadcast %cst_69 : f32 to vector<1x384xf32>
    %352 = arith.addf %351, %350 : vector<1x384xf32>
    %353 = arith.divf %351, %352 : vector<1x384xf32>
    %354 = vector.extract_strided_slice %347 {offsets = [0, 384], sizes = [1, 128], strides = [1, 1]} : vector<1x512xf32> to vector<1x128xf32>
    %355 = math.tanh %354 : vector<1x128xf32>
    %356 = vector.extract_strided_slice %353 {offsets = [0, 0], sizes = [1, 128], strides = [1, 1]} : vector<1x384xf32> to vector<1x128xf32>
    %357 = vector.extract_strided_slice %353 {offsets = [0, 128], sizes = [1, 128], strides = [1, 1]} : vector<1x384xf32> to vector<1x128xf32>
    %358 = vector.extract_strided_slice %353 {offsets = [0, 256], sizes = [1, 128], strides = [1, 1]} : vector<1x384xf32> to vector<1x128xf32>
    %359 = arith.mulf %357, %316 : vector<1x128xf32>
    %360 = arith.mulf %356, %355 : vector<1x128xf32>
    %361 = arith.addf %359, %360 : vector<1x128xf32>
    %362 = math.tanh %361 : vector<1x128xf32>
    %363 = arith.mulf %358, %362 : vector<1x128xf32>
    %364 = arith.mulf %363, %5 : vector<1x128xf32>
    %cst_70 = arith.constant dense<0.000000e+00> : vector<1xf32>
    %365 = vector.multi_reduction <add>, %364, %cst_70 [1] : vector<1x128xf32> to vector<1xf32>
    %366 = vector.shape_cast %365 : vector<1xf32> to vector<1x1xf32>
    %367 = vector.shape_cast %366 : vector<1x1xf32> to vector<1x1xf32>
    %368 = vector.broadcast %367 : vector<1x1xf32> to vector<1x128xf32>
    %369 = arith.addf %368, %6 : vector<1x128xf32>
    %c7 = arith.constant 7 : index
    %c0_71 = arith.constant 0 : index
    %370 = vector.load %arg3[%c7, %c0_71] : memref<8x128xf32, #tpu.memory_space<vmem>>, vector<1x128xf32>
    tpu.vector_store %arg3[%c7, %c0_71], %369 {strides = array<i32>} : memref<8x128xf32, #tpu.memory_space<vmem>>, vector<1x128xf32>,
    return
  }
}

</mosaic_0001>

<bundles_post_ra>
// kernel: tpu_custom_call.1
= control target key start
LH: loop header
LB: loop body
LE: loop exit
PB: predicated region body
PF: predicated region fallthrough
CT: control target
= control target key end

     0   :  { %8 = vsyncpa [#allocation3], 0  ;;  %s7199_s0 = inlined_call_operand.hbm [shape: f32[1,32], index: 0, kind: input, shape index: {}]   ;;  %s7200_s1 = inlined_call_operand.hbm [shape: f32[512,512], index: 1, kind: input, shape index: {}]   ;;  %s7201_s2 = inlined_call_operand.hbm [shape: f32[8,512], index: 2, kind: input, shape index: {}]   ;;  %s7202_s3 = inlined_call_operand.hbm [shape: f32[8,128], index: 3, kind: output, shape index: {}]  }
   0x1   :  { %9 = vsyncpa [#allocation6], 0 }
   0x2   :  { %10 = vsyncpa [#allocation4], 0  ;;  %s5946_s12 = smov [#allocation5]   ;;  %s5852_s16 = scalar_lea.hbm %s7200_s1, 32768 }
   0x3   :  { %s26_s13 = sshll.u32 %s5946_s12, 4  ;;  %p5853_p0 = scmp.ne.s32.totalorder %s7200_s1, %s5852_s16  ;;  %s27_s13 = int_to_ptr.vmem [resolvable:$true] %s26_s13 }
   0x4   :  { %p5856_p1 = scmp.lt.u32.totalorder %s5852_s16, %s7200_s1 }
   0x6   :  { %p5858_p2 = pnand %p5856_p1, %p5853_p0 }
   0x8   :  { %5861 = shalt.err (!%p5858_p2)
}
   0x9   :  { %s5862_s21 = scalar_lea.vmem %s27_s13, 32768  ;;  %p5867_p4 = scmp.lt.s32.totalorder %s27_s13, %s27_s13 }
   0xa   :  { %p5863_p3 = scmp.ne.s32.totalorder %s27_s13, %s5862_s21  ;;  %p5868_p5 = scmp.lt.s32.totalorder %s5862_s21, %s5862_s21 }
   0xc   :  { %p5869_p6 = por %p5868_p5, %p5867_p4 }
   0xe   :  { %p5870_p7 = pnand %p5869_p6, %p5863_p3 }
  0x10   :  { %5873 = shalt.err (!%p5870_p7)
}
  0x11   :  { %s5947_s22 = smov 512   ;;  %s5948_s23 = smov 32  }
  0x12   :  { %32 = dma.hbm_to_vmem [thread:$0]  %s7200_s1, 32768, %s27_s13, [#allocation6], %s5947_s22, %s5947_s22, %s5948_s23  }
  0x13   :  { %s5949_s26 = smov [#allocation2]   ;;  %s5950_s28 = smov [#allocation7]  }
  0x14   :  { %s17_s27 = sshll.u32 %s5949_s26, 4  ;;  %s39_s29 = sshll.u32 %s5950_s28, 4  ;;  %s18_s27 = int_to_ptr.vmem [resolvable:$true] %s17_s27  ;;  %s40_s29 = int_to_ptr.vmem [resolvable:$true] %s39_s29 }
  0x15   :  { %s5874_s5 = scalar_lea.hbm %s7199_s0, 16 }
  0x16   :  { %p5875_p8 = scmp.ne.s32.totalorder %s7199_s0, %s5874_s5  ;;  %p5878_p9 = scmp.lt.u32.totalorder %s5874_s5, %s7199_s0 }
  0x18   :  { %p5880_p10 = pnand %p5878_p9, %p5875_p8 }
  0x1a   :  { %5883 = shalt.err (!%p5880_p10)
}
  0x1b   :  { %s5884_s1 = scalar_lea.vmem %s18_s27, 16  ;;  %s5888_s10 = scalar_lea.vmem %s18_s27, 32 }
  0x1c   :  { %p5885_p11 = scmp.ne.s32.totalorder %s18_s27, %s5884_s1  ;;  %p5889_p12 = scmp.lt.s32.totalorder %s18_s27, %s18_s27 }
  0x1d   :  { %p5890_p13 = scmp.lt.s32.totalorder %s5888_s10, %s5884_s1 }
  0x1f   :  { %p5891_p0 = por %p5890_p13, %p5889_p12 }
  0x21   :  { %p5892_p1 = pnand %p5891_p0, %p5885_p11 }
  0x23   :  { %5895 = shalt.err (!%p5892_p1)
}
  0x24   :  { %20 = dma.hbm_to_vmem [thread:$0]  %s7199_s0, 16, %s18_s27, [#allocation3]  }
  0x25   :  { %s5896_s15 = scalar_lea.hbm %s7201_s2, 512 }
  0x26   :  { %p5897_p2 = scmp.ne.s32.totalorder %s7201_s2, %s5896_s15  ;;  %p5900_p3 = scmp.lt.u32.totalorder %s5896_s15, %s7201_s2 }
  0x28   :  { %p5902_p4 = pnand %p5900_p3, %p5897_p2 }
  0x2a   :  { %5905 = shalt.err (!%p5902_p4)
}
  0x2b   :  { %s5906_s20 = scalar_lea.vmem %s40_s29, 512  ;;  %p5911_p6 = scmp.lt.s32.totalorder %s40_s29, %s40_s29 }
  0x2c   :  { %p5907_p5 = scmp.ne.s32.totalorder %s40_s29, %s5906_s20  ;;  %p5912_p7 = scmp.lt.s32.totalorder %s5906_s20, %s5906_s20 }
  0x2e   :  { %p5913_p8 = por %p5912_p7, %p5911_p6 }
  0x30   :  { %p5914_p9 = pnand %p5913_p8, %p5907_p5 }
  0x32   :  { %5917 = shalt.err (!%p5914_p9)
}
  0x33   :  { %42 = dma.hbm_to_vmem [thread:$0]  %s7201_s2, 512, %s40_s29, [#allocation6]  }
  0x34   :  { %5940 = dma.done.wait [#allocation3], 16  }
  0x35   :  { %5941 = vsyncadd [#allocation3], 4294967280 }
  0x36   :  { %5942 = dma.done.wait [#allocation6], 33280  }
  0x37   :  { %5943 = vsyncadd [#allocation6], 4294934016  ;;  %v7203_v0 = vmov 0.0   ;;  %v251_v1 = vld [vmem:[#allocation5 + $0x8] sm:$0xff]  ;;  %v250_v3 = vld [vmem:[#allocation5] sm:$0xff]  ;;  %vm287_vm0 = vcmask 261120  }
  0x38   :  { %355 = vmatprep.mubr.f32.mxu0 %v7203_v0  ;;  %426 = vmatprep.mubr.f32.mxu1 %v7203_v0  ;;  %v255_v2 = vld [vmem:[#allocation5 + $0x28] sm:$0xff]  ;;  %v254_v5 = vld [vmem:[#allocation5 + $0x20] sm:$0xff]  ;;  %v253_v12 = vld [vmem:[#allocation5 + $0x18] sm:$0xff]  ;;  %vm645_vm1 = vcmask 1040384   ;;  %s5952_s2 = smov [#allocation8]  }
  0x39   :  { %v4133_v4 = vpack.c.bf16 %v255_v2, %v251_v1  ;;  %v259_v6 = vld [vmem:[#allocation5 + $0x48] sm:$0xff]  ;;  %v4135_v8 = vpack.c.bf16 %v254_v5, %v250_v3  ;;  %v258_v10 = vld [vmem:[#allocation5 + $0x40] sm:$0xff]  ;;  %v257_v13 = vld [vmem:[#allocation5 + $0x38] sm:$0xff]  ;;  %s4073_s22 = sshll.u32 %s5952_s2, 4  ;;  %s4074_s22 = int_to_ptr.vmem [resolvable:$true] %s4073_s22 }
  0x3a   :  { %v263_v7 = vld [vmem:[#allocation5 + $0x68] sm:$0xff]  ;;  %v262_v11 = vld [vmem:[#allocation5 + $0x60] sm:$0xff]  ;;  %v252_v14 = vld [vmem:[#allocation5 + $0x10] sm:$0xff]  ;;  %v4141_v16 = vpack.c.bf16 %v257_v13, %v253_v12  ;;  %s5918_s23 = scalar_lea.vmem %s4074_s22, 128  ;;  %p5923_p11 = scmp.lt.s32.totalorder %s4074_s22, %s4074_s22 }
  0x3b   :  { %v4137_v9 = vpack.c.bf16 %v263_v7, %v259_v6  ;;  %4134 = vmatprep.subr.bf16.mxu0 %v4133_v4  ;;  %v4139_v15 = vpack.c.bf16 %v262_v11, %v258_v10  ;;  %v256_v17 = vld [vmem:[#allocation5 + $0x30] sm:$0xff]  ;;  %v261_v18 = vld [vmem:[#allocation5 + $0x58] sm:$0xff]  ;;  %v117_v26 = vld [vmem:[#allocation5 + $0x408] sm:$0xff]  ;;  %p5919_p10 = scmp.ne.s32.totalorder %s4074_s22, %s5918_s23  ;;  %p5924_p12 = scmp.lt.s32.totalorder %s5918_s23, %s5918_s23 }
  0x3c   :  { %4136 = vmatpush1.bf16.msra.mxu0 %v4135_v8  ;;  %v265_v19 = vld [vmem:[#allocation5 + $0x78] sm:$0xff]  ;;  %v4143_v20 = vpack.c.bf16 %v256_v17, %v252_v14  ;;  %v260_v22 = vld [vmem:[#allocation5 + $0x50] sm:$0xff]  ;;  %4142 = vmatprep.subr.bf16.mxu1 %v4141_v16  ;;  %v121_v27 = vld [vmem:[#allocation5 + $0x428] sm:$0xff] }
  0x3d   :  { %4138 = vmatprep.subr.bf16.mxu0 %v4137_v9  ;;  %v4145_v21 = vpack.c.bf16 %v265_v19, %v261_v18  ;;  %v264_v23 = vld [vmem:[#allocation5 + $0x70] sm:$0xff]  ;;  %v249_v25 = vld [vmem:[#allocation2] sm:$0x1]  ;;  %v6013_v29 = vpack.c.bf16 %v121_v27, %v117_v26  ;;  %v116_v31 = vld [vmem:[#allocation5 + $0x400] sm:$0xff]  ;;  %p5925_p13 = por %p5924_p12, %p5923_p11 }
  0x3e   :  { %4144 = vmatpush1.bf16.msra.mxu1 %v4143_v20  ;;  %v4147_v24 = vpack.c.bf16 %v264_v23, %v260_v22  ;;  %v119_v28 = vld [vmem:[#allocation5 + $0x418] sm:$0xff]  ;;  %v120_v32 = vld [vmem:[#allocation5 + $0x420] sm:$0xff]  ;;  %v118_v35 = vld [vmem:[#allocation5 + $0x410] sm:$0xff] }
  0x3f   :  { %4146 = vmatprep.subr.bf16.mxu1 %v4145_v21  ;;  %v123_v30 = vld [vmem:[#allocation5 + $0x438] sm:$0xff]  ;;  %v6017_v34 = vpack.c.bf16 %v120_v32, %v116_v31  ;;  %v122_v36 = vld [vmem:[#allocation5 + $0x430] sm:$0xff]  ;;  %v125_v37 = vld [vmem:[#allocation5 + $0x448] sm:$0xff]  ;;  %p5926_p0 = pnand %p5925_p13, %p5919_p10 }
  0x40   :  { %4140 = vmatpush1.bf16.msra.mxu0 %v4139_v15  ;;  %v6015_v33 = vpack.c.bf16 %v123_v30, %v119_v28  ;;  %v6020_v38 = vpack.c.bf16 %v122_v36, %v118_v35  ;;  %v129_v39 = vld [vmem:[#allocation5 + $0x468] sm:$0xff]  ;;  %v127_v40 = vld [vmem:[#allocation5 + $0x458] sm:$0xff]  ;;  %v124_v44 = vld [vmem:[#allocation5 + $0x440] sm:$0xff] }
  0x41   :  { %4150 = vmatprep.subr.bf16.mxu0 %v6013_v29  ;;  %v131_v41 = vld [vmem:[#allocation5 + $0x478] sm:$0xff]  ;;  %v6024_v42 = vpack.c.bf16 %v129_v39, %v125_v37  ;;  %v128_v45 = vld [vmem:[#allocation5 + $0x460] sm:$0xff]  ;;  %v126_v46 = vld [vmem:[#allocation5 + $0x450] sm:$0xff] }
  0x42   :  { %4148 = vmatpush1.bf16.msra.mxu1 %v4147_v24  ;;  %v6026_v43 = vpack.c.bf16 %v131_v41, %v127_v40  ;;  %v6029_v47 = vpack.c.bf16 %v128_v45, %v124_v44  ;;  %v130_v48 = vld [vmem:[#allocation5 + $0x470] sm:$0xff]  ;;  %v133_v49 = vld [vmem:[#allocation5 + $0x488] sm:$0xff]  ;;  %v135_v53 = vld [vmem:[#allocation5 + $0x498] sm:$0xff] }
  0x43   :  { %4083 = vmatmul.mubr.msk.f32.vlgmr.msra.gmra.mrb[0].mxu0 %vm287_vm0, %v249_v25  ;;  %4182 = vmatprep.subr.bf16.mxu1 %v6015_v33  ;;  %v137_v50 = vld [vmem:[#allocation5 + $0x4a8] sm:$0xff]  ;;  %v6033_v51 = vpack.c.bf16 %v130_v48, %v126_v46  ;;  %v139_v54 = vld [vmem:[#allocation5 + $0x4b8] sm:$0xff]  ;;  %v132_v55 = vld [vmem:[#allocation5 + $0x480] sm:$0xff] }
  0x44   :  { %542 = vmatprep.mubr.f32.mxu0 %v7203_v0  ;;  %4152 = vmatpush1.bf16.msra.mxu0 %v6017_v34  ;;  %v6035_v52 = vpack.c.bf16 %v137_v50, %v133_v49  ;;  %v6037_v56 = vpack.c.bf16 %v139_v54, %v135_v53  ;;  %v136_v57 = vld [vmem:[#allocation5 + $0x4a0] sm:$0xff]  ;;  %v134_v58 = vld [vmem:[#allocation5 + $0x490] sm:$0xff]  ;;  %v141_v61 = vld [vmem:[#allocation5 + $0x4c8] sm:$0xff] }
  0x45   :  { %4084 = vmatmul.mubr.msk.f32.vlgmr.msra.gmra.mrb[0].mxu1 %vm287_vm0, %v249_v25  ;;  %4154 = vmatprep.subr.bf16.mxu0 %v6024_v42  ;;  %v138_v59 = vld [vmem:[#allocation5 + $0x4b0] sm:$0xff]  ;;  %v6040_v60 = vpack.c.bf16 %v136_v57, %v132_v55  ;;  %v145_v62 = vld [vmem:[#allocation5 + $0x4e8] sm:$0xff]  ;;  %v143_v63 = vld [vmem:[#allocation5 + $0x4d8] sm:$0xff] }
  0x46   :  { %613 = vmatprep.mubr.f32.mxu1 %v7203_v0  ;;  %4184 = vmatpush1.bf16.msra.mxu1 %v6020_v38  ;;  %7386 = vst [vmem:[#allocation12_spill] sm:$0xff] %v6037_v56  ;;  %v6044_v1 = vpack.c.bf16 %v138_v59, %v134_v58  ;;  %v6046_v2 = vpack.c.bf16 %v145_v62, %v141_v61  ;;  %v147_v3 = vld [vmem:[#allocation5 + $0x4f8] sm:$0xff]  ;;  %v140_v4 = vld [vmem:[#allocation5 + $0x4c0] sm:$0xff]  ;;  %v142_v7 = vld [vmem:[#allocation5 + $0x4d0] sm:$0xff] }
  0x47   :  { %4186 = vmatprep.subr.bf16.mxu1 %v6026_v43  ;;  %7387 = vst [vmem:[#allocation13_spill] sm:$0xff] %v6040_v60  ;;  %v144_v5 = vld [vmem:[#allocation5 + $0x4e0] sm:$0xff]  ;;  %v6049_v6 = vpack.c.bf16 %v147_v3, %v143_v63  ;;  %v146_v8 = vld [vmem:[#allocation5 + $0x4f0] sm:$0xff]  ;;  %v149_v9 = vld [vmem:[#allocation5 + $0x508] sm:$0xff] }
  0x48   :  { %4156 = vmatpush1.bf16.msra.mxu0 %v6029_v47  ;;  %7388 = vst [vmem:[#allocation14_spill] sm:$0xff] %v6044_v1  ;;  %7389 = vst [vmem:[#allocation15_spill] sm:$0xff] %v6046_v2  ;;  %v153_v10 = vld [vmem:[#allocation5 + $0x528] sm:$0xff]  ;;  %v151_v11 = vld [vmem:[#allocation5 + $0x518] sm:$0xff]  ;;  %v6052_v13 = vpack.c.bf16 %v144_v5, %v140_v4  ;;  %v6056_v14 = vpack.c.bf16 %v146_v8, %v142_v7 }
  0x49   :  { %4158 = vmatprep.subr.bf16.mxu0 %v6035_v52  ;;  %7390 = vst [vmem:[#allocation16_spill] sm:$0xff] %v6049_v6  ;;  %v155_v12 = vld [vmem:[#allocation5 + $0x538] sm:$0xff]  ;;  %v6058_v15 = vpack.c.bf16 %v153_v10, %v149_v9  ;;  %v148_v16 = vld [vmem:[#allocation5 + $0x500] sm:$0xff]  ;;  %v150_v18 = vld [vmem:[#allocation5 + $0x510] sm:$0xff]  ;;  %v267_v10 = vlaneseq }
  0x4a   :  { %4188 = vmatpush1.bf16.msra.mxu1 %v6033_v51  ;;  %7391 = vst [vmem:[#allocation17_spill] sm:$0xff] %v6052_v13  ;;  %7392 = vst [vmem:[#allocation18_spill] sm:$0xff] %v6056_v14  ;;  %v152_v17 = vld [vmem:[#allocation5 + $0x520] sm:$0xff]  ;;  %v6061_v19 = vpack.c.bf16 %v155_v12, %v151_v11  ;;  %v154_v20 = vld [vmem:[#allocation5 + $0x530] sm:$0xff] }
  0x4b   :  { %4190 = vmatprep.subr.bf16.mxu1 %v6037_v56  ;;  %7393 = vst [vmem:[#allocation19_spill] sm:$0xff] %v6058_v15  ;;  %v157_v21 = vld [vmem:[#allocation5 + $0x548] sm:$0xff]  ;;  %v159_v23 = vld [vmem:[#allocation5 + $0x558] sm:$0xff]  ;;  %v6064_v25 = vpack.c.bf16 %v152_v17, %v148_v16  ;;  %v6068_v26 = vpack.c.bf16 %v154_v20, %v150_v18  ;;  %v156_v28 = vld [vmem:[#allocation5 + $0x540] sm:$0xff]  ;;  %v6109_v11 = vshrl.u32 %v267_v10, 7 }
  0x4c   :  { %4160 = vmatpush1.bf16.msra.mxu0 %v6040_v60  ;;  %7394 = vst [vmem:[#allocation20_spill] sm:$0xff] %v6061_v19  ;;  %v161_v22 = vld [vmem:[#allocation5 + $0x568] sm:$0xff]  ;;  %v163_v24 = vld [vmem:[#allocation5 + $0x578] sm:$0xff]  ;;  %v160_v30 = vld [vmem:[#allocation5 + $0x560] sm:$0xff] }
  0x4d   :  { %4162 = vmatprep.subr.bf16.mxu0 %v6046_v2  ;;  %7395 = vst [vmem:[#allocation21_spill] sm:$0xff] %v6064_v25  ;;  %7396 = vst [vmem:[#allocation22_spill] sm:$0xff] %v6068_v26  ;;  %v6070_v27 = vpack.c.bf16 %v161_v22, %v157_v21  ;;  %v158_v31 = vld [vmem:[#allocation5 + $0x550] sm:$0xff]  ;;  %v6073_v32 = vpack.c.bf16 %v163_v24, %v159_v23  ;;  %v165_v36 = vld [vmem:[#allocation5 + $0x588] sm:$0xff]  ;;  %v6076_v41 = vpack.c.bf16 %v160_v30, %v156_v28 }
  0x4e   :  { %4192 = vmatpush1.bf16.msra.mxu1 %v6044_v1  ;;  %v162_v35 = vld [vmem:[#allocation5 + $0x570] sm:$0xff]  ;;  %v169_v37 = vld [vmem:[#allocation5 + $0x5a8] sm:$0xff]  ;;  %v167_v39 = vld [vmem:[#allocation5 + $0x598] sm:$0xff]  ;;  %v7208_v12 = vsub.s32 0, %v6109_v11  ;;  %v7207_v17 = vsub.s32 1, %v6109_v11  ;;  %v7206_v21 = vsub.s32 2, %v6109_v11 }
  0x4f   :  { %4194 = vmatprep.subr.bf16.mxu1 %v6049_v6  ;;  %7397 = vst [vmem:[#allocation23_spill] sm:$0xff] %v6070_v27  ;;  %7398 = vst [vmem:[#allocation24_spill] sm:$0xff] %v6073_v32  ;;  %v171_v40 = vld [vmem:[#allocation5 + $0x5b8] sm:$0xff]  ;;  %v6080_v44 = vpack.c.bf16 %v162_v35, %v158_v31  ;;  %v6082_v45 = vpack.c.bf16 %v169_v37, %v165_v36  ;;  %v164_v46 = vld [vmem:[#allocation5 + $0x580] sm:$0xff]  ;;  %v7205_v36 = vsub.s32 3, %v6109_v11 }
  0x50   :  { %4164 = vmatpush1.bf16.msra.mxu0 %v6052_v13  ;;  %7399 = vst [vmem:[#allocation25_spill] sm:$0xff] %v6076_v41  ;;  %v168_v48 = vld [vmem:[#allocation5 + $0x5a0] sm:$0xff]  ;;  %v166_v49 = vld [vmem:[#allocation5 + $0x590] sm:$0xff]  ;;  %v6085_v50 = vpack.c.bf16 %v171_v40, %v167_v39  ;;  %v173_v54 = vld [vmem:[#allocation5 + $0x5c8] sm:$0xff] }
  0x51   :  { %4166 = vmatprep.subr.bf16.mxu0 %v6058_v15  ;;  %7400 = vst [vmem:[#allocation26_spill] sm:$0xff] %v6080_v44  ;;  %7401 = vst [vmem:[#allocation27_spill] sm:$0xff] %v6082_v45  ;;  %v170_v53 = vld [vmem:[#allocation5 + $0x5b0] sm:$0xff]  ;;  %v177_v55 = vld [vmem:[#allocation5 + $0x5e8] sm:$0xff]  ;;  %v6088_v59 = vpack.c.bf16 %v168_v48, %v164_v46 }
  0x52   :  { %4196 = vmatpush1.bf16.msra.mxu1 %v6056_v14  ;;  %7402 = vst [vmem:[#allocation28_spill] sm:$0xff] %v6085_v50  ;;  %v175_v57 = vld [vmem:[#allocation5 + $0x5d8] sm:$0xff]  ;;  %v6092_v61 = vpack.c.bf16 %v170_v53, %v166_v49  ;;  %v6094_v62 = vpack.c.bf16 %v177_v55, %v173_v54  ;;  %v172_v63 = vld [vmem:[#allocation5 + $0x5c0] sm:$0xff]  ;;  %v174_v5 = vld [vmem:[#allocation5 + $0x5d0] sm:$0xff] }
  0x53   :  { %4198 = vmatprep.subr.bf16.mxu1 %v6061_v19  ;;  %v179_v58 = vld [vmem:[#allocation5 + $0x5f8] sm:$0xff]  ;;  %7403 = vst [vmem:[#allocation29_spill] sm:$0xff] %v6088_v59  ;;  %v176_v3 = vld [vmem:[#allocation5 + $0x5e0] sm:$0xff]  ;;  %v178_v7 = vld [vmem:[#allocation5 + $0x5f0] sm:$0xff] }
  0x54   :  { %4168 = vmatpush1.bf16.msra.mxu0 %v6064_v25  ;;  %7404 = vst [vmem:[#allocation30_spill] sm:$0xff] %v6092_v61  ;;  %7405 = vst [vmem:[#allocation31_spill] sm:$0xff] %v6094_v62  ;;  %v6097_v4 = vpack.c.bf16 %v179_v58, %v175_v57  ;;  %v6100_v8 = vpack.c.bf16 %v176_v3, %v172_v63  ;;  %v6104_v9 = vpack.c.bf16 %v178_v7, %v174_v5  ;;  %v244_v16 = vld [vmem:[#allocation7] ss:$8 sm:$0xf] }
  0x55   :  { %4170 = vmatprep.subr.bf16.mxu0 %v6070_v27  ;;  %v270_v18 = vrot.slane %v244_v16, %v7208_v12  ;;  %v274_v20 = vrot.slane %v244_v16, %v7207_v17  ;;  %v278_v31 = vrot.slane %v244_v16, %v7206_v21  ;;  %v282_v46 = vrot.slane %v244_v16, %v7205_v36  ;;  %v213_v12 = vld [vmem:[#allocation5 + $0x708] sm:$0xff] }
  0x56   :  { %4200 = vmatpush1.bf16.msra.mxu1 %v6068_v26  ;;  %7406 = vst [vmem:[#allocation32_spill] sm:$0xff] %v6097_v4  ;;  %7407 = vst [vmem:[#allocation33_spill] sm:$0xff] %v6100_v8 }
  0x57   :  { %4202 = vmatprep.subr.bf16.mxu1 %v6073_v32  ;;  %7408 = vst [vmem:[#allocation34_spill] sm:$0xff] %v6104_v9 }
  0x58   :  { %4172 = vmatpush1.bf16.msra.mxu0 %v6076_v41 }
  0x59   :  { %4174 = vmatprep.subr.bf16.mxu0 %v6082_v45 }
  0x5a   :  { %4204 = vmatpush1.bf16.msra.mxu1 %v6080_v44 }
  0x5b   :  { %4206 = vmatprep.subr.bf16.mxu1 %v6085_v50 }
  0x5c   :  { %4176 = vmatpush1.bf16.msra.mxu0 %v6088_v59 }
  0x5d   :  { %4178 = vmatprep.subr.bf16.mxu0 %v6094_v62 }
  0x5e   :  { %4208 = vmatpush1.bf16.msra.mxu1 %v6092_v61 }
  0x5f   :  { %4210 = vmatprep.subr.bf16.mxu1 %v6097_v4 }
  0x60   :  { %4180 = vmatpush1.bf16.msra.mxu0 %v6100_v8 }
  0x62   :  { %4212 = vmatpush1.bf16.msra.mxu1 %v6104_v9 }
 0x116   :  { %v357_v22 = vpop.f32.mrb[0].mxu0 }
 0x117   :  { %v6118_v23 = vadd.f32 %v357_v22, %v270_v18  ;;  %v359_v24 = vpop.f32.mrb[1].mxu0 }
 0x118   :  { %v6120_v28 = vadd.f32 %v359_v24, %v274_v20  ;;  %v428_v35 = vpop.f32.mrb[0].mxu1 }
 0x119   :  { %7409 = vst [vmem:[#allocation35_spill] sm:$0xff] %v6118_v23  ;;  %v4085_v30 = vmul.f32 -1.442695, %v6118_v23  ;;  %v430_v37 = vpop.f32.mrb[1].mxu1  ;;  %v6127_v40 = vadd.f32 %v428_v35, %v278_v31  ;;  %v185_v31 = vld [vmem:[#allocation5 + $0x628] sm:$0xff]  ;;  %v183_v35 = vld [vmem:[#allocation5 + $0x618] sm:$0xff] }
 0x11a   :  { %7410 = vst [vmem:[#allocation36_spill] sm:$0xff] %v6120_v28  ;;  %v4086_v39 = vmul.f32 -1.442695, %v6120_v28  ;;  %v6132_v49 = vadd.f32 %v430_v37, %v282_v46  ;;  %v180_v46 = vld [vmem:[#allocation5 + $0x600] sm:$0xff] }
 0x11b   :  { %5592 = vpow2.f32 %v4085_v30  ;;  %7411 = vst [vmem:[#allocation37_spill] sm:$0xff] %v6127_v40  ;;  %v4087_v48 = vmul.f32 -1.442695, %v6127_v40  ;;  %v181_v30 = vld [vmem:[#allocation5 + $0x608] sm:$0xff] }
 0x11c   :  { %5594 = vpow2.f32 %v4086_v39  ;;  %7412 = vst [vmem:[#allocation38_spill] sm:$0xff] %v6132_v49  ;;  %v6144_v37 = vpack.c.bf16 %v185_v31, %v181_v30  ;;  %v187_v39 = vld [vmem:[#allocation5 + $0x638] sm:$0xff]  ;;  %v190_v31 = vld [vmem:[#allocation5 + $0x650] sm:$0xff] }
 0x11d   :  { %5596 = vpow2.f32 %v4087_v48  ;;  %v184_v48 = vld [vmem:[#allocation5 + $0x620] sm:$0xff] }
 0x11e   :  { %5598 = vtanh.f32 %v6132_v49  ;;  %7413 = vst [vmem:[#allocation39_spill] sm:$0xff] %v6144_v37  ;;  %4214 = vmatprep.subr.bf16.mxu0 %v6144_v37 }
 0x125   :  { %v5593_v53 = vpop.eup %5592 }
 0x126   :  { %v5595_v54 = vpop.eup %5594  ;;  %v442_v55 = vadd.f32 1.0, %v5593_v53  ;;  %v6146_v53 = vpack.c.bf16 %v187_v39, %v183_v35  ;;  %v194_v35 = vld [vmem:[#allocation5 + $0x670] sm:$0xff] }
 0x127   :  { %v443_v57 = vadd.f32 1.0, %v5595_v54  ;;  %v5597_v58 = vpop.eup %5596  ;;  %v6148_v54 = vpack.c.bf16 %v184_v48, %v180_v46  ;;  %v6163_v39 = vpack.c.bf16 %v194_v35, %v190_v31  ;;  %v197_v46 = vld [vmem:[#allocation5 + $0x688] sm:$0xff]  ;;  %v202_v31 = vld [vmem:[#allocation5 + $0x6b0] sm:$0xff] }
 0x128   :  { %5600 = vrcp.f32 %v442_v55  ;;  %v5599_v63 = vpop.eup %5598  ;;  %v444_v5 = vadd.f32 1.0, %v5597_v58  ;;  %7414 = vst [vmem:[#allocation40_spill] sm:$0xff] %v6146_v53  ;;  %v182_v55 = vld [vmem:[#allocation5 + $0x610] sm:$0xff]  ;;  %4246 = vmatprep.subr.bf16.mxu1 %v6146_v53  ;;  %v201_v48 = vld [vmem:[#allocation5 + $0x6a8] sm:$0xff] }
 0x129   :  { %5602 = vrcp.f32 %v443_v57  ;;  %7415 = vst [vmem:[#allocation41_spill] sm:$0xff] %v6148_v54  ;;  %v186_v57 = vld [vmem:[#allocation5 + $0x630] sm:$0xff]  ;;  %7420 = vst [vmem:[#allocation46_spill] sm:$0xff] %v6163_v39 }
 0x12a   :  { %5604 = vrcp.f32 %v444_v5  ;;  %v6151_v58 = vpack.c.bf16 %v186_v57, %v182_v55  ;;  %v191_v5 = vld [vmem:[#allocation5 + $0x658] sm:$0xff]  ;;  %v6168_v57 = vpack.c.bf16 %v201_v48, %v197_v46  ;;  %v209_v46 = vld [vmem:[#allocation5 + $0x6e8] sm:$0xff] }
 0x12b   :  { %v199_v55 = vld [vmem:[#allocation5 + $0x698] sm:$0xff] }
 0x12c   :  { %7416 = vst [vmem:[#allocation42_spill] sm:$0xff] %v6151_v58  ;;  %7421 = vst [vmem:[#allocation47_spill] sm:$0xff] %v6168_v57  ;;  %v207_v48 = vld [vmem:[#allocation5 + $0x6d8] sm:$0xff] }
 0x132   :  { %v5601_v3 = vpop.eup %5600 }
 0x133   :  { %v5603_v7 = vpop.eup %5602  ;;  %v453_v10 = vmul.f32 %v5601_v3, %v5599_v63  ;;  %v189_v63 = vld [vmem:[#allocation5 + $0x648] sm:$0xff] }
 0x134   :  { %v452_v16 = vmul.f32 0.0, %v5603_v7  ;;  %v5605_v20 = vpop.eup %5604  ;;  %v193_v3 = vld [vmem:[#allocation5 + $0x668] sm:$0xff] }
 0x135   :  { %v6156_v7 = vpack.c.bf16 %v193_v3, %v189_v63  ;;  %v203_v63 = vld [vmem:[#allocation5 + $0x6b8] sm:$0xff]  ;;  %v196_v3 = vld [vmem:[#allocation5 + $0x680] sm:$0xff] }
 0x136   :  { %v6135_v18 = vadd.f32 %v453_v10, %v452_v16  ;;  %v195_v10 = vld [vmem:[#allocation5 + $0x678] sm:$0xff]  ;;  %v188_v16 = vld [vmem:[#allocation5 + $0x640] sm:$0xff] }
 0x137   :  { %7417 = vst [vmem:[#allocation43_spill] sm:$0xff] %v6156_v7 }
 0x138   :  { %5606 = vtanh.f32 %v6135_v18 }
 0x142   :  { %v5607_v22 = vpop.eup %5606 }
 0x143   :  { %v6138_v24 = vmul.f32 %v5607_v22, %v5605_v20  ;;  %v192_v20 = vld [vmem:[#allocation5 + $0x660] sm:$0xff]  ;;  %v6158_v22 = vpack.c.bf16 %v195_v10, %v191_v5  ;;  %v6170_v10 = vpack.c.bf16 %v203_v63, %v199_v55  ;;  %v211_v55 = vld [vmem:[#allocation5 + $0x6f8] sm:$0xff] }
 0x144   :  { %v6160_v30 = vpack.c.bf16 %v192_v20, %v188_v16  ;;  %v200_v5 = vld [vmem:[#allocation5 + $0x6a0] sm:$0xff]  ;;  %v198_v20 = vld [vmem:[#allocation5 + $0x690] sm:$0xff] }
 0x145   :  { %543 = vmatmul.mubr.f32.vlgmr.msra.gmra.mrb[2].mxu0 %v6138_v24  ;;  %614 = vmatmul.mubr.f32.vlgmr.msra.gmra.mrb[2].mxu1 %v6138_v24  ;;  %7418 = vst [vmem:[#allocation44_spill] sm:$0xff] %v6158_v22  ;;  %7422 = vst [vmem:[#allocation48_spill] sm:$0xff] %v6170_v10  ;;  %v6172_v16 = vpack.c.bf16 %v200_v5, %v196_v3  ;;  %v6175_v35 = vpack.c.bf16 %v202_v31, %v198_v20  ;;  %v204_v63 = vld [vmem:[#allocation5 + $0x6c0] sm:$0xff]  ;;  %v206_v20 = vld [vmem:[#allocation5 + $0x6d0] sm:$0xff] }
 0x146   :  { %715 = vmatprep.mubr.f32.mxu0 %v7203_v0  ;;  %786 = vmatprep.mubr.f32.mxu1 %v7203_v0  ;;  %7419 = vst [vmem:[#allocation45_spill] sm:$0xff] %v6160_v30  ;;  %v205_v0 = vld [vmem:[#allocation5 + $0x6c8] sm:$0xff]  ;;  %v208_v3 = vld [vmem:[#allocation5 + $0x6e0] sm:$0xff]  ;;  %v6182_v5 = vpack.c.bf16 %v211_v55, %v207_v48  ;;  %v210_v31 = vld [vmem:[#allocation5 + $0x6f0] sm:$0xff] }
 0x147   :  { %4216 = vmatpush1.bf16.msra.mxu0 %v6148_v54  ;;  %4248 = vmatpush1.bf16.msra.mxu1 %v6151_v58  ;;  %7423 = vst [vmem:[#allocation49_spill] sm:$0xff] %v6172_v16  ;;  %7424 = vst [vmem:[#allocation50_spill] sm:$0xff] %v6175_v35  ;;  %v6180_v36 = vpack.c.bf16 %v209_v46, %v205_v0  ;;  %v6184_v21 = vpack.c.bf16 %v208_v3, %v204_v63  ;;  %v217_v0 = vld [vmem:[#allocation5 + $0x728] sm:$0xff]  ;;  %v215_v46 = vld [vmem:[#allocation5 + $0x718] sm:$0xff] }
 0x148   :  { %4218 = vmatprep.subr.bf16.mxu0 %v6156_v7  ;;  %4250 = vmatprep.subr.bf16.mxu1 %v6158_v22  ;;  %7426 = vst [vmem:[#allocation52_spill] sm:$0xff] %v6182_v5  ;;  %v6187_v17 = vpack.c.bf16 %v210_v31, %v206_v20  ;;  %v219_v48 = vld [vmem:[#allocation5 + $0x738] sm:$0xff]  ;;  %v212_v55 = vld [vmem:[#allocation5 + $0x700] sm:$0xff]  ;;  %v214_v20 = vld [vmem:[#allocation5 + $0x710] sm:$0xff] }
 0x149   :  { %7425 = vst [vmem:[#allocation51_spill] sm:$0xff] %v6180_v36  ;;  %7427 = vst [vmem:[#allocation53_spill] sm:$0xff] %v6184_v21  ;;  %v216_v63 = vld [vmem:[#allocation5 + $0x720] sm:$0xff]  ;;  %v6194_v3 = vpack.c.bf16 %v219_v48, %v215_v46  ;;  %v218_v31 = vld [vmem:[#allocation5 + $0x730] sm:$0xff] }
 0x14a   :  { %7428 = vst [vmem:[#allocation54_spill] sm:$0xff] %v6187_v17  ;;  %v227_v46 = vld [vmem:[#allocation5 + $0x778] sm:$0xff]  ;;  %v220_v48 = vld [vmem:[#allocation5 + $0x740] sm:$0xff]  ;;  %v69_v22 = vld [vmem:[#allocation5 + $0x288] sm:$0xff] }
 0x14b   :  { %4220 = vmatpush1.bf16.msra.mxu0 %v6160_v30  ;;  %4252 = vmatpush1.bf16.msra.mxu1 %v6163_v39  ;;  %7430 = vst [vmem:[#allocation56_spill] sm:$0xff] %v6194_v3  ;;  %v66_v30 = vld [vmem:[#allocation5 + $0x270] sm:$0xff]  ;;  %v73_v7 = vld [vmem:[#allocation5 + $0x2a8] sm:$0xff]  ;;  %v71_v58 = vld [vmem:[#allocation5 + $0x298] sm:$0xff] }
 0x14c   :  { %4222 = vmatprep.subr.bf16.mxu0 %v6168_v57  ;;  %4254 = vmatprep.subr.bf16.mxu1 %v6170_v10  ;;  %v231_v10 = vld [vmem:[#allocation5 + $0x798] sm:$0xff] }
 0x14d   :  { %v75_v54 = vld [vmem:[#allocation5 + $0x2b8] sm:$0xff] }
 0x14f   :  { %4224 = vmatpush1.bf16.msra.mxu0 %v6172_v16  ;;  %4256 = vmatpush1.bf16.msra.mxu1 %v6175_v35  ;;  %v6192_v35 = vpack.c.bf16 %v217_v0, %v213_v12  ;;  %v6196_v16 = vpack.c.bf16 %v216_v63, %v212_v55  ;;  %v225_v12 = vld [vmem:[#allocation5 + $0x768] sm:$0xff]  ;;  %v223_v0 = vld [vmem:[#allocation5 + $0x758] sm:$0xff]  ;;  %v224_v55 = vld [vmem:[#allocation5 + $0x760] sm:$0xff] }
 0x150   :  { %4226 = vmatprep.subr.bf16.mxu0 %v6180_v36  ;;  %4258 = vmatprep.subr.bf16.mxu1 %v6182_v5  ;;  %v6199_v5 = vpack.c.bf16 %v218_v31, %v214_v20  ;;  %v6206_v63 = vpack.c.bf16 %v227_v46, %v223_v0  ;;  %v6208_v36 = vpack.c.bf16 %v224_v55, %v220_v48  ;;  %v222_v20 = vld [vmem:[#allocation5 + $0x750] sm:$0xff]  ;;  %v228_v0 = vld [vmem:[#allocation5 + $0x780] sm:$0xff] }
 0x151   :  { %7429 = vst [vmem:[#allocation55_spill] sm:$0xff] %v6192_v35  ;;  %7431 = vst [vmem:[#allocation57_spill] sm:$0xff] %v6196_v16  ;;  %v226_v31 = vld [vmem:[#allocation5 + $0x770] sm:$0xff]  ;;  %v232_v46 = vld [vmem:[#allocation5 + $0x7a0] sm:$0xff] }
 0x152   :  { %7432 = vst [vmem:[#allocation58_spill] sm:$0xff] %v6199_v5  ;;  %7434 = vst [vmem:[#allocation60_spill] sm:$0xff] %v6206_v63  ;;  %v6220_v55 = vpack.c.bf16 %v232_v46, %v228_v0  ;;  %v238_v0 = vld [vmem:[#allocation5 + $0x7d0] sm:$0xff] }
 0x153   :  { %4228 = vmatpush1.bf16.msra.mxu0 %v6184_v21  ;;  %4260 = vmatpush1.bf16.msra.mxu1 %v6187_v17  ;;  %v221_v17 = vld [vmem:[#allocation5 + $0x748] sm:$0xff]  ;;  %7435 = vst [vmem:[#allocation61_spill] sm:$0xff] %v6208_v36 }
 0x154   :  { %4230 = vmatprep.subr.bf16.mxu0 %v6192_v35  ;;  %4262 = vmatprep.subr.bf16.mxu1 %v6194_v3  ;;  %v6204_v21 = vpack.c.bf16 %v225_v12, %v221_v17  ;;  %v6211_v3 = vpack.c.bf16 %v226_v31, %v222_v20  ;;  %v233_v35 = vld [vmem:[#allocation5 + $0x7a8] sm:$0xff]  ;;  %v235_v12 = vld [vmem:[#allocation5 + $0x7b8] sm:$0xff]  ;;  %7439 = vst [vmem:[#allocation65_spill] sm:$0xff] %v6220_v55  ;;  %v230_v20 = vld [vmem:[#allocation5 + $0x790] sm:$0xff] }
 0x155   :  { %v6218_v48 = vpack.c.bf16 %v235_v12, %v231_v10  ;;  %v234_v31 = vld [vmem:[#allocation5 + $0x7b0] sm:$0xff]  ;;  %v236_v10 = vld [vmem:[#allocation5 + $0x7c0] sm:$0xff] }
 0x156   :  { %7433 = vst [vmem:[#allocation59_spill] sm:$0xff] %v6204_v21  ;;  %7436 = vst [vmem:[#allocation62_spill] sm:$0xff] %v6211_v3  ;;  %v240_v12 = vld [vmem:[#allocation5 + $0x7e0] sm:$0xff] }
 0x157   :  { %4232 = vmatpush1.bf16.msra.mxu0 %v6196_v16  ;;  %4264 = vmatpush1.bf16.msra.mxu1 %v6199_v5  ;;  %v229_v16 = vld [vmem:[#allocation5 + $0x788] sm:$0xff]  ;;  %7438 = vst [vmem:[#allocation64_spill] sm:$0xff] %v6218_v48  ;;  %v6223_v5 = vpack.c.bf16 %v234_v31, %v230_v20  ;;  %v6231_v46 = vpack.c.bf16 %v240_v12, %v236_v10 }
 0x158   :  { %4234 = vmatprep.subr.bf16.mxu0 %v6204_v21  ;;  %4266 = vmatprep.subr.bf16.mxu1 %v6206_v63  ;;  %v6215_v17 = vpack.c.bf16 %v233_v35, %v229_v16  ;;  %v237_v21 = vld [vmem:[#allocation5 + $0x7c8] sm:$0xff]  ;;  %v243_v16 = vld [vmem:[#allocation5 + $0x7f8] sm:$0xff] }
 0x159   :  { %7440 = vst [vmem:[#allocation66_spill] sm:$0xff] %v6223_v5  ;;  %v241_v63 = vld [vmem:[#allocation5 + $0x7e8] sm:$0xff]  ;;  %7443 = vst [vmem:[#allocation69_spill] sm:$0xff] %v6231_v46 }
 0x15a   :  { %7437 = vst [vmem:[#allocation63_spill] sm:$0xff] %v6215_v17  ;;  %v6226_v35 = vpack.c.bf16 %v241_v63, %v237_v21  ;;  %v57_v20 = vld [vmem:[#allocation5 + $0x228] sm:$0xff]  ;;  %v59_v63 = vld [vmem:[#allocation5 + $0x238] sm:$0xff] }
 0x15b   :  { %4236 = vmatpush1.bf16.msra.mxu0 %v6208_v36  ;;  %4268 = vmatpush1.bf16.msra.mxu1 %v6211_v3  ;;  %v239_v36 = vld [vmem:[#allocation5 + $0x7d8] sm:$0xff]  ;;  %v242_v3 = vld [vmem:[#allocation5 + $0x7f0] sm:$0xff] }
 0x15c   :  { %4238 = vmatprep.subr.bf16.mxu0 %v6215_v17  ;;  %4270 = vmatprep.subr.bf16.mxu1 %v6218_v48  ;;  %7441 = vst [vmem:[#allocation67_spill] sm:$0xff] %v6226_v35  ;;  %v6228_v57 = vpack.c.bf16 %v243_v16, %v239_v36  ;;  %v53_v17 = vld [vmem:[#allocation5 + $0x208] sm:$0xff]  ;;  %v6235_v31 = vpack.c.bf16 %v242_v3, %v238_v0  ;;  %v55_v36 = vld [vmem:[#allocation5 + $0x218] sm:$0xff]  ;;  %v7447_v3 = vsub.s32 0, %v6109_v11 }
 0x15d   :  { %v6237_v21 = vpack.c.bf16 %v57_v20, %v53_v17  ;;  %v6240_v16 = vpack.c.bf16 %v59_v63, %v55_v36  ;;  %v246_v10 = vld [vmem:[#allocation7 + $0x1] ss:$8 sm:$0xf]  ;;  %v7449_v17 = vsub.s32 1, %v6109_v11 }
 0x15e   :  { %7442 = vst [vmem:[#allocation68_spill] sm:$0xff] %v6228_v57  ;;  %7444 = vst [vmem:[#allocation70_spill] sm:$0xff] %v6235_v31  ;;  %v6248_v12 = vrot.slane %v246_v10, %v7447_v3  ;;  %v7453_v3 = vsub.s32 3, %v6109_v11 }
 0x15f   :  { %4240 = vmatpush1.bf16.msra.mxu0 %v6220_v55  ;;  %4272 = vmatpush1.bf16.msra.mxu1 %v6223_v5  ;;  %7445 = vst [vmem:[#allocation71_spill] sm:$0xff] %v6237_v21  ;;  %7446 = vst [vmem:[#allocation72_spill] sm:$0xff] %v6240_v16  ;;  %v6252_v0 = vrot.slane %v246_v10, %v7449_v17 }
 0x160   :  { %4242 = vmatprep.subr.bf16.mxu0 %v6226_v35  ;;  %4274 = vmatprep.subr.bf16.mxu1 %v6228_v57  ;;  %7448 = vst [vmem:[#allocation73_spill] sm:$0xff] %v6248_v12  ;;  %v6262_v17 = vrot.slane %v246_v10, %v7453_v3 }
 0x161   :  { %7450 = vst [vmem:[#allocation74_spill] sm:$0xff] %v6252_v0 }
 0x162   :  { %7454 = vst [vmem:[#allocation76_spill] sm:$0xff] %v6262_v17 }
 0x163   :  { %4244 = vmatpush1.bf16.msra.mxu0 %v6231_v46  ;;  %4276 = vmatpush1.bf16.msra.mxu1 %v6235_v31 }
 0x164   :  { %4278 = vmatprep.subr.bf16.mxu0 %v6237_v21  ;;  %4310 = vmatprep.subr.bf16.mxu1 %v6240_v16  ;;  %v7451_v16 = vsub.s32 2, %v6109_v11 }
 0x166   :  { %v6258_v5 = vrot.slane %v246_v10, %v7451_v16 }
 0x168   :  { %7452 = vst [vmem:[#allocation75_spill] sm:$0xff] %v6258_v5 }
 0x218   :  { %v544_v20 = vpop.f32.mrb[2].mxu0  ;;  %v615_v36 = vpop.f32.mrb[2].mxu1 }
 0x219   :  { %v545_v63 = vadd.f32 %v544_v20, %v6248_v12  ;;  %v546_v46 = vpop.f32.mrb[3].mxu0  ;;  %v617_v57 = vpop.f32.mrb[3].mxu1  ;;  %v616_v55 = vadd.f32 %v615_v36, %v6258_v5  ;;  %v58_v36 = vld [vmem:[#allocation5 + $0x230] sm:$0xff] }
 0x21a   :  { %v547_v31 = vadd.f32 %v546_v46, %v6252_v0  ;;  %v618_v20 = vadd.f32 %v617_v57, %v6262_v17  ;;  %v52_v57 = vld [vmem:[#allocation5 + $0x200] sm:$0xff] }
 0x21b   :  { %v4088_v21 = vmul.f32 -1.442695, %v545_v63  ;;  %v4090_v12 = vmul.f32 -1.442695, %v616_v55  ;;  %v54_v55 = vld [vmem:[#allocation5 + $0x210] sm:$0xff] }
 0x21c   :  { %v4089_v35 = vmul.f32 -1.442695, %v547_v31 }
 0x21d   :  { %5608 = vpow2.f32 %v4088_v21 }
 0x21e   :  { %5610 = vpow2.f32 %v4089_v35 }
 0x21f   :  { %5612 = vtanh.f32 %v618_v20  ;;  %v63_v20 = vld [vmem:[#allocation5 + $0x258] sm:$0xff] }
 0x220   :  { %5614 = vpow2.f32 %v4090_v12  ;;  %v61_v12 = vld [vmem:[#allocation5 + $0x248] sm:$0xff] }
 0x227   :  { %v5609_v48 = vpop.eup %5608 }
 0x228   :  { %v629_v39 = vadd.f32 1.0, %v5609_v48  ;;  %v5611_v46 = vpop.eup %5610  ;;  %v56_v48 = vld [vmem:[#allocation5 + $0x220] sm:$0xff] }
 0x229   :  { %v630_v31 = vadd.f32 1.0, %v5611_v46  ;;  %v5613_v16 = vpop.eup %5612  ;;  %v67_v46 = vld [vmem:[#allocation5 + $0x278] sm:$0xff]  ;;  %v6269_v5 = vpack.c.bf16 %v56_v48, %v52_v57 }
 0x22a   :  { %5616 = vrcp.f32 %v629_v39  ;;  %v5615_v21 = vpop.eup %5614  ;;  %v65_v39 = vld [vmem:[#allocation5 + $0x268] sm:$0xff] }
 0x22b   :  { %5618 = vrcp.f32 %v630_v31  ;;  %v631_v10 = vadd.f32 1.0, %v5615_v21  ;;  %7456 = vst [vmem:[#allocation78_spill] sm:$0xff] %v6269_v5  ;;  %v6273_v21 = vld [vmem:[#allocation7 + $0x2] ss:$0 sm:$0xff] }
 0x22d   :  { %5620 = vrcp.f32 %v631_v10  ;;  %v6275_v10 = vpack.c.bf16 %v65_v39, %v61_v12  ;;  %v6289_v39 = vpack.c.bf16 %v73_v7, %v69_v22 }
 0x22f   :  { %7458 = vst [vmem:[#allocation80_spill] sm:$0xff] %v6275_v10  ;;  %7462 = vst [vmem:[#allocation84_spill] sm:$0xff] %v6289_v39 }
 0x234   :  { %v5617_v35 = vpop.eup %5616 }
 0x235   :  { %v640_v63 = vmul.f32 %v5617_v35, %v5613_v16  ;;  %v5619_v11 = vpop.eup %5618  ;;  %v6271_v16 = vpack.c.bf16 %v58_v36, %v54_v55  ;;  %v60_v35 = vld [vmem:[#allocation5 + $0x240] sm:$0xff] }
 0x236   :  { %v639_v3 = vmul.f32 0.0, %v5619_v11  ;;  %v68_v55 = vld [vmem:[#allocation5 + $0x280] sm:$0xff] }
 0x237   :  { %v5621_v31 = vpop.eup %5620  ;;  %7457 = vst [vmem:[#allocation79_spill] sm:$0xff] %v6271_v16  ;;  %v72_v36 = vld [vmem:[#allocation5 + $0x2a0] sm:$0xff] }
 0x238   :  { %v6266_v0 = vadd.f32 %v640_v63, %v639_v3  ;;  %v64_v63 = vld [vmem:[#allocation5 + $0x260] sm:$0xff]  ;;  %v6277_v3 = vpack.c.bf16 %v67_v46, %v63_v20  ;;  %v6291_v20 = vpack.c.bf16 %v75_v54, %v71_v58  ;;  %v70_v46 = vld [vmem:[#allocation5 + $0x290] sm:$0xff] }
 0x239   :  { %v76_v54 = vld [vmem:[#allocation5 + $0x2c0] sm:$0xff] }
 0x23a   :  { %7455 = vst [vmem:[#allocation77_spill] sm:$0xff] %v6266_v0  ;;  %5622 = vtanh.f32 %v6266_v0  ;;  %7459 = vst [vmem:[#allocation81_spill] sm:$0xff] %v6277_v3  ;;  %v62_v0 = vld [vmem:[#allocation5 + $0x250] sm:$0xff]  ;;  %v80_v58 = vld [vmem:[#allocation5 + $0x2e0] sm:$0xff] }
 0x23b   :  { %v6284_v48 = vpack.c.bf16 %v66_v30, %v62_v0  ;;  %7463 = vst [vmem:[#allocation85_spill] sm:$0xff] %v6291_v20  ;;  %v83_v30 = vld [vmem:[#allocation5 + $0x2f8] sm:$0xff]  ;;  %v7464_v0 = vmov 0.0  }
 0x23d   :  { %7461 = vst [vmem:[#allocation83_spill] sm:$0xff] %v6284_v48 }
 0x244   :  { %v5623_v17 = vpop.eup %5622 }
 0x245   :  { %v643_v11 = vmul.f32 %v5623_v17, %v5621_v31  ;;  %v6282_v17 = vpack.c.bf16 %v64_v63, %v60_v35  ;;  %v74_v31 = vld [vmem:[#allocation5 + $0x2b0] sm:$0xff]  ;;  %v81_v35 = vld [vmem:[#allocation5 + $0x2e8] sm:$0xff]  ;;  %v79_v63 = vld [vmem:[#allocation5 + $0x2d8] sm:$0xff] }
 0x246   :  { %v6299_v7 = vpack.c.bf16 %v74_v31, %v70_v46  ;;  %v84_v46 = vld [vmem:[#allocation5 + $0x300] sm:$0xff] }
 0x247   :  { %716 = vmatmul.mubr.f32.vlgmr.msra.gmra.mrb[4].mxu0 %v643_v11  ;;  %787 = vmatmul.mubr.f32.vlgmr.msra.gmra.mrb[4].mxu1 %v643_v11  ;;  %v644_v57 = vmul.f32 %v643_v11, %v6273_v21  ;;  %7460 = vst [vmem:[#allocation82_spill] sm:$0xff] %v6282_v17  ;;  %v77_v11 = vld [vmem:[#allocation5 + $0x2c8] sm:$0xff]  ;;  %v88_v31 = vld [vmem:[#allocation5 + $0x320] sm:$0xff] }
 0x248   :  { %4280 = vmatpush1.bf16.msra.mxu0 %v6269_v5  ;;  %4312 = vmatpush1.bf16.msra.mxu1 %v6271_v16  ;;  %7466 = vst [vmem:[#allocation87_spill] sm:$0xff] %v6299_v7  ;;  %v6303_v22 = vpack.c.bf16 %v81_v35, %v77_v11  ;;  %v85_v16 = vld [vmem:[#allocation5 + $0x308] sm:$0xff]  ;;  %v87_v5 = vld [vmem:[#allocation5 + $0x318] sm:$0xff] }
 0x249   :  { %v646_v12 = vsel %vm645_vm1, %v644_v57, 0.0  ;;  %4282 = vmatprep.subr.bf16.mxu0 %v6275_v10  ;;  %4314 = vmatprep.subr.bf16.mxu1 %v6277_v3  ;;  %v6297_v57 = vpack.c.bf16 %v72_v36, %v68_v55  ;;  %v78_v3 = vld [vmem:[#allocation5 + $0x2d0] sm:$0xff]  ;;  %v6309_v55 = vpack.c.bf16 %v80_v58, %v76_v54  ;;  %v92_v54 = vld [vmem:[#allocation5 + $0x340] sm:$0xff] }
 0x24a   :  { %647 = vadd.xlane.f32.xlu0 %v646_v12  ;;  %857 = vmatprep.mubr.f32.mxu0 %v7464_v0  ;;  %7467 = vst [vmem:[#allocation88_spill] sm:$0xff] %v6303_v22  ;;  %v6305_v12 = vpack.c.bf16 %v83_v30, %v79_v63  ;;  %v82_v10 = vld [vmem:[#allocation5 + $0x2f0] sm:$0xff]  ;;  %v96_v58 = vld [vmem:[#allocation5 + $0x360] sm:$0xff] }
 0x24b   :  { %928 = vmatprep.mubr.f32.mxu1 %v7464_v0  ;;  %7465 = vst [vmem:[#allocation86_spill] sm:$0xff] %v6297_v57  ;;  %7469 = vst [vmem:[#allocation90_spill] sm:$0xff] %v6309_v55  ;;  %v6311_v36 = vpack.c.bf16 %v82_v10, %v78_v3  ;;  %v86_v63 = vld [vmem:[#allocation5 + $0x310] sm:$0xff]  ;;  %v6321_v10 = vpack.c.bf16 %v88_v31, %v84_v46  ;;  %v6333_v46 = vpack.c.bf16 %v96_v58, %v92_v54 }
 0x24c   :  { %4284 = vmatpush1.bf16.msra.mxu0 %v6282_v17  ;;  %4316 = vmatpush1.bf16.msra.mxu1 %v6284_v48  ;;  %7468 = vst [vmem:[#allocation89_spill] sm:$0xff] %v6305_v12  ;;  %v89_v17 = vld [vmem:[#allocation5 + $0x328] sm:$0xff]  ;;  %v91_v48 = vld [vmem:[#allocation5 + $0x338] sm:$0xff]  ;;  %v90_v30 = vld [vmem:[#allocation5 + $0x330] sm:$0xff] }
 0x24d   :  { %4286 = vmatprep.subr.bf16.mxu0 %v6289_v39  ;;  %4318 = vmatprep.subr.bf16.mxu1 %v6291_v20  ;;  %7470 = vst [vmem:[#allocation91_spill] sm:$0xff] %v6311_v36  ;;  %v6315_v11 = vpack.c.bf16 %v89_v17, %v85_v16  ;;  %v6317_v35 = vpack.c.bf16 %v91_v48, %v87_v5  ;;  %v93_v20 = vld [vmem:[#allocation5 + $0x348] sm:$0xff]  ;;  %v95_v39 = vld [vmem:[#allocation5 + $0x358] sm:$0xff]  ;;  %7473 = vst [vmem:[#allocation94_spill] sm:$0xff] %v6321_v10 }
 0x24e   :  { %v6323_v3 = vpack.c.bf16 %v90_v30, %v86_v63  ;;  %v94_v17 = vld [vmem:[#allocation5 + $0x350] sm:$0xff]  ;;  %v100_v63 = vld [vmem:[#allocation5 + $0x380] sm:$0xff] }
 0x24f   :  { %7471 = vst [vmem:[#allocation92_spill] sm:$0xff] %v6315_v11  ;;  %7472 = vst [vmem:[#allocation93_spill] sm:$0xff] %v6317_v35  ;;  %v98_v48 = vld [vmem:[#allocation5 + $0x370] sm:$0xff]  ;;  %v104_v30 = vld [vmem:[#allocation5 + $0x3a0] sm:$0xff] }
 0x250   :  { %4288 = vmatpush1.bf16.msra.mxu0 %v6297_v57  ;;  %4320 = vmatpush1.bf16.msra.mxu1 %v6299_v7  ;;  %v97_v57 = vld [vmem:[#allocation5 + $0x368] sm:$0xff]  ;;  %v99_v7 = vld [vmem:[#allocation5 + $0x378] sm:$0xff]  ;;  %7474 = vst [vmem:[#allocation95_spill] sm:$0xff] %v6323_v3  ;;  %v6335_v31 = vpack.c.bf16 %v98_v48, %v94_v17  ;;  %v6345_v54 = vpack.c.bf16 %v104_v30, %v100_v63  ;;  %v108_v17 = vld [vmem:[#allocation5 + $0x3c0] sm:$0xff] }
 0x251   :  { %4290 = vmatprep.subr.bf16.mxu0 %v6303_v22  ;;  %4322 = vmatprep.subr.bf16.mxu1 %v6305_v12  ;;  %v6327_v5 = vpack.c.bf16 %v97_v57, %v93_v20  ;;  %v6329_v16 = vpack.c.bf16 %v99_v7, %v95_v39  ;;  %v101_v12 = vld [vmem:[#allocation5 + $0x388] sm:$0xff]  ;;  %v103_v22 = vld [vmem:[#allocation5 + $0x398] sm:$0xff]  ;;  %v102_v57 = vld [vmem:[#allocation5 + $0x390] sm:$0xff] }
 0x252   :  { %v106_v7 = vld [vmem:[#allocation5 + $0x3b0] sm:$0xff] }
 0x253   :  { %v6347_v58 = vpack.c.bf16 %v106_v7, %v102_v57  ;;  %v114_v48 = vld [vmem:[#allocation5 + $0x3f0] sm:$0xff] }
 0x254   :  { %4292 = vmatpush1.bf16.msra.mxu0 %v6309_v55  ;;  %4324 = vmatpush1.bf16.msra.mxu1 %v6311_v36  ;;  %v105_v55 = vld [vmem:[#allocation5 + $0x3a8] sm:$0xff]  ;;  %v107_v36 = vld [vmem:[#allocation5 + $0x3b8] sm:$0xff] }
 0x255   :  { %4294 = vmatprep.subr.bf16.mxu0 %v6315_v11  ;;  %4326 = vmatprep.subr.bf16.mxu1 %v6317_v35  ;;  %v6339_v39 = vpack.c.bf16 %v105_v55, %v101_v12  ;;  %v6341_v20 = vpack.c.bf16 %v107_v36, %v103_v22  ;;  %v109_v35 = vld [vmem:[#allocation5 + $0x3c8] sm:$0xff]  ;;  %v111_v11 = vld [vmem:[#allocation5 + $0x3d8] sm:$0xff]  ;;  %v112_v55 = vld [vmem:[#allocation5 + $0x3e0] sm:$0xff] }
 0x256   :  { %v110_v36 = vld [vmem:[#allocation5 + $0x3d0] sm:$0xff]  ;;  %v6357_v63 = vpack.c.bf16 %v112_v55, %v108_v17 }
 0x257   :  { %v6359_v30 = vpack.c.bf16 %v114_v48, %v110_v36 }
 0x258   :  { %4296 = vmatpush1.bf16.msra.mxu0 %v6321_v10  ;;  %4328 = vmatpush1.bf16.msra.mxu1 %v6323_v3  ;;  %v113_v10 = vld [vmem:[#allocation5 + $0x3e8] sm:$0xff]  ;;  %v115_v3 = vld [vmem:[#allocation5 + $0x3f8] sm:$0xff] }
 0x259   :  { %4298 = vmatprep.subr.bf16.mxu0 %v6327_v5  ;;  %4330 = vmatprep.subr.bf16.mxu1 %v6329_v16  ;;  %v6351_v22 = vpack.c.bf16 %v113_v10, %v109_v35  ;;  %v6353_v12 = vpack.c.bf16 %v115_v3, %v111_v11 }
 0x25c   :  { %4300 = vmatpush1.bf16.msra.mxu0 %v6333_v46  ;;  %4332 = vmatpush1.bf16.msra.mxu1 %v6335_v31 }
 0x25d   :  { %4302 = vmatprep.subr.bf16.mxu0 %v6339_v39  ;;  %4334 = vmatprep.subr.bf16.mxu1 %v6341_v20 }
 0x260   :  { %4304 = vmatpush1.bf16.msra.mxu0 %v6345_v54  ;;  %4336 = vmatpush1.bf16.msra.mxu1 %v6347_v58 }
 0x261   :  { %4306 = vmatprep.subr.bf16.mxu0 %v6351_v22  ;;  %4338 = vmatprep.subr.bf16.mxu1 %v6353_v12 }
 0x264   :  { %4308 = vmatpush1.bf16.msra.mxu0 %v6357_v63  ;;  %4340 = vmatpush1.bf16.msra.mxu1 %v6359_v30 }
 0x265   :  { %4342 = vmatprep.subr.bf16.mxu0 %v6013_v29  ;;  %4374 = vmatprep.subr.bf16.mxu1 %v6015_v33 }
 0x267   :  { %858 = vmatmul.mubr.f32.vlgmr.msra.gmra.mrb[6].mxu0 %v6138_v24  ;;  %929 = vmatmul.mubr.f32.vlgmr.msra.gmra.mrb[6].mxu1 %v6138_v24  ;;  %v6403_v24 = vld [vmem:[#allocation7 + $0x3] ss:$0 sm:$0xff] }
 0x268   :  { %4344 = vmatpush1.bf16.msra.mxu0 %v6017_v34  ;;  %4376 = vmatpush1.bf16.msra.mxu1 %v6020_v38  ;;  %7475 = vst [vmem:[#allocation96_spill] sm:$0xff] %v6403_v24 }
 0x269   :  { %4346 = vmatprep.subr.bf16.mxu0 %v6024_v42  ;;  %4378 = vmatprep.subr.bf16.mxu1 %v6026_v43 }
 0x26a   :  { %1027 = vmatprep.mubr.f32.mxu0 %v7464_v0  ;;  %1098 = vmatprep.mubr.f32.mxu1 %v7464_v0 }
 0x26c   :  { %4348 = vmatpush1.bf16.msra.mxu0 %v6029_v47  ;;  %4380 = vmatpush1.bf16.msra.mxu1 %v6033_v51 }
 0x26d   :  { %4350 = vmatprep.subr.bf16.mxu0 %v6035_v52  ;;  %4382 = vmatprep.subr.bf16.mxu1 %v6037_v56 }
 0x270   :  { %4352 = vmatpush1.bf16.msra.mxu0 %v6040_v60  ;;  %4384 = vmatpush1.bf16.msra.mxu1 %v6044_v1 }
 0x271   :  { %4354 = vmatprep.subr.bf16.mxu0 %v6046_v2  ;;  %4386 = vmatprep.subr.bf16.mxu1 %v6049_v6 }
 0x274   :  { %4356 = vmatpush1.bf16.msra.mxu0 %v6052_v13  ;;  %4388 = vmatpush1.bf16.msra.mxu1 %v6056_v14 }
 0x275   :  { %4358 = vmatprep.subr.bf16.mxu0 %v6058_v15  ;;  %4390 = vmatprep.subr.bf16.mxu1 %v6061_v19 }
 0x278   :  { %4360 = vmatpush1.bf16.msra.mxu0 %v6064_v25  ;;  %4392 = vmatpush1.bf16.msra.mxu1 %v6068_v26 }
 0x279   :  { %4362 = vmatprep.subr.bf16.mxu0 %v6070_v27  ;;  %4394 = vmatprep.subr.bf16.mxu1 %v6073_v32 }
 0x27c   :  { %4364 = vmatpush1.bf16.msra.mxu0 %v6076_v41  ;;  %4396 = vmatpush1.bf16.msra.mxu1 %v6080_v44 }
 0x27d   :  { %4366 = vmatprep.subr.bf16.mxu0 %v6082_v45  ;;  %4398 = vmatprep.subr.bf16.mxu1 %v6085_v50 }
 0x280   :  { %4368 = vmatpush1.bf16.msra.mxu0 %v6088_v59  ;;  %4400 = vmatpush1.bf16.msra.mxu1 %v6092_v61 }
 0x281   :  { %4370 = vmatprep.subr.bf16.mxu0 %v6094_v62  ;;  %4402 = vmatprep.subr.bf16.mxu1 %v6097_v4 }
 0x284   :  { %4372 = vmatpush1.bf16.msra.mxu0 %v6100_v8  ;;  %4404 = vmatpush1.bf16.msra.mxu1 %v6104_v9 }
 0x285   :  { %4406 = vmatprep.subr.bf16.mxu0 %v6144_v37  ;;  %4438 = vmatprep.subr.bf16.mxu1 %v6146_v53 }
 0x2d7   :  { %v648_v11 = vpop.xlane.xlu0 %647 }
 0x2d8   :  { %v649_v35 = vadd.f32 %v648_v11, %v6403_v24 }
 0x2da   :  { %650 = vst [vmem:[#allocation8] sm:$0x1] %v649_v35 }
 0x33a   :  { %v859_v10 = vpop.f32.mrb[6].mxu0  ;;  %v930_v3 = vpop.f32.mrb[6].mxu1 }
 0x33b   :  { %v935_v57 = vadd.f32 %v859_v10, %v6118_v23  ;;  %v861_v7 = vpop.f32.mrb[7].mxu0  ;;  %v932_v17 = vpop.f32.mrb[7].mxu1  ;;  %v937_v53 = vadd.f32 %v930_v3, %v6127_v40 }
 0x33c   :  { %v936_v55 = vadd.f32 %v861_v7, %v6120_v28  ;;  %v938_v37 = vadd.f32 %v932_v17, %v6132_v49  ;;  %v7481_v17 = vld [vmem:[#allocation45_spill] sm:$0xff] }
 0x33d   :  { %v4091_v36 = vmul.f32 -1.442695, %v935_v57  ;;  %v4093_v9 = vmul.f32 -1.442695, %v937_v53 }
 0x33e   :  { %v4092_v48 = vmul.f32 -1.442695, %v936_v55 }
 0x33f   :  { %5624 = vpow2.f32 %v4091_v36 }
 0x340   :  { %5626 = vpow2.f32 %v4092_v48 }
 0x341   :  { %5628 = vtanh.f32 %v938_v37 }
 0x342   :  { %5630 = vpow2.f32 %v4093_v9  ;;  %v7477_v9 = vld [vmem:[#allocation41_spill] sm:$0xff] }
 0x349   :  { %v5625_v8 = vpop.eup %5624 }
 0x34a   :  { %v948_v11 = vadd.f32 1.0, %v5625_v8  ;;  %v5627_v35 = vpop.eup %5626 }
 0x34b   :  { %v949_v10 = vadd.f32 1.0, %v5627_v35  ;;  %v5629_v23 = vpop.eup %5628  ;;  %v7483_v35 = vld [vmem:[#allocation47_spill] sm:$0xff] }
 0x34c   :  { %5632 = vrcp.f32 %v948_v11  ;;  %v5631_v24 = vpop.eup %5630  ;;  %v7482_v11 = vld [vmem:[#allocation46_spill] sm:$0xff] }
 0x34d   :  { %5634 = vrcp.f32 %v949_v10  ;;  %v950_v36 = vadd.f32 1.0, %v5631_v24  ;;  %v7479_v24 = vld [vmem:[#allocation43_spill] sm:$0xff]  ;;  %v7484_v10 = vld [vmem:[#allocation48_spill] sm:$0xff] }
 0x34f   :  { %5636 = vrcp.f32 %v950_v36  ;;  %v7488_v36 = vld [vmem:[#allocation52_spill] sm:$0xff] }
 0x356   :  { %v5633_v7 = vpop.eup %5632 }
 0x357   :  { %v959_v57 = vmul.f32 %v5633_v7, %v5629_v23  ;;  %v5635_v55 = vpop.eup %5634  ;;  %v7478_v23 = vld [vmem:[#allocation42_spill] sm:$0xff]  ;;  %v7485_v7 = vld [vmem:[#allocation49_spill] sm:$0xff] }
 0x358   :  { %v958_v48 = vmul.f32 %v5635_v55, %v6135_v18  ;;  %v7480_v18 = vld [vmem:[#allocation44_spill] sm:$0xff]  ;;  %v7487_v55 = vld [vmem:[#allocation51_spill] sm:$0xff] }
 0x359   :  { %v5637_v8 = vpop.eup %5636 }
 0x35a   :  { %v6411_v3 = vadd.f32 %v959_v57, %v958_v48  ;;  %v7486_v57 = vld [vmem:[#allocation50_spill] sm:$0xff]  ;;  %v7489_v48 = vld [vmem:[#allocation53_spill] sm:$0xff] }
 0x35c   :  { %7476 = vst [vmem:[#allocation97_spill] sm:$0xff] %v6411_v3  ;;  %5638 = vtanh.f32 %v6411_v3  ;;  %v7512_v3 = vld [vmem:[#allocation76_spill] sm:$0xff] }
 0x366   :  { %v5639_v37 = vpop.eup %5638 }
 0x367   :  { %v6414_v53 = vmul.f32 %v5639_v37, %v5637_v8  ;;  %v7490_v8 = vld [vmem:[#allocation54_spill] sm:$0xff]  ;;  %v7491_v37 = vld [vmem:[#allocation55_spill] sm:$0xff] }
 0x369   :  { %1028 = vmatmul.mubr.f32.vlgmr.msra.gmra.mrb[4].mxu0 %v6414_v53  ;;  %1099 = vmatmul.mubr.f32.vlgmr.msra.gmra.mrb[4].mxu1 %v6414_v53 }
 0x36a   :  { %4408 = vmatpush1.bf16.msra.mxu0 %v7477_v9  ;;  %4440 = vmatpush1.bf16.msra.mxu1 %v7478_v23  ;;  %v7510_v23 = vld [vmem:[#allocation74_spill] sm:$0xff] }
 0x36b   :  { %4410 = vmatprep.subr.bf16.mxu0 %v7479_v24  ;;  %4442 = vmatprep.subr.bf16.mxu1 %v7480_v18  ;;  %v7509_v18 = vld [vmem:[#allocation73_spill] sm:$0xff] }
 0x36c   :  { %1203 = vmatprep.mubr.f32.mxu0 %v7464_v0  ;;  %1274 = vmatprep.mubr.f32.mxu1 %v7464_v0 }
 0x36e   :  { %4412 = vmatpush1.bf16.msra.mxu0 %v7481_v17  ;;  %4444 = vmatpush1.bf16.msra.mxu1 %v7482_v11  ;;  %v7492_v17 = vld [vmem:[#allocation56_spill] sm:$0xff]  ;;  %v7493_v11 = vld [vmem:[#allocation57_spill] sm:$0xff] }
 0x36f   :  { %4414 = vmatprep.subr.bf16.mxu0 %v7483_v35  ;;  %4446 = vmatprep.subr.bf16.mxu1 %v7484_v10  ;;  %v7494_v35 = vld [vmem:[#allocation58_spill] sm:$0xff]  ;;  %v7495_v10 = vld [vmem:[#allocation59_spill] sm:$0xff] }
 0x372   :  { %4416 = vmatpush1.bf16.msra.mxu0 %v7485_v7  ;;  %4448 = vmatpush1.bf16.msra.mxu1 %v7486_v57  ;;  %v7496_v7 = vld [vmem:[#allocation60_spill] sm:$0xff]  ;;  %v7497_v57 = vld [vmem:[#allocation61_spill] sm:$0xff] }
 0x373   :  { %4418 = vmatprep.subr.bf16.mxu0 %v7487_v55  ;;  %4450 = vmatprep.subr.bf16.mxu1 %v7488_v36  ;;  %v7498_v55 = vld [vmem:[#allocation62_spill] sm:$0xff]  ;;  %v7499_v36 = vld [vmem:[#allocation63_spill] sm:$0xff] }
 0x376   :  { %4420 = vmatpush1.bf16.msra.mxu0 %v7489_v48  ;;  %4452 = vmatpush1.bf16.msra.mxu1 %v7490_v8  ;;  %v7500_v48 = vld [vmem:[#allocation64_spill] sm:$0xff]  ;;  %v7501_v8 = vld [vmem:[#allocation65_spill] sm:$0xff] }
 0x377   :  { %4422 = vmatprep.subr.bf16.mxu0 %v7491_v37  ;;  %4454 = vmatprep.subr.bf16.mxu1 %v7492_v17  ;;  %v7502_v37 = vld [vmem:[#allocation66_spill] sm:$0xff]  ;;  %v7503_v17 = vld [vmem:[#allocation67_spill] sm:$0xff] }
 0x37a   :  { %4424 = vmatpush1.bf16.msra.mxu0 %v7493_v11  ;;  %4456 = vmatpush1.bf16.msra.mxu1 %v7494_v35  ;;  %v7504_v11 = vld [vmem:[#allocation68_spill] sm:$0xff]  ;;  %v7505_v35 = vld [vmem:[#allocation69_spill] sm:$0xff] }
 0x37b   :  { %4426 = vmatprep.subr.bf16.mxu0 %v7495_v10  ;;  %4458 = vmatprep.subr.bf16.mxu1 %v7496_v7  ;;  %v7506_v10 = vld [vmem:[#allocation70_spill] sm:$0xff]  ;;  %v7507_v7 = vld [vmem:[#allocation71_spill] sm:$0xff] }
 0x37e   :  { %4428 = vmatpush1.bf16.msra.mxu0 %v7497_v57  ;;  %4460 = vmatpush1.bf16.msra.mxu1 %v7498_v55  ;;  %v7508_v57 = vld [vmem:[#allocation72_spill] sm:$0xff] }
 0x37f   :  { %4430 = vmatprep.subr.bf16.mxu0 %v7499_v36  ;;  %4462 = vmatprep.subr.bf16.mxu1 %v7500_v48 }
 0x382   :  { %4432 = vmatpush1.bf16.msra.mxu0 %v7501_v8  ;;  %4464 = vmatpush1.bf16.msra.mxu1 %v7502_v37 }
 0x383   :  { %4434 = vmatprep.subr.bf16.mxu0 %v7503_v17  ;;  %4466 = vmatprep.subr.bf16.mxu1 %v7504_v11  ;;  %v7511_v11 = vld [vmem:[#allocation75_spill] sm:$0xff] }
 0x386   :  { %4436 = vmatpush1.bf16.msra.mxu0 %v7505_v35  ;;  %4468 = vmatpush1.bf16.msra.mxu1 %v7506_v10 }
 0x387   :  { %4470 = vmatprep.subr.bf16.mxu0 %v7507_v7  ;;  %4502 = vmatprep.subr.bf16.mxu1 %v7508_v57 }
 0x43c   :  { %v1029_v55 = vpop.f32.mrb[4].mxu0  ;;  %v1100_v36 = vpop.f32.mrb[4].mxu1 }
 0x43d   :  { %v1105_v48 = vadd.f32 %v1029_v55, %v7509_v18  ;;  %v1031_v24 = vpop.f32.mrb[5].mxu0  ;;  %v1102_v8 = vpop.f32.mrb[5].mxu1  ;;  %v1107_v35 = vadd.f32 %v1100_v36, %v7511_v11 }
 0x43e   :  { %v1106_v37 = vadd.f32 %v1031_v24, %v7510_v23  ;;  %v1108_v10 = vadd.f32 %v1102_v8, %v7512_v3  ;;  %v7518_v8 = vld [vmem:[#allocation82_spill] sm:$0xff] }
 0x43f   :  { %v4094_v9 = vmul.f32 -1.442695, %v1105_v48  ;;  %v4096_v49 = vmul.f32 -1.442695, %v1107_v35 }
 0x440   :  { %v4095_v17 = vmul.f32 -1.442695, %v1106_v37 }
 0x441   :  { %5640 = vpow2.f32 %v4094_v9 }
 0x442   :  { %5642 = vpow2.f32 %v4095_v17  ;;  %v7513_v17 = vld [vmem:[#allocation77_spill] sm:$0xff] }
 0x443   :  { %5644 = vtanh.f32 %v1108_v10 }
 0x444   :  { %5646 = vpow2.f32 %v4096_v49  ;;  %v7514_v49 = vld [vmem:[#allocation78_spill] sm:$0xff] }
 0x44b   :  { %v5641_v7 = vpop.eup %5640 }
 0x44c   :  { %v1118_v40 = vadd.f32 1.0, %v5641_v7  ;;  %v5643_v57 = vpop.eup %5642 }
 0x44d   :  { %v1119_v55 = vadd.f32 1.0, %v5643_v57  ;;  %v5645_v18 = vpop.eup %5644  ;;  %v7515_v57 = vld [vmem:[#allocation79_spill] sm:$0xff] }
 0x44e   :  { %5648 = vrcp.f32 %v1118_v40  ;;  %v5647_v28 = vpop.eup %5646 }
 0x44f   :  { %5650 = vrcp.f32 %v1119_v55  ;;  %v1120_v9 = vadd.f32 1.0, %v5647_v28  ;;  %v7517_v28 = vld [vmem:[#allocation81_spill] sm:$0xff]  ;;  %v7519_v55 = vld [vmem:[#allocation83_spill] sm:$0xff] }
 0x451   :  { %5652 = vrcp.f32 %v1120_v9  ;;  %v7523_v9 = vld [vmem:[#allocation87_spill] sm:$0xff] }
 0x458   :  { %v5649_v24 = vpop.eup %5648 }
 0x459   :  { %v1129_v48 = vmul.f32 %v5649_v24, %v5645_v18  ;;  %v5651_v37 = vpop.eup %5650  ;;  %v7516_v18 = vld [vmem:[#allocation80_spill] sm:$0xff] }
 0x45a   :  { %v1128_v23 = vmul.f32 %v5651_v37, %v7513_v17  ;;  %v7520_v24 = vld [vmem:[#allocation84_spill] sm:$0xff]  ;;  %v7522_v37 = vld [vmem:[#allocation86_spill] sm:$0xff] }
 0x45b   :  { %v5653_v35 = vpop.eup %5652  ;;  %v7524_v17 = vld [vmem:[#allocation88_spill] sm:$0xff] }
 0x45c   :  { %v6457_v36 = vadd.f32 %v1129_v48, %v1128_v23  ;;  %v7521_v48 = vld [vmem:[#allocation85_spill] sm:$0xff] }
 0x45e   :  { %5654 = vtanh.f32 %v6457_v36 }
 0x468   :  { %v5655_v10 = vpop.eup %5654 }
 0x469   :  { %v1132_v7 = vmul.f32 %v5655_v10, %v5653_v35  ;;  %v7525_v35 = vld [vmem:[#allocation89_spill] sm:$0xff]  ;;  %v7526_v10 = vld [vmem:[#allocation90_spill] sm:$0xff] }
 0x46b   :  { %1204 = vmatmul.mubr.f32.vlgmr.msra.gmra.mrb[8].mxu0 %v1132_v7  ;;  %1275 = vmatmul.mubr.f32.vlgmr.msra.gmra.mrb[8].mxu1 %v1132_v7  ;;  %v1133_v40 = vmul.f32 %v1132_v7, %v6273_v21  ;;  %v7527_v7 = vld [vmem:[#allocation91_spill] sm:$0xff] }
 0x46c   :  { %4472 = vmatpush1.bf16.msra.mxu0 %v7514_v49  ;;  %4504 = vmatpush1.bf16.msra.mxu1 %v7515_v57 }
 0x46d   :  { %4474 = vmatprep.subr.bf16.mxu0 %v7516_v18  ;;  %4506 = vmatprep.subr.bf16.mxu1 %v7517_v28  ;;  %v1134_v23 = vsel %vm645_vm1, %v1133_v40, 0.0  ;;  %v7528_v40 = vld [vmem:[#allocation92_spill] sm:$0xff] }
 0x46e   :  { %1135 = vadd.xlane.f32.xlu0 %v1134_v23  ;;  %1345 = vmatprep.mubr.f32.mxu0 %v7464_v0  ;;  %v7529_v23 = vld [vmem:[#allocation93_spill] sm:$0xff] }
 0x46f   :  { %1416 = vmatprep.mubr.f32.mxu1 %v7464_v0 }
 0x470   :  { %4476 = vmatpush1.bf16.msra.mxu0 %v7518_v8  ;;  %4508 = vmatpush1.bf16.msra.mxu1 %v7519_v55  ;;  %v7530_v55 = vld [vmem:[#allocation94_spill] sm:$0xff] }
 0x471   :  { %4478 = vmatprep.subr.bf16.mxu0 %v7520_v24  ;;  %4510 = vmatprep.subr.bf16.mxu1 %v7521_v48  ;;  %v7531_v24 = vld [vmem:[#allocation95_spill] sm:$0xff] }
 0x474   :  { %4480 = vmatpush1.bf16.msra.mxu0 %v7522_v37  ;;  %4512 = vmatpush1.bf16.msra.mxu1 %v7523_v9 }
 0x475   :  { %4482 = vmatprep.subr.bf16.mxu0 %v7524_v17  ;;  %4514 = vmatprep.subr.bf16.mxu1 %v7525_v35 }
 0x478   :  { %4484 = vmatpush1.bf16.msra.mxu0 %v7526_v10  ;;  %4516 = vmatpush1.bf16.msra.mxu1 %v7527_v7 }
 0x479   :  { %4486 = vmatprep.subr.bf16.mxu0 %v7528_v40  ;;  %4518 = vmatprep.subr.bf16.mxu1 %v7529_v23 }
 0x47c   :  { %4488 = vmatpush1.bf16.msra.mxu0 %v7530_v55  ;;  %4520 = vmatpush1.bf16.msra.mxu1 %v7531_v24 }
 0x47d   :  { %4490 = vmatprep.subr.bf16.mxu0 %v6327_v5  ;;  %4522 = vmatprep.subr.bf16.mxu1 %v6329_v16 }
 0x480   :  { %4492 = vmatpush1.bf16.msra.mxu0 %v6333_v46  ;;  %4524 = vmatpush1.bf16.msra.mxu1 %v6335_v31 }
 0x481   :  { %4494 = vmatprep.subr.bf16.mxu0 %v6339_v39  ;;  %4526 = vmatprep.subr.bf16.mxu1 %v6341_v20 }
 0x484   :  { %4496 = vmatpush1.bf16.msra.mxu0 %v6345_v54  ;;  %4528 = vmatpush1.bf16.msra.mxu1 %v6347_v58 }
 0x485   :  { %4498 = vmatprep.subr.bf16.mxu0 %v6351_v22  ;;  %4530 = vmatprep.subr.bf16.mxu1 %v6353_v12 }
 0x488   :  { %4500 = vmatpush1.bf16.msra.mxu0 %v6357_v63  ;;  %4532 = vmatpush1.bf16.msra.mxu1 %v6359_v30 }
 0x489   :  { %4534 = vmatprep.subr.bf16.mxu0 %v6013_v29  ;;  %4566 = vmatprep.subr.bf16.mxu1 %v6015_v33 }
 0x48b   :  { %1346 = vmatmul.mubr.f32.vlgmr.msra.gmra.mrb[10].mxu0 %v6414_v53  ;;  %1417 = vmatmul.mubr.f32.vlgmr.msra.gmra.mrb[10].mxu1 %v6414_v53  ;;  %v7532_v53 = vld [vmem:[#allocation33_spill] sm:$0xff] }
 0x48c   :  { %4536 = vmatpush1.bf16.msra.mxu0 %v6017_v34  ;;  %4568 = vmatpush1.bf16.msra.mxu1 %v6020_v38 }
 0x48d   :  { %4538 = vmatprep.subr.bf16.mxu0 %v6024_v42  ;;  %4570 = vmatprep.subr.bf16.mxu1 %v6026_v43 }
 0x48e   :  { %1515 = vmatprep.mubr.f32.mxu0 %v7464_v0  ;;  %1586 = vmatprep.mubr.f32.mxu1 %v7464_v0 }
 0x490   :  { %4540 = vmatpush1.bf16.msra.mxu0 %v6029_v47  ;;  %4572 = vmatpush1.bf16.msra.mxu1 %v6033_v51 }
 0x491   :  { %4542 = vmatprep.subr.bf16.mxu0 %v6035_v52  ;;  %4574 = vmatprep.subr.bf16.mxu1 %v6037_v56 }
 0x494   :  { %4544 = vmatpush1.bf16.msra.mxu0 %v6040_v60  ;;  %4576 = vmatpush1.bf16.msra.mxu1 %v6044_v1 }
 0x495   :  { %4546 = vmatprep.subr.bf16.mxu0 %v6046_v2  ;;  %4578 = vmatprep.subr.bf16.mxu1 %v6049_v6 }
 0x498   :  { %4548 = vmatpush1.bf16.msra.mxu0 %v6052_v13  ;;  %4580 = vmatpush1.bf16.msra.mxu1 %v6056_v14  ;;  %v7540_v13 = vld [vmem:[#allocation38_spill] sm:$0xff] }
 0x499   :  { %4550 = vmatprep.subr.bf16.mxu0 %v6058_v15  ;;  %4582 = vmatprep.subr.bf16.mxu1 %v6061_v19  ;;  %v7538_v15 = vld [vmem:[#allocation36_spill] sm:$0xff] }
 0x49c   :  { %4552 = vmatpush1.bf16.msra.mxu0 %v6064_v25  ;;  %4584 = vmatpush1.bf16.msra.mxu1 %v6068_v26  ;;  %v7537_v25 = vld [vmem:[#allocation35_spill] sm:$0xff] }
 0x49d   :  { %4554 = vmatprep.subr.bf16.mxu0 %v6070_v27  ;;  %4586 = vmatprep.subr.bf16.mxu1 %v6073_v32  ;;  %v7533_v27 = vld [vmem:[#allocation34_spill] sm:$0xff]  ;;  %v7534_v32 = vld [vmem:[#allocation39_spill] sm:$0xff] }
 0x4a0   :  { %4556 = vmatpush1.bf16.msra.mxu0 %v6076_v41  ;;  %4588 = vmatpush1.bf16.msra.mxu1 %v6080_v44  ;;  %v7535_v41 = vld [vmem:[#allocation40_spill] sm:$0xff] }
 0x4a1   :  { %4558 = vmatprep.subr.bf16.mxu0 %v6082_v45  ;;  %4590 = vmatprep.subr.bf16.mxu1 %v6085_v50  ;;  %v7536_v45 = vld [vmem:[#allocation96_spill] sm:$0xff] }
 0x4a4   :  { %4560 = vmatpush1.bf16.msra.mxu0 %v6088_v59  ;;  %4592 = vmatpush1.bf16.msra.mxu1 %v6092_v61 }
 0x4a5   :  { %4562 = vmatprep.subr.bf16.mxu0 %v6094_v62  ;;  %4594 = vmatprep.subr.bf16.mxu1 %v6097_v4 }
 0x4a8   :  { %4564 = vmatpush1.bf16.msra.mxu0 %v7532_v53  ;;  %4596 = vmatpush1.bf16.msra.mxu1 %v7533_v27  ;;  %v7539_v27 = vld [vmem:[#allocation37_spill] sm:$0xff] }
 0x4a9   :  { %4598 = vmatprep.subr.bf16.mxu0 %v7534_v32  ;;  %4630 = vmatprep.subr.bf16.mxu1 %v7535_v41 }
 0x4fb   :  { %v1136_v44 = vpop.xlane.xlu0 %1135 }
 0x4fc   :  { %v1137_v26 = vadd.f32 %v1136_v44, %v7536_v45 }
 0x4fe   :  { %1138 = vst [vmem:[#allocation8 + $0x1] sm:$0x1] %v1137_v26 }
 0x55e   :  { %v1347_v50 = vpop.f32.mrb[10].mxu0  ;;  %v1418_v59 = vpop.f32.mrb[10].mxu1 }
 0x55f   :  { %v1423_v61 = vadd.f32 %v1347_v50, %v7537_v25  ;;  %v1349_v19 = vpop.f32.mrb[11].mxu0  ;;  %v1420_v62 = vpop.f32.mrb[11].mxu1  ;;  %v1425_v32 = vadd.f32 %v1418_v59, %v7539_v27 }
 0x560   :  { %v1424_v4 = vadd.f32 %v1349_v19, %v7538_v15  ;;  %v1426_v41 = vadd.f32 %v1420_v62, %v7540_v13  ;;  %v7546_v62 = vld [vmem:[#allocation44_spill] sm:$0xff] }
 0x561   :  { %v4097_v14 = vmul.f32 -1.442695, %v1423_v61  ;;  %v4099_v6 = vmul.f32 -1.442695, %v1425_v32 }
 0x562   :  { %v4098_v53 = vmul.f32 -1.442695, %v1424_v4 }
 0x563   :  { %5656 = vpow2.f32 %v4097_v14 }
 0x564   :  { %5658 = vpow2.f32 %v4098_v53  ;;  %v7541_v53 = vld [vmem:[#allocation97_spill] sm:$0xff] }
 0x565   :  { %5660 = vtanh.f32 %v1426_v41 }
 0x566   :  { %5662 = vpow2.f32 %v4099_v6  ;;  %v7543_v6 = vld [vmem:[#allocation41_spill] sm:$0xff] }
 0x56d   :  { %v5657_v2 = vpop.eup %5656 }
 0x56e   :  { %v1436_v44 = vadd.f32 1.0, %v5657_v2  ;;  %v5659_v26 = vpop.eup %5658 }
 0x56f   :  { %v1437_v50 = vadd.f32 1.0, %v5659_v26  ;;  %v5661_v25 = vpop.eup %5660  ;;  %v7549_v26 = vld [vmem:[#allocation47_spill] sm:$0xff] }
 0x570   :  { %5664 = vrcp.f32 %v1436_v44  ;;  %v5663_v45 = vpop.eup %5662  ;;  %v7548_v44 = vld [vmem:[#allocation46_spill] sm:$0xff] }
 0x571   :  { %5666 = vrcp.f32 %v1437_v50  ;;  %v1438_v14 = vadd.f32 1.0, %v5663_v45  ;;  %v7545_v45 = vld [vmem:[#allocation43_spill] sm:$0xff]  ;;  %v7550_v50 = vld [vmem:[#allocation48_spill] sm:$0xff] }
 0x573   :  { %5668 = vrcp.f32 %v1438_v14  ;;  %v7554_v14 = vld [vmem:[#allocation52_spill] sm:$0xff] }
 0x57a   :  { %v5665_v19 = vpop.eup %5664 }
 0x57b   :  { %v1447_v61 = vmul.f32 %v5665_v19, %v5661_v25  ;;  %v5667_v4 = vpop.eup %5666  ;;  %v7544_v25 = vld [vmem:[#allocation42_spill] sm:$0xff]  ;;  %v7551_v19 = vld [vmem:[#allocation49_spill] sm:$0xff] }
 0x57c   :  { %v1446_v15 = vmul.f32 %v5667_v4, %v7541_v53  ;;  %v7553_v4 = vld [vmem:[#allocation51_spill] sm:$0xff]  ;;  %v7555_v53 = vld [vmem:[#allocation53_spill] sm:$0xff] }
 0x57d   :  { %v5669_v2 = vpop.eup %5668 }
 0x57e   :  { %v6538_v59 = vadd.f32 %v1447_v61, %v1446_v15  ;;  %v7547_v15 = vld [vmem:[#allocation45_spill] sm:$0xff]  ;;  %v7552_v61 = vld [vmem:[#allocation50_spill] sm:$0xff] }
 0x580   :  { %7542 = vst [vmem:[#allocation75_spill] sm:$0xff] %v6538_v59  ;;  %5670 = vtanh.f32 %v6538_v59 }
 0x58a   :  { %v5671_v32 = vpop.eup %5670 }
 0x58b   :  { %v6541_v41 = vmul.f32 %v5671_v32, %v5669_v2  ;;  %v7556_v2 = vld [vmem:[#allocation54_spill] sm:$0xff]  ;;  %v7557_v32 = vld [vmem:[#allocation55_spill] sm:$0xff] }
 0x58d   :  { %1516 = vmatmul.mubr.f32.vlgmr.msra.gmra.mrb[8].mxu0 %v6541_v41  ;;  %1587 = vmatmul.mubr.f32.vlgmr.msra.gmra.mrb[8].mxu1 %v6541_v41 }
 0x58e   :  { %4600 = vmatpush1.bf16.msra.mxu0 %v7543_v6  ;;  %4632 = vmatpush1.bf16.msra.mxu1 %v7544_v25  ;;  %v7576_v25 = vld [vmem:[#allocation74_spill] sm:$0xff] }
 0x58f   :  { %4602 = vmatprep.subr.bf16.mxu0 %v7545_v45  ;;  %4634 = vmatprep.subr.bf16.mxu1 %v7546_v62  ;;  %v7575_v62 = vld [vmem:[#allocation73_spill] sm:$0xff] }
 0x590   :  { %1691 = vmatprep.mubr.f32.mxu0 %v7464_v0  ;;  %1762 = vmatprep.mubr.f32.mxu1 %v7464_v0 }
 0x592   :  { %4604 = vmatpush1.bf16.msra.mxu0 %v7547_v15  ;;  %4636 = vmatpush1.bf16.msra.mxu1 %v7548_v44  ;;  %v7558_v15 = vld [vmem:[#allocation56_spill] sm:$0xff]  ;;  %v7559_v44 = vld [vmem:[#allocation57_spill] sm:$0xff] }
 0x593   :  { %4606 = vmatprep.subr.bf16.mxu0 %v7549_v26  ;;  %4638 = vmatprep.subr.bf16.mxu1 %v7550_v50  ;;  %v7560_v26 = vld [vmem:[#allocation58_spill] sm:$0xff]  ;;  %v7561_v50 = vld [vmem:[#allocation59_spill] sm:$0xff] }
 0x596   :  { %4608 = vmatpush1.bf16.msra.mxu0 %v7551_v19  ;;  %4640 = vmatpush1.bf16.msra.mxu1 %v7552_v61  ;;  %v7562_v19 = vld [vmem:[#allocation60_spill] sm:$0xff]  ;;  %v7563_v61 = vld [vmem:[#allocation61_spill] sm:$0xff] }
 0x597   :  { %4610 = vmatprep.subr.bf16.mxu0 %v7553_v4  ;;  %4642 = vmatprep.subr.bf16.mxu1 %v7554_v14  ;;  %v7564_v4 = vld [vmem:[#allocation62_spill] sm:$0xff]  ;;  %v7565_v14 = vld [vmem:[#allocation63_spill] sm:$0xff] }
 0x59a   :  { %4612 = vmatpush1.bf16.msra.mxu0 %v7555_v53  ;;  %4644 = vmatpush1.bf16.msra.mxu1 %v7556_v2  ;;  %v7566_v53 = vld [vmem:[#allocation64_spill] sm:$0xff]  ;;  %v7567_v2 = vld [vmem:[#allocation65_spill] sm:$0xff] }
 0x59b   :  { %4614 = vmatprep.subr.bf16.mxu0 %v7557_v32  ;;  %4646 = vmatprep.subr.bf16.mxu1 %v7558_v15  ;;  %v7568_v32 = vld [vmem:[#allocation66_spill] sm:$0xff]  ;;  %v7569_v15 = vld [vmem:[#allocation67_spill] sm:$0xff] }
 0x59e   :  { %4616 = vmatpush1.bf16.msra.mxu0 %v7559_v44  ;;  %4648 = vmatpush1.bf16.msra.mxu1 %v7560_v26  ;;  %v7570_v44 = vld [vmem:[#allocation68_spill] sm:$0xff]  ;;  %v7571_v26 = vld [vmem:[#allocation69_spill] sm:$0xff] }
 0x59f   :  { %4618 = vmatprep.subr.bf16.mxu0 %v7561_v50  ;;  %4650 = vmatprep.subr.bf16.mxu1 %v7562_v19  ;;  %v7572_v50 = vld [vmem:[#allocation70_spill] sm:$0xff]  ;;  %v7573_v19 = vld [vmem:[#allocation71_spill] sm:$0xff] }
 0x5a2   :  { %4620 = vmatpush1.bf16.msra.mxu0 %v7563_v61  ;;  %4652 = vmatpush1.bf16.msra.mxu1 %v7564_v4  ;;  %v7574_v61 = vld [vmem:[#allocation72_spill] sm:$0xff] }
 0x5a3   :  { %4622 = vmatprep.subr.bf16.mxu0 %v7565_v14  ;;  %4654 = vmatprep.subr.bf16.mxu1 %v7566_v53 }
 0x5a6   :  { %4624 = vmatpush1.bf16.msra.mxu0 %v7567_v2  ;;  %4656 = vmatpush1.bf16.msra.mxu1 %v7568_v32 }
 0x5a7   :  { %4626 = vmatprep.subr.bf16.mxu0 %v7569_v15  ;;  %4658 = vmatprep.subr.bf16.mxu1 %v7570_v44 }
 0x5aa   :  { %4628 = vmatpush1.bf16.msra.mxu0 %v7571_v26  ;;  %4660 = vmatpush1.bf16.msra.mxu1 %v7572_v50 }
 0x5ab   :  { %4662 = vmatprep.subr.bf16.mxu0 %v7573_v19  ;;  %4694 = vmatprep.subr.bf16.mxu1 %v7574_v61 }
 0x660   :  { %v1517_v4 = vpop.f32.mrb[8].mxu0  ;;  %v1588_v14 = vpop.f32.mrb[8].mxu1 }
 0x661   :  { %v1593_v53 = vadd.f32 %v1517_v4, %v7575_v62  ;;  %v1519_v45 = vpop.f32.mrb[9].mxu0  ;;  %v1590_v2 = vpop.f32.mrb[9].mxu1  ;;  %v1595_v26 = vadd.f32 %v1588_v14, %v7511_v11 }
 0x662   :  { %v1594_v32 = vadd.f32 %v1519_v45, %v7576_v25  ;;  %v1596_v50 = vadd.f32 %v1590_v2, %v7512_v3  ;;  %v7583_v2 = vld [vmem:[#allocation19_spill] sm:$0xff] }
 0x663   :  { %v4100_v6 = vmul.f32 -1.442695, %v1593_v53  ;;  %v4102_v44 = vmul.f32 -1.442695, %v1595_v26 }
 0x664   :  { %v4101_v15 = vmul.f32 -1.442695, %v1594_v32 }
 0x665   :  { %5672 = vpow2.f32 %v4100_v6 }
 0x666   :  { %5674 = vpow2.f32 %v4101_v15 }
 0x667   :  { %5676 = vtanh.f32 %v1596_v50 }
 0x668   :  { %5678 = vpow2.f32 %v4102_v44  ;;  %v7581_v44 = vld [vmem:[#allocation17_spill] sm:$0xff] }
 0x66f   :  { %v5673_v19 = vpop.eup %5672 }
 0x670   :  { %v1606_v59 = vadd.f32 1.0, %v5673_v19  ;;  %v5675_v61 = vpop.eup %5674 }
 0x671   :  { %v1607_v4 = vadd.f32 1.0, %v5675_v61  ;;  %v5677_v62 = vpop.eup %5676  ;;  %v7582_v61 = vld [vmem:[#allocation18_spill] sm:$0xff] }
 0x672   :  { %5680 = vrcp.f32 %v1606_v59  ;;  %v5679_v13 = vpop.eup %5678 }
 0x673   :  { %5682 = vrcp.f32 %v1607_v4  ;;  %v1608_v6 = vadd.f32 1.0, %v5679_v13  ;;  %v7584_v4 = vld [vmem:[#allocation20_spill] sm:$0xff] }
 0x675   :  { %5684 = vrcp.f32 %v1608_v6  ;;  %v7588_v6 = vld [vmem:[#allocation24_spill] sm:$0xff] }
 0x67c   :  { %v5681_v45 = vpop.eup %5680 }
 0x67d   :  { %v1617_v53 = vmul.f32 %v5681_v45, %v5677_v62  ;;  %v5683_v32 = vpop.eup %5682  ;;  %v7580_v62 = vld [vmem:[#allocation16_spill] sm:$0xff]  ;;  %v7585_v45 = vld [vmem:[#allocation21_spill] sm:$0xff] }
 0x67e   :  { %v1616_v15 = vmul.f32 %v5683_v32, %v6457_v36  ;;  %v7577_v36 = vld [vmem:[#allocation83_spill] sm:$0xff] }
 0x67f   :  { %v5685_v26 = vpop.eup %5684  ;;  %v7587_v32 = vld [vmem:[#allocation23_spill] sm:$0xff] }
 0x680   :  { %v6584_v14 = vadd.f32 %v1617_v53, %v1616_v15  ;;  %v7586_v53 = vld [vmem:[#allocation22_spill] sm:$0xff]  ;;  %v7589_v15 = vld [vmem:[#allocation25_spill] sm:$0xff] }
 0x682   :  { %5686 = vtanh.f32 %v6584_v14 }
 0x68c   :  { %v5687_v50 = vpop.eup %5686 }
 0x68d   :  { %v1620_v19 = vmul.f32 %v5687_v50, %v5685_v26  ;;  %v7590_v26 = vld [vmem:[#allocation26_spill] sm:$0xff]  ;;  %v7591_v50 = vld [vmem:[#allocation27_spill] sm:$0xff] }
 0x68f   :  { %1692 = vmatmul.mubr.f32.vlgmr.msra.gmra.mrb[12].mxu0 %v1620_v19  ;;  %1763 = vmatmul.mubr.f32.vlgmr.msra.gmra.mrb[12].mxu1 %v1620_v19  ;;  %v1621_v59 = vmul.f32 %v1620_v19, %v6273_v21  ;;  %v7578_v21 = vld [vmem:[#allocation84_spill] sm:$0xff] }
 0x690   :  { %4664 = vmatpush1.bf16.msra.mxu0 %v7514_v49  ;;  %4696 = vmatpush1.bf16.msra.mxu1 %v7515_v57  ;;  %v7592_v19 = vld [vmem:[#allocation28_spill] sm:$0xff] }
 0x691   :  { %4666 = vmatprep.subr.bf16.mxu0 %v7516_v18  ;;  %4698 = vmatprep.subr.bf16.mxu1 %v7517_v28  ;;  %v1622_v13 = vsel %vm645_vm1, %v1621_v59, 0.0  ;;  %v7593_v59 = vld [vmem:[#allocation29_spill] sm:$0xff] }
 0x692   :  { %1623 = vadd.xlane.f32.xlu1 %v1622_v13  ;;  %1833 = vmatprep.mubr.f32.mxu0 %v7464_v0  ;;  %v7594_v13 = vld [vmem:[#allocation30_spill] sm:$0xff] }
 0x693   :  { %1904 = vmatprep.mubr.f32.mxu1 %v7464_v0 }
 0x694   :  { %4668 = vmatpush1.bf16.msra.mxu0 %v7518_v8  ;;  %4700 = vmatpush1.bf16.msra.mxu1 %v7577_v36 }
 0x695   :  { %4670 = vmatprep.subr.bf16.mxu0 %v7578_v21  ;;  %4702 = vmatprep.subr.bf16.mxu1 %v7521_v48 }
 0x698   :  { %4672 = vmatpush1.bf16.msra.mxu0 %v7522_v37  ;;  %4704 = vmatpush1.bf16.msra.mxu1 %v7523_v9 }
 0x699   :  { %4674 = vmatprep.subr.bf16.mxu0 %v7524_v17  ;;  %4706 = vmatprep.subr.bf16.mxu1 %v7525_v35 }
 0x69c   :  { %4676 = vmatpush1.bf16.msra.mxu0 %v7526_v10  ;;  %4708 = vmatpush1.bf16.msra.mxu1 %v7527_v7 }
 0x69d   :  { %4678 = vmatprep.subr.bf16.mxu0 %v7528_v40  ;;  %4710 = vmatprep.subr.bf16.mxu1 %v7529_v23 }
 0x6a0   :  { %4680 = vmatpush1.bf16.msra.mxu0 %v7530_v55  ;;  %4712 = vmatpush1.bf16.msra.mxu1 %v7531_v24 }
 0x6a1   :  { %4682 = vmatprep.subr.bf16.mxu0 %v6327_v5  ;;  %4714 = vmatprep.subr.bf16.mxu1 %v6329_v16 }
 0x6a4   :  { %4684 = vmatpush1.bf16.msra.mxu0 %v6333_v46  ;;  %4716 = vmatpush1.bf16.msra.mxu1 %v6335_v31 }
 0x6a5   :  { %4686 = vmatprep.subr.bf16.mxu0 %v6339_v39  ;;  %4718 = vmatprep.subr.bf16.mxu1 %v6341_v20 }
 0x6a8   :  { %4688 = vmatpush1.bf16.msra.mxu0 %v6345_v54  ;;  %4720 = vmatpush1.bf16.msra.mxu1 %v6347_v58 }
 0x6a9   :  { %4690 = vmatprep.subr.bf16.mxu0 %v6351_v22  ;;  %4722 = vmatprep.subr.bf16.mxu1 %v6353_v12 }
 0x6ac   :  { %4692 = vmatpush1.bf16.msra.mxu0 %v6357_v63  ;;  %4724 = vmatpush1.bf16.msra.mxu1 %v6359_v30 }
 0x6ad   :  { %4726 = vmatprep.subr.bf16.mxu0 %v6013_v29  ;;  %4758 = vmatprep.subr.bf16.mxu1 %v6015_v33 }
 0x6af   :  { %1834 = vmatmul.mubr.f32.vlgmr.msra.gmra.mrb[14].mxu0 %v6541_v41  ;;  %1905 = vmatmul.mubr.f32.vlgmr.msra.gmra.mrb[14].mxu1 %v6541_v41  ;;  %v7579_v41 = vld [vmem:[#allocation15_spill] sm:$0xff] }
 0x6b0   :  { %4728 = vmatpush1.bf16.msra.mxu0 %v6017_v34  ;;  %4760 = vmatpush1.bf16.msra.mxu1 %v6020_v38 }
 0x6b1   :  { %4730 = vmatprep.subr.bf16.mxu0 %v6024_v42  ;;  %4762 = vmatprep.subr.bf16.mxu1 %v6026_v43 }
 0x6b2   :  { %2003 = vmatprep.mubr.f32.mxu0 %v7464_v0  ;;  %2074 = vmatprep.mubr.f32.mxu1 %v7464_v0 }
 0x6b4   :  { %4732 = vmatpush1.bf16.msra.mxu0 %v6029_v47  ;;  %4764 = vmatpush1.bf16.msra.mxu1 %v6033_v51 }
 0x6b5   :  { %4734 = vmatprep.subr.bf16.mxu0 %v6035_v52  ;;  %4766 = vmatprep.subr.bf16.mxu1 %v6037_v56 }
 0x6b8   :  { %4736 = vmatpush1.bf16.msra.mxu0 %v6040_v60  ;;  %4768 = vmatpush1.bf16.msra.mxu1 %v6044_v1 }
 0x6b9   :  { %4738 = vmatprep.subr.bf16.mxu0 %v7579_v41  ;;  %4770 = vmatprep.subr.bf16.mxu1 %v7580_v62  ;;  %v7603_v62 = vld [vmem:[#allocation36_spill] sm:$0xff] }
 0x6bc   :  { %4740 = vmatpush1.bf16.msra.mxu0 %v7581_v44  ;;  %4772 = vmatpush1.bf16.msra.mxu1 %v7582_v61  ;;  %v7602_v61 = vld [vmem:[#allocation35_spill] sm:$0xff] }
 0x6bd   :  { %4742 = vmatprep.subr.bf16.mxu0 %v7583_v2  ;;  %4774 = vmatprep.subr.bf16.mxu1 %v7584_v4  ;;  %v7595_v4 = vld [vmem:[#allocation31_spill] sm:$0xff] }
 0x6c0   :  { %4744 = vmatpush1.bf16.msra.mxu0 %v7585_v45  ;;  %4776 = vmatpush1.bf16.msra.mxu1 %v7586_v53  ;;  %v7596_v45 = vld [vmem:[#allocation32_spill] sm:$0xff]  ;;  %v7597_v53 = vld [vmem:[#allocation33_spill] sm:$0xff] }
 0x6c1   :  { %4746 = vmatprep.subr.bf16.mxu0 %v7587_v32  ;;  %4778 = vmatprep.subr.bf16.mxu1 %v7588_v6  ;;  %v7598_v32 = vld [vmem:[#allocation34_spill] sm:$0xff]  ;;  %v7599_v6 = vld [vmem:[#allocation39_spill] sm:$0xff] }
 0x6c4   :  { %4748 = vmatpush1.bf16.msra.mxu0 %v7589_v15  ;;  %4780 = vmatpush1.bf16.msra.mxu1 %v7590_v26  ;;  %v7600_v15 = vld [vmem:[#allocation40_spill] sm:$0xff] }
 0x6c5   :  { %4750 = vmatprep.subr.bf16.mxu0 %v7591_v50  ;;  %4782 = vmatprep.subr.bf16.mxu1 %v7592_v19  ;;  %v7601_v50 = vld [vmem:[#allocation96_spill] sm:$0xff] }
 0x6c8   :  { %4752 = vmatpush1.bf16.msra.mxu0 %v7593_v59  ;;  %4784 = vmatpush1.bf16.msra.mxu1 %v7594_v13 }
 0x6c9   :  { %4754 = vmatprep.subr.bf16.mxu0 %v7595_v4  ;;  %4786 = vmatprep.subr.bf16.mxu1 %v7596_v45 }
 0x6cc   :  { %4756 = vmatpush1.bf16.msra.mxu0 %v7597_v53  ;;  %4788 = vmatpush1.bf16.msra.mxu1 %v7598_v32  ;;  %v7604_v32 = vld [vmem:[#allocation38_spill] sm:$0xff] }
 0x6cd   :  { %4790 = vmatprep.subr.bf16.mxu0 %v7599_v6  ;;  %4822 = vmatprep.subr.bf16.mxu1 %v7600_v15 }
 0x71f   :  { %v1624_v26 = vpop.xlane.xlu1 %1623 }
 0x720   :  { %v1625_v2 = vadd.f32 %v1624_v26, %v7601_v50 }
 0x722   :  { %1626 = vst [vmem:[#allocation8 + $0x2] sm:$0x1] %v1625_v2 }
 0x782   :  { %v1835_v19 = vpop.f32.mrb[14].mxu0  ;;  %v1906_v59 = vpop.f32.mrb[14].mxu1 }
 0x783   :  { %v1911_v13 = vadd.f32 %v1835_v19, %v7602_v61  ;;  %v1837_v44 = vpop.f32.mrb[15].mxu0  ;;  %v1908_v4 = vpop.f32.mrb[15].mxu1  ;;  %v1913_v6 = vadd.f32 %v1906_v59, %v7539_v27 }
 0x784   :  { %v1912_v45 = vadd.f32 %v1837_v44, %v7603_v62  ;;  %v1914_v15 = vadd.f32 %v1908_v4, %v7604_v32 }
 0x785   :  { %v4103_v41 = vmul.f32 -1.442695, %v1911_v13  ;;  %v4105_v1 = vmul.f32 -1.442695, %v1913_v6 }
 0x786   :  { %v4104_v53 = vmul.f32 -1.442695, %v1912_v45 }
 0x787   :  { %5688 = vpow2.f32 %v4103_v41 }
 0x788   :  { %5690 = vpow2.f32 %v4104_v53  ;;  %v7605_v53 = vld [vmem:[#allocation75_spill] sm:$0xff] }
 0x789   :  { %5692 = vtanh.f32 %v1914_v15  ;;  %v7608_v15 = vld [vmem:[#allocation42_spill] sm:$0xff] }
 0x78a   :  { %5694 = vpow2.f32 %v4105_v1  ;;  %v7607_v1 = vld [vmem:[#allocation41_spill] sm:$0xff] }
 0x791   :  { %v5689_v60 = vpop.eup %5688 }
 0x792   :  { %v1924_v26 = vadd.f32 1.0, %v5689_v60  ;;  %v5691_v2 = vpop.eup %5690 }
 0x793   :  { %v1925_v50 = vadd.f32 1.0, %v5691_v2  ;;  %v5693_v19 = vpop.eup %5692  ;;  %v7612_v2 = vld [vmem:[#allocation46_spill] sm:$0xff] }
 0x794   :  { %5696 = vrcp.f32 %v1924_v26  ;;  %v5695_v61 = vpop.eup %5694  ;;  %v7610_v26 = vld [vmem:[#allocation44_spill] sm:$0xff] }
 0x795   :  { %5698 = vrcp.f32 %v1925_v50  ;;  %v1926_v41 = vadd.f32 1.0, %v5695_v61  ;;  %v7609_v61 = vld [vmem:[#allocation43_spill] sm:$0xff] }
 0x796   :  { %v7613_v50 = vld [vmem:[#allocation47_spill] sm:$0xff] }
 0x797   :  { %5700 = vrcp.f32 %v1926_v41  ;;  %v7618_v41 = vld [vmem:[#allocation52_spill] sm:$0xff] }
 0x79e   :  { %v5697_v44 = vpop.eup %5696 }
 0x79f   :  { %v1935_v13 = vmul.f32 %v5697_v44, %v5693_v19  ;;  %v5699_v45 = vpop.eup %5698  ;;  %v7614_v19 = vld [vmem:[#allocation48_spill] sm:$0xff]  ;;  %v7615_v44 = vld [vmem:[#allocation49_spill] sm:$0xff] }
 0x7a0   :  { %v1934_v62 = vmul.f32 %v5699_v45, %v7605_v53  ;;  %v7617_v45 = vld [vmem:[#allocation51_spill] sm:$0xff]  ;;  %v7619_v53 = vld [vmem:[#allocation53_spill] sm:$0xff] }
 0x7a1   :  { %v5701_v60 = vpop.eup %5700 }
 0x7a2   :  { %v6665_v59 = vadd.f32 %v1935_v13, %v1934_v62  ;;  %v7611_v62 = vld [vmem:[#allocation45_spill] sm:$0xff]  ;;  %v7616_v13 = vld [vmem:[#allocation50_spill] sm:$0xff] }
 0x7a4   :  { %7606 = vst [vmem:[#allocation76_spill] sm:$0xff] %v6665_v59  ;;  %5702 = vtanh.f32 %v6665_v59 }
 0x7ae   :  { %v5703_v4 = vpop.eup %5702 }
 0x7af   :  { %v6668_v6 = vmul.f32 %v5703_v4, %v5701_v60  ;;  %v7620_v60 = vld [vmem:[#allocation54_spill] sm:$0xff]  ;;  %v7621_v4 = vld [vmem:[#allocation55_spill] sm:$0xff] }
 0x7b1   :  { %2004 = vmatmul.mubr.f32.vlgmr.msra.gmra.mrb[12].mxu0 %v6668_v6  ;;  %2075 = vmatmul.mubr.f32.vlgmr.msra.gmra.mrb[12].mxu1 %v6668_v6 }
 0x7b2   :  { %4792 = vmatpush1.bf16.msra.mxu0 %v7607_v1  ;;  %4824 = vmatpush1.bf16.msra.mxu1 %v7608_v15 }
 0x7b3   :  { %4794 = vmatprep.subr.bf16.mxu0 %v7609_v61  ;;  %4826 = vmatprep.subr.bf16.mxu1 %v7610_v26  ;;  %v7639_v26 = vld [vmem:[#allocation73_spill] sm:$0xff] }
 0x7b4   :  { %2179 = vmatprep.mubr.f32.mxu0 %v7464_v0  ;;  %2250 = vmatprep.mubr.f32.mxu1 %v7464_v0 }
 0x7b6   :  { %4796 = vmatpush1.bf16.msra.mxu0 %v7611_v62  ;;  %4828 = vmatpush1.bf16.msra.mxu1 %v7612_v2  ;;  %v7622_v62 = vld [vmem:[#allocation56_spill] sm:$0xff]  ;;  %v7623_v2 = vld [vmem:[#allocation57_spill] sm:$0xff] }
 0x7b7   :  { %4798 = vmatprep.subr.bf16.mxu0 %v7613_v50  ;;  %4830 = vmatprep.subr.bf16.mxu1 %v7614_v19  ;;  %v7624_v50 = vld [vmem:[#allocation58_spill] sm:$0xff]  ;;  %v7625_v19 = vld [vmem:[#allocation59_spill] sm:$0xff] }
 0x7ba   :  { %4800 = vmatpush1.bf16.msra.mxu0 %v7615_v44  ;;  %4832 = vmatpush1.bf16.msra.mxu1 %v7616_v13  ;;  %v7626_v44 = vld [vmem:[#allocation60_spill] sm:$0xff]  ;;  %v7627_v13 = vld [vmem:[#allocation61_spill] sm:$0xff] }
 0x7bb   :  { %4802 = vmatprep.subr.bf16.mxu0 %v7617_v45  ;;  %4834 = vmatprep.subr.bf16.mxu1 %v7618_v41  ;;  %v7628_v45 = vld [vmem:[#allocation62_spill] sm:$0xff]  ;;  %v7629_v41 = vld [vmem:[#allocation63_spill] sm:$0xff] }
 0x7be   :  { %4804 = vmatpush1.bf16.msra.mxu0 %v7619_v53  ;;  %4836 = vmatpush1.bf16.msra.mxu1 %v7620_v60  ;;  %v7630_v53 = vld [vmem:[#allocation64_spill] sm:$0xff]  ;;  %v7631_v60 = vld [vmem:[#allocation65_spill] sm:$0xff] }
 0x7bf   :  { %4806 = vmatprep.subr.bf16.mxu0 %v7621_v4  ;;  %4838 = vmatprep.subr.bf16.mxu1 %v7622_v62  ;;  %v7632_v4 = vld [vmem:[#allocation66_spill] sm:$0xff]  ;;  %v7633_v62 = vld [vmem:[#allocation67_spill] sm:$0xff] }
 0x7c2   :  { %4808 = vmatpush1.bf16.msra.mxu0 %v7623_v2  ;;  %4840 = vmatpush1.bf16.msra.mxu1 %v7624_v50  ;;  %v7634_v2 = vld [vmem:[#allocation68_spill] sm:$0xff]  ;;  %v7635_v50 = vld [vmem:[#allocation69_spill] sm:$0xff] }
 0x7c3   :  { %4810 = vmatprep.subr.bf16.mxu0 %v7625_v19  ;;  %4842 = vmatprep.subr.bf16.mxu1 %v7626_v44  ;;  %v7636_v19 = vld [vmem:[#allocation70_spill] sm:$0xff]  ;;  %v7637_v44 = vld [vmem:[#allocation71_spill] sm:$0xff] }
 0x7c6   :  { %4812 = vmatpush1.bf16.msra.mxu0 %v7627_v13  ;;  %4844 = vmatpush1.bf16.msra.mxu1 %v7628_v45  ;;  %v7638_v13 = vld [vmem:[#allocation72_spill] sm:$0xff] }
 0x7c7   :  { %4814 = vmatprep.subr.bf16.mxu0 %v7629_v41  ;;  %4846 = vmatprep.subr.bf16.mxu1 %v7630_v53 }
 0x7ca   :  { %4816 = vmatpush1.bf16.msra.mxu0 %v7631_v60  ;;  %4848 = vmatpush1.bf16.msra.mxu1 %v7632_v4 }
 0x7cb   :  { %4818 = vmatprep.subr.bf16.mxu0 %v7633_v62  ;;  %4850 = vmatprep.subr.bf16.mxu1 %v7634_v2 }
 0x7ce   :  { %4820 = vmatpush1.bf16.msra.mxu0 %v7635_v50  ;;  %4852 = vmatpush1.bf16.msra.mxu1 %v7636_v19 }
 0x7cf   :  { %4854 = vmatprep.subr.bf16.mxu0 %v7637_v44  ;;  %4886 = vmatprep.subr.bf16.mxu1 %v7638_v13 }
 0x884   :  { %v2005_v45 = vpop.f32.mrb[12].mxu0  ;;  %v2076_v41 = vpop.f32.mrb[12].mxu1 }
 0x885   :  { %v2081_v53 = vadd.f32 %v2005_v45, %v7639_v26  ;;  %v2007_v61 = vpop.f32.mrb[13].mxu0  ;;  %v2078_v60 = vpop.f32.mrb[13].mxu1  ;;  %v2083_v50 = vadd.f32 %v2076_v41, %v7511_v11 }
 0x886   :  { %v2082_v4 = vadd.f32 %v2007_v61, %v7576_v25  ;;  %v2084_v19 = vadd.f32 %v2078_v60, %v7512_v3  ;;  %v7644_v60 = vld [vmem:[#allocation17_spill] sm:$0xff] }
 0x887   :  { %v4106_v15 = vmul.f32 -1.442695, %v2081_v53  ;;  %v4108_v2 = vmul.f32 -1.442695, %v2083_v50 }
 0x888   :  { %v4107_v62 = vmul.f32 -1.442695, %v2082_v4 }
 0x889   :  { %5704 = vpow2.f32 %v4106_v15 }
 0x88a   :  { %5706 = vpow2.f32 %v4107_v62 }
 0x88b   :  { %5708 = vtanh.f32 %v2084_v19 }
 0x88c   :  { %5710 = vpow2.f32 %v4108_v2 }
 0x893   :  { %v5705_v44 = vpop.eup %5704 }
 0x894   :  { %v2094_v1 = vadd.f32 1.0, %v5705_v44  ;;  %v5707_v13 = vpop.eup %5706 }
 0x895   :  { %v2095_v45 = vadd.f32 1.0, %v5707_v13  ;;  %v5709_v26 = vpop.eup %5708  ;;  %v7643_v13 = vld [vmem:[#allocation16_spill] sm:$0xff] }
 0x896   :  { %5712 = vrcp.f32 %v2094_v1  ;;  %v5711_v59 = vpop.eup %5710  ;;  %v6714_v1 = vld [vmem:[#allocation7 + $0x2] ss:$0 sm:$0xff] }
 0x897   :  { %5714 = vrcp.f32 %v2095_v45  ;;  %v2096_v15 = vadd.f32 1.0, %v5711_v59  ;;  %v7640_v59 = vld [vmem:[#allocation13_spill] sm:$0xff]  ;;  %v7645_v45 = vld [vmem:[#allocation18_spill] sm:$0xff] }
 0x899   :  { %5716 = vrcp.f32 %v2096_v15  ;;  %v7649_v15 = vld [vmem:[#allocation22_spill] sm:$0xff] }
 0x8a0   :  { %v5713_v61 = vpop.eup %5712 }
 0x8a1   :  { %v2105_v53 = vmul.f32 %v5713_v61, %v5709_v26  ;;  %v5715_v4 = vpop.eup %5714  ;;  %v7642_v26 = vld [vmem:[#allocation15_spill] sm:$0xff] }
 0x8a2   :  { %v2104_v62 = vmul.f32 %v5715_v4, %v6584_v14  ;;  %v7646_v61 = vld [vmem:[#allocation19_spill] sm:$0xff]  ;;  %v7648_v4 = vld [vmem:[#allocation21_spill] sm:$0xff] }
 0x8a3   :  { %v5717_v50 = vpop.eup %5716 }
 0x8a4   :  { %v6711_v41 = vadd.f32 %v2105_v53, %v2104_v62  ;;  %v7647_v53 = vld [vmem:[#allocation20_spill] sm:$0xff]  ;;  %v7650_v62 = vld [vmem:[#allocation23_spill] sm:$0xff] }
 0x8a6   :  { %5718 = vtanh.f32 %v6711_v41 }
 0x8b0   :  { %v5719_v19 = vpop.eup %5718 }
 0x8b1   :  { %v2108_v44 = vmul.f32 %v5719_v19, %v5717_v50  ;;  %v7651_v50 = vld [vmem:[#allocation24_spill] sm:$0xff]  ;;  %v7652_v19 = vld [vmem:[#allocation25_spill] sm:$0xff] }
 0x8b3   :  { %2180 = vmatmul.mubr.f32.vlgmr.msra.gmra.mrb[16].mxu0 %v2108_v44  ;;  %2251 = vmatmul.mubr.f32.vlgmr.msra.gmra.mrb[16].mxu1 %v2108_v44  ;;  %v2109_v2 = vmul.f32 %v6714_v1, %v2108_v44  ;;  %v7653_v44 = vld [vmem:[#allocation26_spill] sm:$0xff] }
 0x8b4   :  { %4856 = vmatpush1.bf16.msra.mxu0 %v7514_v49  ;;  %4888 = vmatpush1.bf16.msra.mxu1 %v7515_v57 }
 0x8b5   :  { %4858 = vmatprep.subr.bf16.mxu0 %v7516_v18  ;;  %4890 = vmatprep.subr.bf16.mxu1 %v7517_v28  ;;  %v2110_v14 = vsel %vm645_vm1, %v2109_v2, 0.0  ;;  %v7654_v2 = vld [vmem:[#allocation27_spill] sm:$0xff] }
 0x8b6   :  { %2111 = vadd.xlane.f32.xlu1 %v2110_v14  ;;  %2321 = vmatprep.mubr.f32.mxu0 %v7464_v0  ;;  %v7655_v14 = vld [vmem:[#allocation28_spill] sm:$0xff] }
 0x8b7   :  { %2392 = vmatprep.mubr.f32.mxu1 %v7464_v0 }
 0x8b8   :  { %4860 = vmatpush1.bf16.msra.mxu0 %v7518_v8  ;;  %4892 = vmatpush1.bf16.msra.mxu1 %v7577_v36 }
 0x8b9   :  { %4862 = vmatprep.subr.bf16.mxu0 %v7578_v21  ;;  %4894 = vmatprep.subr.bf16.mxu1 %v7521_v48 }
 0x8bc   :  { %4864 = vmatpush1.bf16.msra.mxu0 %v7522_v37  ;;  %4896 = vmatpush1.bf16.msra.mxu1 %v7523_v9 }
 0x8bd   :  { %4866 = vmatprep.subr.bf16.mxu0 %v7524_v17  ;;  %4898 = vmatprep.subr.bf16.mxu1 %v7525_v35 }
 0x8c0   :  { %4868 = vmatpush1.bf16.msra.mxu0 %v7526_v10  ;;  %4900 = vmatpush1.bf16.msra.mxu1 %v7527_v7 }
 0x8c1   :  { %4870 = vmatprep.subr.bf16.mxu0 %v7528_v40  ;;  %4902 = vmatprep.subr.bf16.mxu1 %v7529_v23 }
 0x8c4   :  { %4872 = vmatpush1.bf16.msra.mxu0 %v7530_v55  ;;  %4904 = vmatpush1.bf16.msra.mxu1 %v7531_v24 }
 0x8c5   :  { %4874 = vmatprep.subr.bf16.mxu0 %v6327_v5  ;;  %4906 = vmatprep.subr.bf16.mxu1 %v6329_v16 }
 0x8c8   :  { %4876 = vmatpush1.bf16.msra.mxu0 %v6333_v46  ;;  %4908 = vmatpush1.bf16.msra.mxu1 %v6335_v31 }
 0x8c9   :  { %4878 = vmatprep.subr.bf16.mxu0 %v6339_v39  ;;  %4910 = vmatprep.subr.bf16.mxu1 %v6341_v20 }
 0x8cc   :  { %4880 = vmatpush1.bf16.msra.mxu0 %v6345_v54  ;;  %4912 = vmatpush1.bf16.msra.mxu1 %v6347_v58 }
 0x8cd   :  { %4882 = vmatprep.subr.bf16.mxu0 %v6351_v22  ;;  %4914 = vmatprep.subr.bf16.mxu1 %v6353_v12 }
 0x8d0   :  { %4884 = vmatpush1.bf16.msra.mxu0 %v6357_v63  ;;  %4916 = vmatpush1.bf16.msra.mxu1 %v6359_v30 }
 0x8d1   :  { %4918 = vmatprep.subr.bf16.mxu0 %v6013_v29  ;;  %4950 = vmatprep.subr.bf16.mxu1 %v6015_v33 }
 0x8d3   :  { %2322 = vmatmul.mubr.f32.vlgmr.msra.gmra.mrb[18].mxu0 %v6668_v6  ;;  %2393 = vmatmul.mubr.f32.vlgmr.msra.gmra.mrb[18].mxu1 %v6668_v6  ;;  %v7641_v6 = vld [vmem:[#allocation14_spill] sm:$0xff] }
 0x8d4   :  { %4920 = vmatpush1.bf16.msra.mxu0 %v6017_v34  ;;  %4952 = vmatpush1.bf16.msra.mxu1 %v6020_v38 }
 0x8d5   :  { %4922 = vmatprep.subr.bf16.mxu0 %v6024_v42  ;;  %4954 = vmatprep.subr.bf16.mxu1 %v6026_v43 }
 0x8d6   :  { %2491 = vmatprep.mubr.f32.mxu0 %v7464_v0  ;;  %2562 = vmatprep.mubr.f32.mxu1 %v7464_v0 }
 0x8d8   :  { %4924 = vmatpush1.bf16.msra.mxu0 %v6029_v47  ;;  %4956 = vmatpush1.bf16.msra.mxu1 %v6033_v51 }
 0x8d9   :  { %4926 = vmatprep.subr.bf16.mxu0 %v6035_v52  ;;  %4958 = vmatprep.subr.bf16.mxu1 %v6037_v56 }
 0x8dc   :  { %4928 = vmatpush1.bf16.msra.mxu0 %v7640_v59  ;;  %4960 = vmatpush1.bf16.msra.mxu1 %v7641_v6 }
 0x8dd   :  { %4930 = vmatprep.subr.bf16.mxu0 %v7642_v26  ;;  %4962 = vmatprep.subr.bf16.mxu1 %v7643_v13  ;;  %v7666_v26 = vld [vmem:[#allocation36_spill] sm:$0xff] }
 0x8e0   :  { %4932 = vmatpush1.bf16.msra.mxu0 %v7644_v60  ;;  %4964 = vmatpush1.bf16.msra.mxu1 %v7645_v45  ;;  %v7656_v45 = vld [vmem:[#allocation29_spill] sm:$0xff]  ;;  %v7665_v60 = vld [vmem:[#allocation35_spill] sm:$0xff] }
 0x8e1   :  { %4934 = vmatprep.subr.bf16.mxu0 %v7646_v61  ;;  %4966 = vmatprep.subr.bf16.mxu1 %v7647_v53  ;;  %v7657_v61 = vld [vmem:[#allocation30_spill] sm:$0xff]  ;;  %v7658_v53 = vld [vmem:[#allocation31_spill] sm:$0xff] }
 0x8e4   :  { %4936 = vmatpush1.bf16.msra.mxu0 %v7648_v4  ;;  %4968 = vmatpush1.bf16.msra.mxu1 %v7649_v15  ;;  %v7659_v4 = vld [vmem:[#allocation32_spill] sm:$0xff]  ;;  %v7660_v15 = vld [vmem:[#allocation33_spill] sm:$0xff] }
 0x8e5   :  { %4938 = vmatprep.subr.bf16.mxu0 %v7650_v62  ;;  %4970 = vmatprep.subr.bf16.mxu1 %v7651_v50  ;;  %v7661_v62 = vld [vmem:[#allocation34_spill] sm:$0xff]  ;;  %v7662_v50 = vld [vmem:[#allocation39_spill] sm:$0xff] }
 0x8e8   :  { %4940 = vmatpush1.bf16.msra.mxu0 %v7652_v19  ;;  %4972 = vmatpush1.bf16.msra.mxu1 %v7653_v44  ;;  %v7663_v19 = vld [vmem:[#allocation40_spill] sm:$0xff] }
 0x8e9   :  { %4942 = vmatprep.subr.bf16.mxu0 %v7654_v2  ;;  %4974 = vmatprep.subr.bf16.mxu1 %v7655_v14  ;;  %v6788_v2 = vld [vmem:[#allocation7 + $0x3] ss:$0 sm:$0xff] }
 0x8ea   :  { %7664 = vst [vmem:[#allocation77_spill] sm:$0xff] %v6788_v2 }
 0x8ec   :  { %4944 = vmatpush1.bf16.msra.mxu0 %v7656_v45  ;;  %4976 = vmatpush1.bf16.msra.mxu1 %v7657_v61 }
 0x8ed   :  { %4946 = vmatprep.subr.bf16.mxu0 %v7658_v53  ;;  %4978 = vmatprep.subr.bf16.mxu1 %v7659_v4 }
 0x8f0   :  { %4948 = vmatpush1.bf16.msra.mxu0 %v7660_v15  ;;  %4980 = vmatpush1.bf16.msra.mxu1 %v7661_v62 }
 0x8f1   :  { %4982 = vmatprep.subr.bf16.mxu0 %v7662_v50  ;;  %5014 = vmatprep.subr.bf16.mxu1 %v7663_v19 }
 0x943   :  { %v2112_v44 = vpop.xlane.xlu1 %2111 }
 0x944   :  { %v2113_v14 = vadd.f32 %v6788_v2, %v2112_v44 }
 0x946   :  { %2114 = vst [vmem:[#allocation8 + $0x3] sm:$0x1] %v2113_v14 }
 0x9a6   :  { %v2323_v45 = vpop.f32.mrb[18].mxu0  ;;  %v2394_v61 = vpop.f32.mrb[18].mxu1 }
 0x9a7   :  { %v2399_v53 = vadd.f32 %v2323_v45, %v7665_v60  ;;  %v2325_v13 = vpop.f32.mrb[19].mxu0  ;;  %v2396_v4 = vpop.f32.mrb[19].mxu1  ;;  %v2401_v19 = vadd.f32 %v2394_v61, %v7539_v27 }
 0x9a8   :  { %v2400_v15 = vadd.f32 %v2325_v13, %v7666_v26  ;;  %v2402_v50 = vadd.f32 %v2396_v4, %v7604_v32 }
 0x9a9   :  { %v4109_v6 = vmul.f32 -1.442695, %v2399_v53  ;;  %v4111_v59 = vmul.f32 -1.442695, %v2401_v19  ;;  %v7671_v19 = vld [vmem:[#allocation43_spill] sm:$0xff] }
 0x9aa   :  { %v4110_v62 = vmul.f32 -1.442695, %v2400_v15 }
 0x9ab   :  { %5720 = vpow2.f32 %v4109_v6 }
 0x9ac   :  { %5722 = vpow2.f32 %v4110_v62  ;;  %v7667_v62 = vld [vmem:[#allocation76_spill] sm:$0xff] }
 0x9ad   :  { %5724 = vtanh.f32 %v2402_v50 }
 0x9ae   :  { %5726 = vpow2.f32 %v4111_v59  ;;  %v7669_v59 = vld [vmem:[#allocation41_spill] sm:$0xff] }
 0x9b5   :  { %v5721_v56 = vpop.eup %5720 }
 0x9b6   :  { %v2412_v44 = vadd.f32 1.0, %v5721_v56  ;;  %v5723_v14 = vpop.eup %5722 }
 0x9b7   :  { %v2413_v45 = vadd.f32 1.0, %v5723_v14  ;;  %v5725_v60 = vpop.eup %5724  ;;  %v7675_v14 = vld [vmem:[#allocation47_spill] sm:$0xff] }
 0x9b8   :  { %5728 = vrcp.f32 %v2412_v44  ;;  %v5727_v2 = vpop.eup %5726  ;;  %v7674_v44 = vld [vmem:[#allocation46_spill] sm:$0xff] }
 0x9b9   :  { %5730 = vrcp.f32 %v2413_v45  ;;  %v2414_v6 = vadd.f32 1.0, %v5727_v2  ;;  %v7672_v2 = vld [vmem:[#allocation44_spill] sm:$0xff] }
 0x9ba   :  { %v7676_v45 = vld [vmem:[#allocation48_spill] sm:$0xff] }
 0x9bb   :  { %5732 = vrcp.f32 %v2414_v6  ;;  %v7680_v6 = vld [vmem:[#allocation52_spill] sm:$0xff] }
 0x9c2   :  { %v5729_v13 = vpop.eup %5728 }
 0x9c3   :  { %v2423_v53 = vmul.f32 %v5729_v13, %v5725_v60  ;;  %v5731_v15 = vpop.eup %5730  ;;  %v7670_v60 = vld [vmem:[#allocation42_spill] sm:$0xff]  ;;  %v7677_v13 = vld [vmem:[#allocation49_spill] sm:$0xff] }
 0x9c4   :  { %v2422_v26 = vmul.f32 %v5731_v15, %v7667_v62  ;;  %v7679_v15 = vld [vmem:[#allocation51_spill] sm:$0xff]  ;;  %v7681_v62 = vld [vmem:[#allocation53_spill] sm:$0xff] }
 0x9c5   :  { %v5733_v56 = vpop.eup %5732 }
 0x9c6   :  { %v6796_v61 = vadd.f32 %v2423_v53, %v2422_v26  ;;  %v7673_v26 = vld [vmem:[#allocation45_spill] sm:$0xff]  ;;  %v7678_v53 = vld [vmem:[#allocation50_spill] sm:$0xff] }
 0x9c8   :  { %7668 = vst [vmem:[#allocation78_spill] sm:$0xff] %v6796_v61  ;;  %5734 = vtanh.f32 %v6796_v61 }
 0x9d2   :  { %v5735_v4 = vpop.eup %5734 }
 0x9d3   :  { %v6799_v50 = vmul.f32 %v5735_v4, %v5733_v56  ;;  %v7682_v56 = vld [vmem:[#allocation54_spill] sm:$0xff]  ;;  %v7683_v4 = vld [vmem:[#allocation55_spill] sm:$0xff] }
 0x9d5   :  { %2492 = vmatmul.mubr.f32.vlgmr.msra.gmra.mrb[16].mxu0 %v6799_v50  ;;  %2563 = vmatmul.mubr.f32.vlgmr.msra.gmra.mrb[16].mxu1 %v6799_v50 }
 0x9d6   :  { %4984 = vmatpush1.bf16.msra.mxu0 %v7669_v59  ;;  %5016 = vmatpush1.bf16.msra.mxu1 %v7670_v60 }
 0x9d7   :  { %4986 = vmatprep.subr.bf16.mxu0 %v7671_v19  ;;  %5018 = vmatprep.subr.bf16.mxu1 %v7672_v2  ;;  %v7701_v2 = vld [vmem:[#allocation73_spill] sm:$0xff] }
 0x9d8   :  { %2667 = vmatprep.mubr.f32.mxu0 %v7464_v0  ;;  %2738 = vmatprep.mubr.f32.mxu1 %v7464_v0 }
 0x9da   :  { %4988 = vmatpush1.bf16.msra.mxu0 %v7673_v26  ;;  %5020 = vmatpush1.bf16.msra.mxu1 %v7674_v44  ;;  %v7684_v26 = vld [vmem:[#allocation56_spill] sm:$0xff]  ;;  %v7685_v44 = vld [vmem:[#allocation57_spill] sm:$0xff] }
 0x9db   :  { %4990 = vmatprep.subr.bf16.mxu0 %v7675_v14  ;;  %5022 = vmatprep.subr.bf16.mxu1 %v7676_v45  ;;  %v7686_v14 = vld [vmem:[#allocation58_spill] sm:$0xff]  ;;  %v7687_v45 = vld [vmem:[#allocation59_spill] sm:$0xff] }
 0x9de   :  { %4992 = vmatpush1.bf16.msra.mxu0 %v7677_v13  ;;  %5024 = vmatpush1.bf16.msra.mxu1 %v7678_v53  ;;  %v7688_v13 = vld [vmem:[#allocation60_spill] sm:$0xff]  ;;  %v7689_v53 = vld [vmem:[#allocation61_spill] sm:$0xff] }
 0x9df   :  { %4994 = vmatprep.subr.bf16.mxu0 %v7679_v15  ;;  %5026 = vmatprep.subr.bf16.mxu1 %v7680_v6  ;;  %v7690_v15 = vld [vmem:[#allocation62_spill] sm:$0xff]  ;;  %v7691_v6 = vld [vmem:[#allocation63_spill] sm:$0xff] }
 0x9e2   :  { %4996 = vmatpush1.bf16.msra.mxu0 %v7681_v62  ;;  %5028 = vmatpush1.bf16.msra.mxu1 %v7682_v56  ;;  %v7692_v62 = vld [vmem:[#allocation64_spill] sm:$0xff]  ;;  %v7693_v56 = vld [vmem:[#allocation65_spill] sm:$0xff] }
 0x9e3   :  { %4998 = vmatprep.subr.bf16.mxu0 %v7683_v4  ;;  %5030 = vmatprep.subr.bf16.mxu1 %v7684_v26  ;;  %v7694_v4 = vld [vmem:[#allocation66_spill] sm:$0xff]  ;;  %v7695_v26 = vld [vmem:[#allocation67_spill] sm:$0xff] }
 0x9e6   :  { %5000 = vmatpush1.bf16.msra.mxu0 %v7685_v44  ;;  %5032 = vmatpush1.bf16.msra.mxu1 %v7686_v14  ;;  %v7696_v44 = vld [vmem:[#allocation68_spill] sm:$0xff]  ;;  %v7697_v14 = vld [vmem:[#allocation69_spill] sm:$0xff] }
 0x9e7   :  { %5002 = vmatprep.subr.bf16.mxu0 %v7687_v45  ;;  %5034 = vmatprep.subr.bf16.mxu1 %v7688_v13  ;;  %v7698_v45 = vld [vmem:[#allocation70_spill] sm:$0xff]  ;;  %v7699_v13 = vld [vmem:[#allocation71_spill] sm:$0xff] }
 0x9ea   :  { %5004 = vmatpush1.bf16.msra.mxu0 %v7689_v53  ;;  %5036 = vmatpush1.bf16.msra.mxu1 %v7690_v15  ;;  %v7700_v53 = vld [vmem:[#allocation72_spill] sm:$0xff] }
 0x9eb   :  { %5006 = vmatprep.subr.bf16.mxu0 %v7691_v6  ;;  %5038 = vmatprep.subr.bf16.mxu1 %v7692_v62 }
 0x9ee   :  { %5008 = vmatpush1.bf16.msra.mxu0 %v7693_v56  ;;  %5040 = vmatpush1.bf16.msra.mxu1 %v7694_v4 }
 0x9ef   :  { %5010 = vmatprep.subr.bf16.mxu0 %v7695_v26  ;;  %5042 = vmatprep.subr.bf16.mxu1 %v7696_v44 }
 0x9f2   :  { %5012 = vmatpush1.bf16.msra.mxu0 %v7697_v14  ;;  %5044 = vmatpush1.bf16.msra.mxu1 %v7698_v45 }
 0x9f3   :  { %5046 = vmatprep.subr.bf16.mxu0 %v7699_v13  ;;  %5078 = vmatprep.subr.bf16.mxu1 %v7700_v53 }
 0xaa8   :  { %v2493_v15 = vpop.f32.mrb[16].mxu0  ;;  %v2564_v6 = vpop.f32.mrb[16].mxu1 }
 0xaa9   :  { %v2569_v62 = vadd.f32 %v2493_v15, %v7701_v2  ;;  %v2495_v19 = vpop.f32.mrb[17].mxu0  ;;  %v2566_v56 = vpop.f32.mrb[17].mxu1  ;;  %v2571_v14 = vadd.f32 %v2564_v6, %v7511_v11 }
 0xaaa   :  { %v2570_v4 = vadd.f32 %v2495_v19, %v7576_v25  ;;  %v2572_v45 = vadd.f32 %v2566_v56, %v7512_v3  ;;  %v7707_v56 = vld [vmem:[#allocation17_spill] sm:$0xff] }
 0xaab   :  { %v4112_v60 = vmul.f32 -1.442695, %v2569_v62  ;;  %v4114_v44 = vmul.f32 -1.442695, %v2571_v14 }
 0xaac   :  { %v4113_v26 = vmul.f32 -1.442695, %v2570_v4 }
 0xaad   :  { %5736 = vpow2.f32 %v4112_v60 }
 0xaae   :  { %5738 = vpow2.f32 %v4113_v26 }
 0xaaf   :  { %5740 = vtanh.f32 %v2572_v45 }
 0xab0   :  { %5742 = vpow2.f32 %v4114_v44  ;;  %v7705_v44 = vld [vmem:[#allocation15_spill] sm:$0xff] }
 0xab7   :  { %v5737_v13 = vpop.eup %5736 }
 0xab8   :  { %v2582_v59 = vadd.f32 1.0, %v5737_v13  ;;  %v5739_v53 = vpop.eup %5738 }
 0xab9   :  { %v2583_v15 = vadd.f32 1.0, %v5739_v53  ;;  %v5741_v2 = vpop.eup %5740  ;;  %v7706_v53 = vld [vmem:[#allocation16_spill] sm:$0xff] }
 0xaba   :  { %5744 = vrcp.f32 %v2582_v59  ;;  %v5743_v61 = vpop.eup %5742 }
 0xabb   :  { %5746 = vrcp.f32 %v2583_v15  ;;  %v2584_v60 = vadd.f32 1.0, %v5743_v61  ;;  %v7702_v61 = vld [vmem:[#allocation12_spill] sm:$0xff]  ;;  %v7708_v15 = vld [vmem:[#allocation18_spill] sm:$0xff] }
 0xabd   :  { %5748 = vrcp.f32 %v2584_v60  ;;  %v7712_v60 = vld [vmem:[#allocation22_spill] sm:$0xff] }
 0xac4   :  { %v5745_v19 = vpop.eup %5744 }
 0xac5   :  { %v2593_v62 = vmul.f32 %v5745_v19, %v5741_v2  ;;  %v5747_v4 = vpop.eup %5746  ;;  %v7704_v2 = vld [vmem:[#allocation14_spill] sm:$0xff]  ;;  %v7709_v19 = vld [vmem:[#allocation19_spill] sm:$0xff] }
 0xac6   :  { %v2592_v26 = vmul.f32 %v5747_v4, %v6711_v41  ;;  %v7711_v4 = vld [vmem:[#allocation21_spill] sm:$0xff] }
 0xac7   :  { %v5749_v14 = vpop.eup %5748 }
 0xac8   :  { %v6842_v6 = vadd.f32 %v2593_v62, %v2592_v26  ;;  %v7710_v62 = vld [vmem:[#allocation20_spill] sm:$0xff]  ;;  %v7713_v26 = vld [vmem:[#allocation23_spill] sm:$0xff] }
 0xaca   :  { %5750 = vtanh.f32 %v6842_v6 }
 0xad4   :  { %v5751_v45 = vpop.eup %5750 }
 0xad5   :  { %v2596_v13 = vmul.f32 %v5751_v45, %v5749_v14  ;;  %v7714_v14 = vld [vmem:[#allocation24_spill] sm:$0xff]  ;;  %v7715_v45 = vld [vmem:[#allocation25_spill] sm:$0xff] }
 0xad7   :  { %2668 = vmatmul.mubr.f32.vlgmr.msra.gmra.mrb[20].mxu0 %v2596_v13  ;;  %2739 = vmatmul.mubr.f32.vlgmr.msra.gmra.mrb[20].mxu1 %v2596_v13  ;;  %v2597_v59 = vmul.f32 %v6714_v1, %v2596_v13  ;;  %v7716_v13 = vld [vmem:[#allocation26_spill] sm:$0xff] }
 0xad8   :  { %5048 = vmatpush1.bf16.msra.mxu0 %v7514_v49  ;;  %5080 = vmatpush1.bf16.msra.mxu1 %v7515_v57 }
 0xad9   :  { %5050 = vmatprep.subr.bf16.mxu0 %v7516_v18  ;;  %5082 = vmatprep.subr.bf16.mxu1 %v7517_v28  ;;  %v2598_v41 = vsel %vm645_vm1, %v2597_v59, 0.0  ;;  %v7717_v59 = vld [vmem:[#allocation27_spill] sm:$0xff] }
 0xada   :  { %2599 = vadd.xlane.f32.xlu0 %v2598_v41  ;;  %2809 = vmatprep.mubr.f32.mxu0 %v7464_v0  ;;  %v7718_v41 = vld [vmem:[#allocation28_spill] sm:$0xff] }
 0xadb   :  { %2880 = vmatprep.mubr.f32.mxu1 %v7464_v0 }
 0xadc   :  { %5052 = vmatpush1.bf16.msra.mxu0 %v7518_v8  ;;  %5084 = vmatpush1.bf16.msra.mxu1 %v7577_v36 }
 0xadd   :  { %5054 = vmatprep.subr.bf16.mxu0 %v7578_v21  ;;  %5086 = vmatprep.subr.bf16.mxu1 %v7521_v48 }
 0xae0   :  { %5056 = vmatpush1.bf16.msra.mxu0 %v7522_v37  ;;  %5088 = vmatpush1.bf16.msra.mxu1 %v7523_v9 }
 0xae1   :  { %5058 = vmatprep.subr.bf16.mxu0 %v7524_v17  ;;  %5090 = vmatprep.subr.bf16.mxu1 %v7525_v35 }
 0xae4   :  { %5060 = vmatpush1.bf16.msra.mxu0 %v7526_v10  ;;  %5092 = vmatpush1.bf16.msra.mxu1 %v7527_v7 }
 0xae5   :  { %5062 = vmatprep.subr.bf16.mxu0 %v7528_v40  ;;  %5094 = vmatprep.subr.bf16.mxu1 %v7529_v23 }
 0xae8   :  { %5064 = vmatpush1.bf16.msra.mxu0 %v7530_v55  ;;  %5096 = vmatpush1.bf16.msra.mxu1 %v7531_v24 }
 0xae9   :  { %5066 = vmatprep.subr.bf16.mxu0 %v6327_v5  ;;  %5098 = vmatprep.subr.bf16.mxu1 %v6329_v16 }
 0xaec   :  { %5068 = vmatpush1.bf16.msra.mxu0 %v6333_v46  ;;  %5100 = vmatpush1.bf16.msra.mxu1 %v6335_v31 }
 0xaed   :  { %5070 = vmatprep.subr.bf16.mxu0 %v6339_v39  ;;  %5102 = vmatprep.subr.bf16.mxu1 %v6341_v20 }
 0xaf0   :  { %5072 = vmatpush1.bf16.msra.mxu0 %v6345_v54  ;;  %5104 = vmatpush1.bf16.msra.mxu1 %v6347_v58 }
 0xaf1   :  { %5074 = vmatprep.subr.bf16.mxu0 %v6351_v22  ;;  %5106 = vmatprep.subr.bf16.mxu1 %v6353_v12 }
 0xaf4   :  { %5076 = vmatpush1.bf16.msra.mxu0 %v6357_v63  ;;  %5108 = vmatpush1.bf16.msra.mxu1 %v6359_v30 }
 0xaf5   :  { %5110 = vmatprep.subr.bf16.mxu0 %v6013_v29  ;;  %5142 = vmatprep.subr.bf16.mxu1 %v6015_v33 }
 0xaf7   :  { %2810 = vmatmul.mubr.f32.vlgmr.msra.gmra.mrb[22].mxu0 %v6799_v50  ;;  %2881 = vmatmul.mubr.f32.vlgmr.msra.gmra.mrb[22].mxu1 %v6799_v50  ;;  %v7703_v50 = vld [vmem:[#allocation13_spill] sm:$0xff] }
 0xaf8   :  { %5112 = vmatpush1.bf16.msra.mxu0 %v6017_v34  ;;  %5144 = vmatpush1.bf16.msra.mxu1 %v6020_v38 }
 0xaf9   :  { %5114 = vmatprep.subr.bf16.mxu0 %v6024_v42  ;;  %5146 = vmatprep.subr.bf16.mxu1 %v6026_v43 }
 0xafa   :  { %2979 = vmatprep.mubr.f32.mxu0 %v7464_v0  ;;  %3050 = vmatprep.mubr.f32.mxu1 %v7464_v0 }
 0xafc   :  { %5116 = vmatpush1.bf16.msra.mxu0 %v6029_v47  ;;  %5148 = vmatpush1.bf16.msra.mxu1 %v6033_v51 }
 0xafd   :  { %5118 = vmatprep.subr.bf16.mxu0 %v6035_v52  ;;  %5150 = vmatprep.subr.bf16.mxu1 %v7702_v61 }
 0xb00   :  { %5120 = vmatpush1.bf16.msra.mxu0 %v7703_v50  ;;  %5152 = vmatpush1.bf16.msra.mxu1 %v7704_v2  ;;  %v7729_v2 = vld [vmem:[#allocation36_spill] sm:$0xff] }
 0xb01   :  { %5122 = vmatprep.subr.bf16.mxu0 %v7705_v44  ;;  %5154 = vmatprep.subr.bf16.mxu1 %v7706_v53  ;;  %v7728_v53 = vld [vmem:[#allocation35_spill] sm:$0xff] }
 0xb04   :  { %5124 = vmatpush1.bf16.msra.mxu0 %v7707_v56  ;;  %5156 = vmatpush1.bf16.msra.mxu1 %v7708_v15  ;;  %v7719_v15 = vld [vmem:[#allocation29_spill] sm:$0xff] }
 0xb05   :  { %5126 = vmatprep.subr.bf16.mxu0 %v7709_v19  ;;  %5158 = vmatprep.subr.bf16.mxu1 %v7710_v62  ;;  %v7720_v19 = vld [vmem:[#allocation30_spill] sm:$0xff]  ;;  %v7721_v62 = vld [vmem:[#allocation31_spill] sm:$0xff] }
 0xb08   :  { %5128 = vmatpush1.bf16.msra.mxu0 %v7711_v4  ;;  %5160 = vmatpush1.bf16.msra.mxu1 %v7712_v60  ;;  %v7722_v4 = vld [vmem:[#allocation32_spill] sm:$0xff]  ;;  %v7723_v60 = vld [vmem:[#allocation33_spill] sm:$0xff] }
 0xb09   :  { %5130 = vmatprep.subr.bf16.mxu0 %v7713_v26  ;;  %5162 = vmatprep.subr.bf16.mxu1 %v7714_v14  ;;  %v7724_v26 = vld [vmem:[#allocation34_spill] sm:$0xff]  ;;  %v7725_v14 = vld [vmem:[#allocation39_spill] sm:$0xff] }
 0xb0c   :  { %5132 = vmatpush1.bf16.msra.mxu0 %v7715_v45  ;;  %5164 = vmatpush1.bf16.msra.mxu1 %v7716_v13  ;;  %v7726_v45 = vld [vmem:[#allocation40_spill] sm:$0xff] }
 0xb0d   :  { %5134 = vmatprep.subr.bf16.mxu0 %v7717_v59  ;;  %5166 = vmatprep.subr.bf16.mxu1 %v7718_v41  ;;  %v7727_v59 = vld [vmem:[#allocation77_spill] sm:$0xff] }
 0xb10   :  { %5136 = vmatpush1.bf16.msra.mxu0 %v7719_v15  ;;  %5168 = vmatpush1.bf16.msra.mxu1 %v7720_v19 }
 0xb11   :  { %5138 = vmatprep.subr.bf16.mxu0 %v7721_v62  ;;  %5170 = vmatprep.subr.bf16.mxu1 %v7722_v4 }
 0xb14   :  { %5140 = vmatpush1.bf16.msra.mxu0 %v7723_v60  ;;  %5172 = vmatpush1.bf16.msra.mxu1 %v7724_v26 }
 0xb15   :  { %5174 = vmatprep.subr.bf16.mxu0 %v7725_v14  ;;  %5206 = vmatprep.subr.bf16.mxu1 %v7726_v45 }
 0xb67   :  { %v2600_v13 = vpop.xlane.xlu0 %2599 }
 0xb68   :  { %v2601_v56 = vadd.f32 %v7727_v59, %v2600_v13 }
 0xb6a   :  { %2602 = vst [vmem:[#allocation8 + $0x4] sm:$0x1] %v2601_v56 }
 0xbca   :  { %v2811_v41 = vpop.f32.mrb[22].mxu0  ;;  %v2882_v15 = vpop.f32.mrb[22].mxu1 }
 0xbcb   :  { %v2887_v19 = vadd.f32 %v2811_v41, %v7728_v53  ;;  %v2813_v44 = vpop.f32.mrb[23].mxu0  ;;  %v2884_v62 = vpop.f32.mrb[23].mxu1  ;;  %v2889_v14 = vadd.f32 %v2882_v15, %v7539_v27 }
 0xbcc   :  { %v2888_v4 = vadd.f32 %v2813_v44, %v7729_v2  ;;  %v2890_v45 = vadd.f32 %v2884_v62, %v7604_v32 }
 0xbcd   :  { %v4115_v50 = vmul.f32 -1.442695, %v2887_v19  ;;  %v4117_v26 = vmul.f32 -1.442695, %v2889_v14 }
 0xbce   :  { %v4116_v60 = vmul.f32 -1.442695, %v2888_v4 }
 0xbcf   :  { %5752 = vpow2.f32 %v4115_v50 }
 0xbd0   :  { %5754 = vpow2.f32 %v4116_v60  ;;  %v7730_v60 = vld [vmem:[#allocation78_spill] sm:$0xff] }
 0xbd1   :  { %5756 = vtanh.f32 %v2890_v45  ;;  %v7734_v45 = vld [vmem:[#allocation43_spill] sm:$0xff] }
 0xbd2   :  { %5758 = vpow2.f32 %v4117_v26  ;;  %v7732_v26 = vld [vmem:[#allocation41_spill] sm:$0xff] }
 0xbd9   :  { %v5753_v61 = vpop.eup %5752 }
 0xbda   :  { %v2900_v13 = vadd.f32 1.0, %v5753_v61  ;;  %v5755_v56 = vpop.eup %5754 }
 0xbdb   :  { %v2901_v41 = vadd.f32 1.0, %v5755_v56  ;;  %v5757_v53 = vpop.eup %5756  ;;  %v7738_v56 = vld [vmem:[#allocation47_spill] sm:$0xff] }
 0xbdc   :  { %5760 = vrcp.f32 %v2900_v13  ;;  %v5759_v59 = vpop.eup %5758  ;;  %v7737_v13 = vld [vmem:[#allocation46_spill] sm:$0xff] }
 0xbdd   :  { %5762 = vrcp.f32 %v2901_v41  ;;  %v2902_v50 = vadd.f32 1.0, %v5759_v59  ;;  %v7735_v59 = vld [vmem:[#allocation44_spill] sm:$0xff] }
 0xbde   :  { %v7739_v41 = vld [vmem:[#allocation48_spill] sm:$0xff] }
 0xbdf   :  { %5764 = vrcp.f32 %v2902_v50  ;;  %v7743_v50 = vld [vmem:[#allocation52_spill] sm:$0xff] }
 0xbe6   :  { %v5761_v44 = vpop.eup %5760 }
 0xbe7   :  { %v2911_v19 = vmul.f32 %v5761_v44, %v5757_v53  ;;  %v5763_v4 = vpop.eup %5762  ;;  %v7733_v53 = vld [vmem:[#allocation42_spill] sm:$0xff]  ;;  %v7740_v44 = vld [vmem:[#allocation49_spill] sm:$0xff] }
 0xbe8   :  { %v2910_v2 = vmul.f32 %v5763_v4, %v7730_v60  ;;  %v7742_v4 = vld [vmem:[#allocation51_spill] sm:$0xff]  ;;  %v7744_v60 = vld [vmem:[#allocation53_spill] sm:$0xff] }
 0xbe9   :  { %v5765_v61 = vpop.eup %5764 }
 0xbea   :  { %v6923_v15 = vadd.f32 %v2911_v19, %v2910_v2  ;;  %v7736_v2 = vld [vmem:[#allocation45_spill] sm:$0xff]  ;;  %v7741_v19 = vld [vmem:[#allocation50_spill] sm:$0xff] }
 0xbec   :  { %7731 = vst [vmem:[#allocation79_spill] sm:$0xff] %v6923_v15  ;;  %5766 = vtanh.f32 %v6923_v15 }
 0xbf6   :  { %v5767_v62 = vpop.eup %5766 }
 0xbf7   :  { %v6926_v14 = vmul.f32 %v5767_v62, %v5765_v61  ;;  %v7745_v61 = vld [vmem:[#allocation54_spill] sm:$0xff]  ;;  %v7746_v62 = vld [vmem:[#allocation55_spill] sm:$0xff] }
 0xbf9   :  { %2980 = vmatmul.mubr.f32.vlgmr.msra.gmra.mrb[20].mxu0 %v6926_v14  ;;  %3051 = vmatmul.mubr.f32.vlgmr.msra.gmra.mrb[20].mxu1 %v6926_v14 }
 0xbfa   :  { %5176 = vmatpush1.bf16.msra.mxu0 %v7732_v26  ;;  %5208 = vmatpush1.bf16.msra.mxu1 %v7733_v53 }
 0xbfb   :  { %5178 = vmatprep.subr.bf16.mxu0 %v7734_v45  ;;  %5210 = vmatprep.subr.bf16.mxu1 %v7735_v59  ;;  %v7764_v59 = vld [vmem:[#allocation73_spill] sm:$0xff] }
 0xbfc   :  { %3155 = vmatprep.mubr.f32.mxu0 %v7464_v0  ;;  %3226 = vmatprep.mubr.f32.mxu1 %v7464_v0 }
 0xbfe   :  { %5180 = vmatpush1.bf16.msra.mxu0 %v7736_v2  ;;  %5212 = vmatpush1.bf16.msra.mxu1 %v7737_v13  ;;  %v7747_v2 = vld [vmem:[#allocation56_spill] sm:$0xff]  ;;  %v7748_v13 = vld [vmem:[#allocation57_spill] sm:$0xff] }
 0xbff   :  { %5182 = vmatprep.subr.bf16.mxu0 %v7738_v56  ;;  %5214 = vmatprep.subr.bf16.mxu1 %v7739_v41  ;;  %v7749_v56 = vld [vmem:[#allocation58_spill] sm:$0xff]  ;;  %v7750_v41 = vld [vmem:[#allocation59_spill] sm:$0xff] }
 0xc02   :  { %5184 = vmatpush1.bf16.msra.mxu0 %v7740_v44  ;;  %5216 = vmatpush1.bf16.msra.mxu1 %v7741_v19  ;;  %v7751_v44 = vld [vmem:[#allocation60_spill] sm:$0xff]  ;;  %v7752_v19 = vld [vmem:[#allocation61_spill] sm:$0xff] }
 0xc03   :  { %5186 = vmatprep.subr.bf16.mxu0 %v7742_v4  ;;  %5218 = vmatprep.subr.bf16.mxu1 %v7743_v50  ;;  %v7753_v4 = vld [vmem:[#allocation62_spill] sm:$0xff]  ;;  %v7754_v50 = vld [vmem:[#allocation63_spill] sm:$0xff] }
 0xc06   :  { %5188 = vmatpush1.bf16.msra.mxu0 %v7744_v60  ;;  %5220 = vmatpush1.bf16.msra.mxu1 %v7745_v61  ;;  %v7755_v60 = vld [vmem:[#allocation64_spill] sm:$0xff]  ;;  %v7756_v61 = vld [vmem:[#allocation65_spill] sm:$0xff] }
 0xc07   :  { %5190 = vmatprep.subr.bf16.mxu0 %v7746_v62  ;;  %5222 = vmatprep.subr.bf16.mxu1 %v7747_v2  ;;  %v7757_v62 = vld [vmem:[#allocation66_spill] sm:$0xff]  ;;  %v7758_v2 = vld [vmem:[#allocation67_spill] sm:$0xff] }
 0xc0a   :  { %5192 = vmatpush1.bf16.msra.mxu0 %v7748_v13  ;;  %5224 = vmatpush1.bf16.msra.mxu1 %v7749_v56  ;;  %v7759_v13 = vld [vmem:[#allocation68_spill] sm:$0xff]  ;;  %v7760_v56 = vld [vmem:[#allocation69_spill] sm:$0xff] }
 0xc0b   :  { %5194 = vmatprep.subr.bf16.mxu0 %v7750_v41  ;;  %5226 = vmatprep.subr.bf16.mxu1 %v7751_v44  ;;  %v7761_v41 = vld [vmem:[#allocation70_spill] sm:$0xff]  ;;  %v7762_v44 = vld [vmem:[#allocation71_spill] sm:$0xff] }
 0xc0e   :  { %5196 = vmatpush1.bf16.msra.mxu0 %v7752_v19  ;;  %5228 = vmatpush1.bf16.msra.mxu1 %v7753_v4  ;;  %v7763_v19 = vld [vmem:[#allocation72_spill] sm:$0xff] }
 0xc0f   :  { %5198 = vmatprep.subr.bf16.mxu0 %v7754_v50  ;;  %5230 = vmatprep.subr.bf16.mxu1 %v7755_v60 }
 0xc12   :  { %5200 = vmatpush1.bf16.msra.mxu0 %v7756_v61  ;;  %5232 = vmatpush1.bf16.msra.mxu1 %v7757_v62 }
 0xc13   :  { %5202 = vmatprep.subr.bf16.mxu0 %v7758_v2  ;;  %5234 = vmatprep.subr.bf16.mxu1 %v7759_v13 }
 0xc16   :  { %5204 = vmatpush1.bf16.msra.mxu0 %v7760_v56  ;;  %5236 = vmatpush1.bf16.msra.mxu1 %v7761_v41 }
 0xc17   :  { %5238 = vmatprep.subr.bf16.mxu0 %v7762_v44  ;;  %5270 = vmatprep.subr.bf16.mxu1 %v7763_v19 }
 0xccc   :  { %v2981_v4 = vpop.f32.mrb[20].mxu0  ;;  %v3052_v50 = vpop.f32.mrb[20].mxu1 }
 0xccd   :  { %v3057_v60 = vadd.f32 %v2981_v4, %v7764_v59  ;;  %v2983_v45 = vpop.f32.mrb[21].mxu0  ;;  %v3054_v61 = vpop.f32.mrb[21].mxu1  ;;  %v3059_v56 = vadd.f32 %v3052_v50, %v7511_v11 }
 0xcce   :  { %v3058_v62 = vadd.f32 %v2983_v45, %v7576_v25  ;;  %v3060_v41 = vadd.f32 %v3054_v61, %v7512_v3  ;;  %v7771_v61 = vld [vmem:[#allocation18_spill] sm:$0xff] }
 0xccf   :  { %v4118_v53 = vmul.f32 -1.442695, %v3057_v60  ;;  %v4120_v13 = vmul.f32 -1.442695, %v3059_v56 }
 0xcd0   :  { %v4119_v2 = vmul.f32 -1.442695, %v3058_v62 }
 0xcd1   :  { %5768 = vpow2.f32 %v4118_v53 }
 0xcd2   :  { %5770 = vpow2.f32 %v4119_v2 }
 0xcd3   :  { %5772 = vtanh.f32 %v3060_v41 }
 0xcd4   :  { %5774 = vpow2.f32 %v4120_v13  ;;  %v7769_v13 = vld [vmem:[#allocation16_spill] sm:$0xff] }
 0xcdb   :  { %v5769_v44 = vpop.eup %5768 }
 0xcdc   :  { %v3070_v26 = vadd.f32 1.0, %v5769_v44  ;;  %v5771_v19 = vpop.eup %5770 }
 0xcdd   :  { %v3071_v4 = vadd.f32 1.0, %v5771_v19  ;;  %v5773_v59 = vpop.eup %5772  ;;  %v7770_v19 = vld [vmem:[#allocation17_spill] sm:$0xff] }
 0xcde   :  { %5776 = vrcp.f32 %v3070_v26  ;;  %v5775_v15 = vpop.eup %5774 }
 0xcdf   :  { %5778 = vrcp.f32 %v3071_v4  ;;  %v3072_v53 = vadd.f32 1.0, %v5775_v15  ;;  %v7766_v15 = vld [vmem:[#allocation13_spill] sm:$0xff]  ;;  %v7772_v4 = vld [vmem:[#allocation19_spill] sm:$0xff] }
 0xce1   :  { %5780 = vrcp.f32 %v3072_v53  ;;  %v7776_v53 = vld [vmem:[#allocation23_spill] sm:$0xff] }
 0xce8   :  { %v5777_v45 = vpop.eup %5776 }
 0xce9   :  { %v3081_v60 = vmul.f32 %v5777_v45, %v5773_v59  ;;  %v5779_v62 = vpop.eup %5778  ;;  %v7768_v59 = vld [vmem:[#allocation15_spill] sm:$0xff]  ;;  %v7773_v45 = vld [vmem:[#allocation20_spill] sm:$0xff] }
 0xcea   :  { %v3080_v2 = vmul.f32 %v5779_v62, %v6842_v6  ;;  %v7775_v62 = vld [vmem:[#allocation22_spill] sm:$0xff] }
 0xceb   :  { %v5781_v56 = vpop.eup %5780 }
 0xcec   :  { %v6969_v50 = vadd.f32 %v3081_v60, %v3080_v2  ;;  %v7774_v60 = vld [vmem:[#allocation21_spill] sm:$0xff]  ;;  %v7777_v2 = vld [vmem:[#allocation24_spill] sm:$0xff] }
 0xcee   :  { %5782 = vtanh.f32 %v6969_v50 }
 0xcf8   :  { %v5783_v41 = vpop.eup %5782 }
 0xcf9   :  { %v3084_v44 = vmul.f32 %v5783_v41, %v5781_v56  ;;  %v7778_v56 = vld [vmem:[#allocation25_spill] sm:$0xff]  ;;  %v7779_v41 = vld [vmem:[#allocation26_spill] sm:$0xff] }
 0xcfb   :  { %3156 = vmatmul.mubr.f32.vlgmr.msra.gmra.mrb[24].mxu0 %v3084_v44  ;;  %3227 = vmatmul.mubr.f32.vlgmr.msra.gmra.mrb[24].mxu1 %v3084_v44  ;;  %v3085_v26 = vmul.f32 %v6714_v1, %v3084_v44  ;;  %v7765_v1 = vld [vmem:[#allocation12_spill] sm:$0xff]  ;;  %v7780_v44 = vld [vmem:[#allocation27_spill] sm:$0xff] }
 0xcfc   :  { %5240 = vmatpush1.bf16.msra.mxu0 %v7514_v49  ;;  %5272 = vmatpush1.bf16.msra.mxu1 %v7515_v57 }
 0xcfd   :  { %5242 = vmatprep.subr.bf16.mxu0 %v7516_v18  ;;  %5274 = vmatprep.subr.bf16.mxu1 %v7517_v28  ;;  %v3086_v6 = vsel %vm645_vm1, %v3085_v26, 0.0  ;;  %v7781_v26 = vld [vmem:[#allocation28_spill] sm:$0xff] }
 0xcfe   :  { %3087 = vadd.xlane.f32.xlu1 %v3086_v6  ;;  %3297 = vmatprep.mubr.f32.mxu0 %v7464_v0  ;;  %v7782_v6 = vld [vmem:[#allocation29_spill] sm:$0xff] }
 0xcff   :  { %3368 = vmatprep.mubr.f32.mxu1 %v7464_v0 }
 0xd00   :  { %5244 = vmatpush1.bf16.msra.mxu0 %v7518_v8  ;;  %5276 = vmatpush1.bf16.msra.mxu1 %v7577_v36 }
 0xd01   :  { %5246 = vmatprep.subr.bf16.mxu0 %v7578_v21  ;;  %5278 = vmatprep.subr.bf16.mxu1 %v7521_v48 }
 0xd04   :  { %5248 = vmatpush1.bf16.msra.mxu0 %v7522_v37  ;;  %5280 = vmatpush1.bf16.msra.mxu1 %v7523_v9 }
 0xd05   :  { %5250 = vmatprep.subr.bf16.mxu0 %v7524_v17  ;;  %5282 = vmatprep.subr.bf16.mxu1 %v7525_v35 }
 0xd08   :  { %5252 = vmatpush1.bf16.msra.mxu0 %v7526_v10  ;;  %5284 = vmatpush1.bf16.msra.mxu1 %v7527_v7 }
 0xd09   :  { %5254 = vmatprep.subr.bf16.mxu0 %v7528_v40  ;;  %5286 = vmatprep.subr.bf16.mxu1 %v7529_v23 }
 0xd0c   :  { %5256 = vmatpush1.bf16.msra.mxu0 %v7530_v55  ;;  %5288 = vmatpush1.bf16.msra.mxu1 %v7531_v24 }
 0xd0d   :  { %5258 = vmatprep.subr.bf16.mxu0 %v6327_v5  ;;  %5290 = vmatprep.subr.bf16.mxu1 %v6329_v16 }
 0xd10   :  { %5260 = vmatpush1.bf16.msra.mxu0 %v6333_v46  ;;  %5292 = vmatpush1.bf16.msra.mxu1 %v6335_v31 }
 0xd11   :  { %5262 = vmatprep.subr.bf16.mxu0 %v6339_v39  ;;  %5294 = vmatprep.subr.bf16.mxu1 %v6341_v20 }
 0xd14   :  { %5264 = vmatpush1.bf16.msra.mxu0 %v6345_v54  ;;  %5296 = vmatpush1.bf16.msra.mxu1 %v6347_v58 }
 0xd15   :  { %5266 = vmatprep.subr.bf16.mxu0 %v6351_v22  ;;  %5298 = vmatprep.subr.bf16.mxu1 %v6353_v12 }
 0xd18   :  { %5268 = vmatpush1.bf16.msra.mxu0 %v6357_v63  ;;  %5300 = vmatpush1.bf16.msra.mxu1 %v6359_v30 }
 0xd19   :  { %5302 = vmatprep.subr.bf16.mxu0 %v6013_v29  ;;  %5334 = vmatprep.subr.bf16.mxu1 %v6015_v33 }
 0xd1b   :  { %3298 = vmatmul.mubr.f32.vlgmr.msra.gmra.mrb[26].mxu0 %v6926_v14  ;;  %3369 = vmatmul.mubr.f32.vlgmr.msra.gmra.mrb[26].mxu1 %v6926_v14  ;;  %v7767_v14 = vld [vmem:[#allocation14_spill] sm:$0xff] }
 0xd1c   :  { %5304 = vmatpush1.bf16.msra.mxu0 %v6017_v34  ;;  %5336 = vmatpush1.bf16.msra.mxu1 %v6020_v38 }
 0xd1d   :  { %5306 = vmatprep.subr.bf16.mxu0 %v6024_v42  ;;  %5338 = vmatprep.subr.bf16.mxu1 %v6026_v43 }
 0xd1e   :  { %3467 = vmatprep.mubr.f32.mxu0 %v7464_v0  ;;  %3538 = vmatprep.mubr.f32.mxu1 %v7464_v0 }
 0xd20   :  { %5308 = vmatpush1.bf16.msra.mxu0 %v6029_v47  ;;  %5340 = vmatpush1.bf16.msra.mxu1 %v6033_v51 }
 0xd21   :  { %5310 = vmatprep.subr.bf16.mxu0 %v6035_v52  ;;  %5342 = vmatprep.subr.bf16.mxu1 %v7765_v1 }
 0xd24   :  { %5312 = vmatpush1.bf16.msra.mxu0 %v7766_v15  ;;  %5344 = vmatpush1.bf16.msra.mxu1 %v7767_v14 }
 0xd25   :  { %5314 = vmatprep.subr.bf16.mxu0 %v7768_v59  ;;  %5346 = vmatprep.subr.bf16.mxu1 %v7769_v13  ;;  %v7792_v59 = vld [vmem:[#allocation36_spill] sm:$0xff] }
 0xd28   :  { %5316 = vmatpush1.bf16.msra.mxu0 %v7770_v19  ;;  %5348 = vmatpush1.bf16.msra.mxu1 %v7771_v61  ;;  %v7791_v19 = vld [vmem:[#allocation35_spill] sm:$0xff] }
 0xd29   :  { %5318 = vmatprep.subr.bf16.mxu0 %v7772_v4  ;;  %5350 = vmatprep.subr.bf16.mxu1 %v7773_v45  ;;  %v7783_v4 = vld [vmem:[#allocation30_spill] sm:$0xff]  ;;  %v7784_v45 = vld [vmem:[#allocation31_spill] sm:$0xff] }
 0xd2c   :  { %5320 = vmatpush1.bf16.msra.mxu0 %v7774_v60  ;;  %5352 = vmatpush1.bf16.msra.mxu1 %v7775_v62  ;;  %v7785_v60 = vld [vmem:[#allocation32_spill] sm:$0xff]  ;;  %v7786_v62 = vld [vmem:[#allocation33_spill] sm:$0xff] }
 0xd2d   :  { %5322 = vmatprep.subr.bf16.mxu0 %v7776_v53  ;;  %5354 = vmatprep.subr.bf16.mxu1 %v7777_v2  ;;  %v7787_v53 = vld [vmem:[#allocation34_spill] sm:$0xff]  ;;  %v7788_v2 = vld [vmem:[#allocation39_spill] sm:$0xff] }
 0xd30   :  { %5324 = vmatpush1.bf16.msra.mxu0 %v7778_v56  ;;  %5356 = vmatpush1.bf16.msra.mxu1 %v7779_v41  ;;  %v7789_v56 = vld [vmem:[#allocation40_spill] sm:$0xff] }
 0xd31   :  { %5326 = vmatprep.subr.bf16.mxu0 %v7780_v44  ;;  %5358 = vmatprep.subr.bf16.mxu1 %v7781_v26  ;;  %v7790_v44 = vld [vmem:[#allocation77_spill] sm:$0xff] }
 0xd34   :  { %5328 = vmatpush1.bf16.msra.mxu0 %v7782_v6  ;;  %5360 = vmatpush1.bf16.msra.mxu1 %v7783_v4 }
 0xd35   :  { %5330 = vmatprep.subr.bf16.mxu0 %v7784_v45  ;;  %5362 = vmatprep.subr.bf16.mxu1 %v7785_v60 }
 0xd38   :  { %5332 = vmatpush1.bf16.msra.mxu0 %v7786_v62  ;;  %5364 = vmatpush1.bf16.msra.mxu1 %v7787_v53 }
 0xd39   :  { %5366 = vmatprep.subr.bf16.mxu0 %v7788_v2  ;;  %5398 = vmatprep.subr.bf16.mxu1 %v7789_v56 }
 0xd8b   :  { %v3088_v41 = vpop.xlane.xlu1 %3087 }
 0xd8c   :  { %v3089_v61 = vadd.f32 %v7790_v44, %v3088_v41 }
 0xd8e   :  { %3090 = vst [vmem:[#allocation8 + $0x5] sm:$0x1] %v3089_v61 }
 0xdee   :  { %v3299_v26 = vpop.f32.mrb[26].mxu0  ;;  %v3370_v6 = vpop.f32.mrb[26].mxu1 }
 0xdef   :  { %v3375_v4 = vadd.f32 %v3299_v26, %v7791_v19  ;;  %v3301_v13 = vpop.f32.mrb[27].mxu0  ;;  %v3372_v45 = vpop.f32.mrb[27].mxu1  ;;  %v3377_v2 = vadd.f32 %v3370_v6, %v7539_v27 }
 0xdf0   :  { %v3376_v60 = vadd.f32 %v3301_v13, %v7792_v59  ;;  %v3378_v56 = vadd.f32 %v3372_v45, %v7604_v32 }
 0xdf1   :  { %v4121_v14 = vmul.f32 -1.442695, %v3375_v4  ;;  %v4123_v53 = vmul.f32 -1.442695, %v3377_v2 }
 0xdf2   :  { %v4122_v62 = vmul.f32 -1.442695, %v3376_v60 }
 0xdf3   :  { %5784 = vpow2.f32 %v4121_v14 }
 0xdf4   :  { %5786 = vpow2.f32 %v4122_v62  ;;  %v7793_v62 = vld [vmem:[#allocation79_spill] sm:$0xff] }
 0xdf5   :  { %5788 = vtanh.f32 %v3378_v56  ;;  %v7796_v56 = vld [vmem:[#allocation42_spill] sm:$0xff] }
 0xdf6   :  { %5790 = vpow2.f32 %v4123_v53  ;;  %v7795_v53 = vld [vmem:[#allocation41_spill] sm:$0xff] }
 0xdfd   :  { %v5785_v15 = vpop.eup %5784 }
 0xdfe   :  { %v3388_v41 = vadd.f32 1.0, %v5785_v15  ;;  %v5787_v61 = vpop.eup %5786 }
 0xdff   :  { %v3389_v44 = vadd.f32 1.0, %v5787_v61  ;;  %v5789_v26 = vpop.eup %5788  ;;  %v7800_v61 = vld [vmem:[#allocation46_spill] sm:$0xff] }
 0xe00   :  { %5792 = vrcp.f32 %v3388_v41  ;;  %v5791_v19 = vpop.eup %5790  ;;  %v7798_v41 = vld [vmem:[#allocation44_spill] sm:$0xff] }
 0xe01   :  { %5794 = vrcp.f32 %v3389_v44  ;;  %v3390_v14 = vadd.f32 1.0, %v5791_v19  ;;  %v7797_v19 = vld [vmem:[#allocation43_spill] sm:$0xff] }
 0xe02   :  { %v7801_v44 = vld [vmem:[#allocation47_spill] sm:$0xff] }
 0xe03   :  { %5796 = vrcp.f32 %v3390_v14  ;;  %v7806_v14 = vld [vmem:[#allocation52_spill] sm:$0xff] }
 0xe0a   :  { %v5793_v13 = vpop.eup %5792 }
 0xe0b   :  { %v3399_v4 = vmul.f32 %v5793_v13, %v5789_v26  ;;  %v5795_v60 = vpop.eup %5794  ;;  %v7802_v26 = vld [vmem:[#allocation48_spill] sm:$0xff]  ;;  %v7803_v13 = vld [vmem:[#allocation49_spill] sm:$0xff] }
 0xe0c   :  { %v3398_v59 = vmul.f32 %v5795_v60, %v7793_v62  ;;  %v7805_v60 = vld [vmem:[#allocation51_spill] sm:$0xff]  ;;  %v7807_v62 = vld [vmem:[#allocation53_spill] sm:$0xff] }
 0xe0d   :  { %v5797_v15 = vpop.eup %5796 }
 0xe0e   :  { %v7050_v6 = vadd.f32 %v3399_v4, %v3398_v59  ;;  %v7799_v59 = vld [vmem:[#allocation45_spill] sm:$0xff]  ;;  %v7804_v4 = vld [vmem:[#allocation50_spill] sm:$0xff] }
 0xe10   :  { %7794 = vst [vmem:[#allocation80_spill] sm:$0xff] %v7050_v6  ;;  %5798 = vtanh.f32 %v7050_v6 }
 0xe1a   :  { %v5799_v45 = vpop.eup %5798 }
 0xe1b   :  { %v7053_v2 = vmul.f32 %v5799_v45, %v5797_v15  ;;  %v7808_v15 = vld [vmem:[#allocation54_spill] sm:$0xff]  ;;  %v7809_v45 = vld [vmem:[#allocation55_spill] sm:$0xff] }
 0xe1d   :  { %3468 = vmatmul.mubr.f32.vlgmr.msra.gmra.mrb[24].mxu0 %v7053_v2  ;;  %3539 = vmatmul.mubr.f32.vlgmr.msra.gmra.mrb[24].mxu1 %v7053_v2 }
 0xe1e   :  { %5368 = vmatpush1.bf16.msra.mxu0 %v7795_v53  ;;  %5400 = vmatpush1.bf16.msra.mxu1 %v7796_v56  ;;  %v7810_v53 = vld [vmem:[#allocation56_spill] sm:$0xff]  ;;  %v7811_v56 = vld [vmem:[#allocation57_spill] sm:$0xff] }
 0xe1f   :  { %5370 = vmatprep.subr.bf16.mxu0 %v7797_v19  ;;  %5402 = vmatprep.subr.bf16.mxu1 %v7798_v41  ;;  %v7812_v19 = vld [vmem:[#allocation58_spill] sm:$0xff]  ;;  %v7813_v41 = vld [vmem:[#allocation59_spill] sm:$0xff] }
 0xe20   :  { %3643 = vmatprep.mubr.f32.mxu0 %v7464_v0  ;;  %3714 = vmatprep.mubr.f32.mxu1 %v7464_v0 }
 0xe22   :  { %5372 = vmatpush1.bf16.msra.mxu0 %v7799_v59  ;;  %5404 = vmatpush1.bf16.msra.mxu1 %v7800_v61  ;;  %v7814_v59 = vld [vmem:[#allocation60_spill] sm:$0xff]  ;;  %v7815_v61 = vld [vmem:[#allocation61_spill] sm:$0xff] }
 0xe23   :  { %5374 = vmatprep.subr.bf16.mxu0 %v7801_v44  ;;  %5406 = vmatprep.subr.bf16.mxu1 %v7802_v26  ;;  %v7816_v44 = vld [vmem:[#allocation62_spill] sm:$0xff]  ;;  %v7817_v26 = vld [vmem:[#allocation63_spill] sm:$0xff] }
 0xe26   :  { %5376 = vmatpush1.bf16.msra.mxu0 %v7803_v13  ;;  %5408 = vmatpush1.bf16.msra.mxu1 %v7804_v4  ;;  %v7818_v13 = vld [vmem:[#allocation64_spill] sm:$0xff]  ;;  %v7819_v4 = vld [vmem:[#allocation65_spill] sm:$0xff] }
 0xe27   :  { %5378 = vmatprep.subr.bf16.mxu0 %v7805_v60  ;;  %5410 = vmatprep.subr.bf16.mxu1 %v7806_v14  ;;  %v7820_v60 = vld [vmem:[#allocation66_spill] sm:$0xff]  ;;  %v7821_v14 = vld [vmem:[#allocation67_spill] sm:$0xff] }
 0xe2a   :  { %5380 = vmatpush1.bf16.msra.mxu0 %v7807_v62  ;;  %5412 = vmatpush1.bf16.msra.mxu1 %v7808_v15  ;;  %v7822_v62 = vld [vmem:[#allocation68_spill] sm:$0xff]  ;;  %v7823_v15 = vld [vmem:[#allocation69_spill] sm:$0xff] }
 0xe2b   :  { %5382 = vmatprep.subr.bf16.mxu0 %v7809_v45  ;;  %5414 = vmatprep.subr.bf16.mxu1 %v7810_v53  ;;  %v7824_v45 = vld [vmem:[#allocation70_spill] sm:$0xff]  ;;  %v7825_v53 = vld [vmem:[#allocation71_spill] sm:$0xff] }
 0xe2e   :  { %5384 = vmatpush1.bf16.msra.mxu0 %v7811_v56  ;;  %5416 = vmatpush1.bf16.msra.mxu1 %v7812_v19  ;;  %v7826_v56 = vld [vmem:[#allocation72_spill] sm:$0xff] }
 0xe2f   :  { %5386 = vmatprep.subr.bf16.mxu0 %v7813_v41  ;;  %5418 = vmatprep.subr.bf16.mxu1 %v7814_v59  ;;  %v7827_v59 = vld [vmem:[#allocation73_spill] sm:$0xff] }
 0xe32   :  { %5388 = vmatpush1.bf16.msra.mxu0 %v7815_v61  ;;  %5420 = vmatpush1.bf16.msra.mxu1 %v7816_v44 }
 0xe33   :  { %5390 = vmatprep.subr.bf16.mxu0 %v7817_v26  ;;  %5422 = vmatprep.subr.bf16.mxu1 %v7818_v13 }
 0xe36   :  { %5392 = vmatpush1.bf16.msra.mxu0 %v7819_v4  ;;  %5424 = vmatpush1.bf16.msra.mxu1 %v7820_v60 }
 0xe37   :  { %5394 = vmatprep.subr.bf16.mxu0 %v7821_v14  ;;  %5426 = vmatprep.subr.bf16.mxu1 %v7822_v62 }
 0xe3a   :  { %5396 = vmatpush1.bf16.msra.mxu0 %v7823_v15  ;;  %5428 = vmatpush1.bf16.msra.mxu1 %v7824_v45 }
 0xe3b   :  { %5430 = vmatprep.subr.bf16.mxu0 %v7825_v53  ;;  %5462 = vmatprep.subr.bf16.mxu1 %v7826_v56 }
 0xef0   :  { %v3469_v19 = vpop.f32.mrb[24].mxu0  ;;  %v3540_v41 = vpop.f32.mrb[24].mxu1 }
 0xef1   :  { %v3545_v61 = vadd.f32 %v3469_v19, %v7827_v59  ;;  %v3471_v44 = vpop.f32.mrb[25].mxu0  ;;  %v3542_v26 = vpop.f32.mrb[25].mxu1  ;;  %v3547_v14 = vadd.f32 %v3540_v41, %v7511_v11 }
 0xef2   :  { %v3546_v13 = vadd.f32 %v3471_v44, %v7576_v25  ;;  %v3548_v62 = vadd.f32 %v3542_v26, %v7512_v3 }
 0xef3   :  { %v4124_v4 = vmul.f32 -1.442695, %v3545_v61  ;;  %v4126_v15 = vmul.f32 -1.442695, %v3547_v14 }
 0xef4   :  { %v4125_v60 = vmul.f32 -1.442695, %v3546_v13 }
 0xef5   :  { %5800 = vpow2.f32 %v4124_v4 }
 0xef6   :  { %5802 = vpow2.f32 %v4125_v60 }
 0xef7   :  { %5804 = vtanh.f32 %v3548_v62 }
 0xef8   :  { %5806 = vpow2.f32 %v4126_v15  ;;  %v7099_v15 = vld [vmem:[#allocation7 + $0x2] ss:$0 sm:$0xff] }
 0xeff   :  { %v5801_v45 = vpop.eup %5800 }
 0xf00   :  { %v3558_v53 = vadd.f32 1.0, %v5801_v45  ;;  %v5803_v56 = vpop.eup %5802 }
 0xf01   :  { %v3559_v19 = vadd.f32 1.0, %v5803_v56  ;;  %v5805_v59 = vpop.eup %5804 }
 0xf02   :  { %5808 = vrcp.f32 %v3558_v53  ;;  %v5807_v6 = vpop.eup %5806 }
 0xf03   :  { %5810 = vrcp.f32 %v3559_v19  ;;  %v3560_v4 = vadd.f32 1.0, %v5807_v6 }
 0xf05   :  { %5812 = vrcp.f32 %v3560_v4 }
 0xf0c   :  { %v5809_v44 = vpop.eup %5808 }
 0xf0d   :  { %v3569_v61 = vmul.f32 %v5809_v44, %v5805_v59  ;;  %v5811_v13 = vpop.eup %5810 }
 0xf0e   :  { %v3568_v60 = vmul.f32 %v5811_v13, %v6969_v50 }
 0xf0f   :  { %v5813_v26 = vpop.eup %5812 }
 0xf10   :  { %v7096_v41 = vadd.f32 %v3569_v61, %v3568_v60  ;;  %v7852_v61 = vld [vmem:[#allocation80_spill] sm:$0xff] }
 0xf12   :  { %5814 = vtanh.f32 %v7096_v41 }
 0xf1c   :  { %v5815_v14 = vpop.eup %5814 }
 0xf1d   :  { %v3572_v62 = vmul.f32 %v5815_v14, %v5813_v26 }
 0xf1f   :  { %3644 = vmatmul.mubr.f32.vlgmr.msra.gmra.mrb[28].mxu0 %v3572_v62  ;;  %3715 = vmatmul.mubr.f32.vlgmr.msra.gmra.mrb[28].mxu1 %v3572_v62  ;;  %v3573_v45 = vmul.f32 %v7099_v15, %v3572_v62  ;;  %v7853_v62 = vld [vmem:[#allocation73_spill] sm:$0xff] }
 0xf20   :  { %5432 = vmatpush1.bf16.msra.mxu0 %v7514_v49  ;;  %5464 = vmatpush1.bf16.msra.mxu1 %v7515_v57  ;;  %v7171_v57 = vld [vmem:[#allocation7 + $0x3] ss:$0 sm:$0xff] }
 0xf21   :  { %5434 = vmatprep.subr.bf16.mxu0 %v7516_v18  ;;  %5466 = vmatprep.subr.bf16.mxu1 %v7517_v28  ;;  %v3574_v50 = vsel %vm645_vm1, %v3573_v45, 0.0 }
 0xf22   :  { %3575 = vadd.xlane.f32.xlu0 %v3574_v50  ;;  %3785 = vmatprep.mubr.f32.mxu0 %v7464_v0 }
 0xf23   :  { %3856 = vmatprep.mubr.f32.mxu1 %v7464_v0 }
 0xf24   :  { %5436 = vmatpush1.bf16.msra.mxu0 %v7518_v8  ;;  %5468 = vmatpush1.bf16.msra.mxu1 %v7577_v36 }
 0xf25   :  { %5438 = vmatprep.subr.bf16.mxu0 %v7578_v21  ;;  %5470 = vmatprep.subr.bf16.mxu1 %v7521_v48 }
 0xf28   :  { %5440 = vmatpush1.bf16.msra.mxu0 %v7522_v37  ;;  %5472 = vmatpush1.bf16.msra.mxu1 %v7523_v9  ;;  %v7851_v9 = vld [vmem:[#allocation36_spill] sm:$0xff] }
 0xf29   :  { %5442 = vmatprep.subr.bf16.mxu0 %v7524_v17  ;;  %5474 = vmatprep.subr.bf16.mxu1 %v7525_v35 }
 0xf2c   :  { %5444 = vmatpush1.bf16.msra.mxu0 %v7526_v10  ;;  %5476 = vmatpush1.bf16.msra.mxu1 %v7527_v7 }
 0xf2d   :  { %5446 = vmatprep.subr.bf16.mxu0 %v7528_v40  ;;  %5478 = vmatprep.subr.bf16.mxu1 %v7529_v23 }
 0xf30   :  { %5448 = vmatpush1.bf16.msra.mxu0 %v7530_v55  ;;  %5480 = vmatpush1.bf16.msra.mxu1 %v7531_v24  ;;  %v7850_v55 = vld [vmem:[#allocation35_spill] sm:$0xff] }
 0xf31   :  { %5450 = vmatprep.subr.bf16.mxu0 %v6327_v5  ;;  %5482 = vmatprep.subr.bf16.mxu1 %v6329_v16  ;;  %v7838_v5 = vld [vmem:[#allocation23_spill] sm:$0xff]  ;;  %v7839_v16 = vld [vmem:[#allocation24_spill] sm:$0xff] }
 0xf34   :  { %5452 = vmatpush1.bf16.msra.mxu0 %v6333_v46  ;;  %5484 = vmatpush1.bf16.msra.mxu1 %v6335_v31  ;;  %v7840_v46 = vld [vmem:[#allocation25_spill] sm:$0xff]  ;;  %v7841_v31 = vld [vmem:[#allocation26_spill] sm:$0xff] }
 0xf35   :  { %5454 = vmatprep.subr.bf16.mxu0 %v6339_v39  ;;  %5486 = vmatprep.subr.bf16.mxu1 %v6341_v20  ;;  %v7842_v39 = vld [vmem:[#allocation27_spill] sm:$0xff]  ;;  %v7843_v20 = vld [vmem:[#allocation28_spill] sm:$0xff] }
 0xf38   :  { %5456 = vmatpush1.bf16.msra.mxu0 %v6345_v54  ;;  %5488 = vmatpush1.bf16.msra.mxu1 %v6347_v58  ;;  %v7844_v54 = vld [vmem:[#allocation29_spill] sm:$0xff]  ;;  %v7845_v58 = vld [vmem:[#allocation30_spill] sm:$0xff] }
 0xf39   :  { %5458 = vmatprep.subr.bf16.mxu0 %v6351_v22  ;;  %5490 = vmatprep.subr.bf16.mxu1 %v6353_v12  ;;  %v7846_v22 = vld [vmem:[#allocation31_spill] sm:$0xff]  ;;  %v7847_v12 = vld [vmem:[#allocation32_spill] sm:$0xff] }
 0xf3c   :  { %5460 = vmatpush1.bf16.msra.mxu0 %v6357_v63  ;;  %5492 = vmatpush1.bf16.msra.mxu1 %v6359_v30  ;;  %v7848_v63 = vld [vmem:[#allocation33_spill] sm:$0xff]  ;;  %v7849_v30 = vld [vmem:[#allocation34_spill] sm:$0xff] }
 0xf3d   :  { %5494 = vmatprep.subr.bf16.mxu0 %v6013_v29  ;;  %5526 = vmatprep.subr.bf16.mxu1 %v6015_v33  ;;  %v7828_v29 = vld [vmem:[#allocation13_spill] sm:$0xff]  ;;  %v7829_v33 = vld [vmem:[#allocation14_spill] sm:$0xff] }
 0xf3f   :  { %3786 = vmatmul.mubr.f32.vlgmr.msra.gmra.mrb[30].mxu0 %v7053_v2  ;;  %3857 = vmatmul.mubr.f32.vlgmr.msra.gmra.mrb[30].mxu1 %v7053_v2 }
 0xf40   :  { %5496 = vmatpush1.bf16.msra.mxu0 %v6017_v34  ;;  %5528 = vmatpush1.bf16.msra.mxu1 %v6020_v38  ;;  %v7830_v34 = vld [vmem:[#allocation15_spill] sm:$0xff]  ;;  %v7831_v38 = vld [vmem:[#allocation16_spill] sm:$0xff] }
 0xf41   :  { %5498 = vmatprep.subr.bf16.mxu0 %v6024_v42  ;;  %5530 = vmatprep.subr.bf16.mxu1 %v6026_v43  ;;  %v7832_v42 = vld [vmem:[#allocation17_spill] sm:$0xff]  ;;  %v7833_v43 = vld [vmem:[#allocation18_spill] sm:$0xff] }
 0xf42   :  { %3955 = vmatprep.mubr.f32.mxu0 %v7464_v0  ;;  %4026 = vmatprep.mubr.f32.mxu1 %v7464_v0  ;;  %v7834_v0 = vld [vmem:[#allocation19_spill] sm:$0xff] }
 0xf44   :  { %5500 = vmatpush1.bf16.msra.mxu0 %v6029_v47  ;;  %5532 = vmatpush1.bf16.msra.mxu1 %v6033_v51  ;;  %v7835_v47 = vld [vmem:[#allocation20_spill] sm:$0xff]  ;;  %v7836_v51 = vld [vmem:[#allocation21_spill] sm:$0xff] }
 0xf45   :  { %5502 = vmatprep.subr.bf16.mxu0 %v6035_v52  ;;  %5534 = vmatprep.subr.bf16.mxu1 %v7765_v1  ;;  %v7837_v52 = vld [vmem:[#allocation22_spill] sm:$0xff] }
 0xf48   :  { %5504 = vmatpush1.bf16.msra.mxu0 %v7828_v29  ;;  %5536 = vmatpush1.bf16.msra.mxu1 %v7829_v33 }
 0xf49   :  { %5506 = vmatprep.subr.bf16.mxu0 %v7830_v34  ;;  %5538 = vmatprep.subr.bf16.mxu1 %v7831_v38 }
 0xf4c   :  { %5508 = vmatpush1.bf16.msra.mxu0 %v7832_v42  ;;  %5540 = vmatpush1.bf16.msra.mxu1 %v7833_v43 }
 0xf4d   :  { %5510 = vmatprep.subr.bf16.mxu0 %v7834_v0  ;;  %5542 = vmatprep.subr.bf16.mxu1 %v7835_v47 }
 0xf50   :  { %5512 = vmatpush1.bf16.msra.mxu0 %v7836_v51  ;;  %5544 = vmatpush1.bf16.msra.mxu1 %v7837_v52 }
 0xf51   :  { %5514 = vmatprep.subr.bf16.mxu0 %v7838_v5  ;;  %5546 = vmatprep.subr.bf16.mxu1 %v7839_v16 }
 0xf54   :  { %5516 = vmatpush1.bf16.msra.mxu0 %v7840_v46  ;;  %5548 = vmatpush1.bf16.msra.mxu1 %v7841_v31 }
 0xf55   :  { %5518 = vmatprep.subr.bf16.mxu0 %v7842_v39  ;;  %5550 = vmatprep.subr.bf16.mxu1 %v7843_v20 }
 0xf58   :  { %5520 = vmatpush1.bf16.msra.mxu0 %v7844_v54  ;;  %5552 = vmatpush1.bf16.msra.mxu1 %v7845_v58 }
 0xf59   :  { %5522 = vmatprep.subr.bf16.mxu0 %v7846_v22  ;;  %5554 = vmatprep.subr.bf16.mxu1 %v7847_v12 }
 0xf5c   :  { %5524 = vmatpush1.bf16.msra.mxu0 %v7848_v63  ;;  %5556 = vmatpush1.bf16.msra.mxu1 %v7849_v30 }
 0xfaf   :  { %v3576_v49 = vpop.xlane.xlu0 %3575 }
 0xfb0   :  { %v3577_v18 = vadd.f32 %v7171_v57, %v3576_v49 }
 0xfb2   :  { %3578 = vst [vmem:[#allocation8 + $0x6] sm:$0x1] %v3577_v18 }
0x1012   :  { %v3787_v28 = vpop.f32.mrb[30].mxu0  ;;  %v3858_v8 = vpop.f32.mrb[30].mxu1 }
0x1013   :  { %v3863_v24 = vadd.f32 %v3787_v28, %v7850_v55  ;;  %v3789_v48 = vpop.f32.mrb[31].mxu0  ;;  %v3860_v37 = vpop.f32.mrb[31].mxu1  ;;  %v3865_v7 = vadd.f32 %v3858_v8, %v7539_v27 }
0x1014   :  { %v3864_v17 = vadd.f32 %v3789_v48, %v7851_v9  ;;  %v3866_v40 = vadd.f32 %v3860_v37, %v7604_v32 }
0x1015   :  { %v4127_v35 = vmul.f32 -1.442695, %v3863_v24  ;;  %v4129_v23 = vmul.f32 -1.442695, %v3865_v7 }
0x1016   :  { %v4128_v10 = vmul.f32 -1.442695, %v3864_v17 }
0x1017   :  { %5816 = vpow2.f32 %v4127_v35 }
0x1018   :  { %5818 = vpow2.f32 %v4128_v10 }
0x1019   :  { %5820 = vtanh.f32 %v3866_v40 }
0x101a   :  { %5822 = vpow2.f32 %v4129_v23 }
0x1021   :  { %v5817_v36 = vpop.eup %5816 }
0x1022   :  { %v3876_v21 = vadd.f32 1.0, %v5817_v36  ;;  %v5819_v1 = vpop.eup %5818 }
0x1023   :  { %v3877_v6 = vadd.f32 1.0, %v5819_v1  ;;  %v5821_v2 = vpop.eup %5820 }
0x1024   :  { %5824 = vrcp.f32 %v3876_v21  ;;  %v5823_v59 = vpop.eup %5822 }
0x1025   :  { %5826 = vrcp.f32 %v3877_v6  ;;  %v3878_v44 = vadd.f32 1.0, %v5823_v59 }
0x1027   :  { %5828 = vrcp.f32 %v3878_v44 }
0x102e   :  { %v5825_v53 = vpop.eup %5824 }
0x102f   :  { %v3887_v56 = vmul.f32 %v5825_v53, %v5821_v2  ;;  %v5827_v19 = vpop.eup %5826 }
0x1030   :  { %v3886_v13 = vmul.f32 %v5827_v19, %v7852_v61 }
0x1031   :  { %v5829_v32 = vpop.eup %5828 }
0x1032   :  { %v3888_v27 = vadd.f32 %v3887_v56, %v3886_v13 }
0x1034   :  { %5830 = vtanh.f32 %v3888_v27 }
0x103e   :  { %v5831_v4 = vpop.eup %5830 }
0x103f   :  { %v3890_v60 = vmul.f32 %v5831_v4, %v5829_v32 }
0x1041   :  { %3956 = vmatmul.mubr.f32.vlgmr.msra.gmra.mrb[28].mxu0 %v3890_v60  ;;  %4027 = vmatmul.mubr.f32.vlgmr.msra.gmra.mrb[28].mxu1 %v3890_v60 }
0x1114   :  { %v3957_v26 = vpop.f32.mrb[28].mxu0  ;;  %v4028_v14 = vpop.f32.mrb[28].mxu1 }
0x1115   :  { %v4033_v45 = vadd.f32 %v3957_v26, %v7853_v62  ;;  %v3959_v50 = vpop.f32.mrb[29].mxu0  ;;  %v4030_v29 = vpop.f32.mrb[29].mxu1  ;;  %v4035_v42 = vadd.f32 %v4028_v14, %v7511_v11 }
0x1116   :  { %v4034_v33 = vadd.f32 %v3959_v50, %v7576_v25  ;;  %v4036_v43 = vadd.f32 %v4030_v29, %v7512_v3 }
0x1117   :  { %v4130_v34 = vmul.f32 -1.442695, %v4033_v45  ;;  %v4132_v0 = vmul.f32 -1.442695, %v4035_v42 }
0x1118   :  { %v4131_v38 = vmul.f32 -1.442695, %v4034_v33 }
0x1119   :  { %5832 = vpow2.f32 %v4130_v34 }
0x111a   :  { %5834 = vpow2.f32 %v4131_v38 }
0x111b   :  { %5836 = vtanh.f32 %v4036_v43 }
0x111c   :  { %5838 = vpow2.f32 %v4132_v0 }
0x1123   :  { %v5833_v47 = vpop.eup %5832 }
0x1124   :  { %v4046_v51 = vadd.f32 1.0, %v5833_v47  ;;  %v5835_v52 = vpop.eup %5834 }
0x1125   :  { %v4047_v5 = vadd.f32 1.0, %v5835_v52  ;;  %v5837_v16 = vpop.eup %5836 }
0x1126   :  { %5840 = vrcp.f32 %v4046_v51  ;;  %v5839_v46 = vpop.eup %5838 }
0x1127   :  { %5842 = vrcp.f32 %v4047_v5  ;;  %v4048_v20 = vadd.f32 1.0, %v5839_v46 }
0x1129   :  { %5844 = vrcp.f32 %v4048_v20 }
0x1130   :  { %v5841_v25 = vpop.eup %5840 }
0x1131   :  { %v4057_v31 = vmul.f32 %v5841_v25, %v5837_v16  ;;  %v5843_v39 = vpop.eup %5842 }
0x1132   :  { %v4056_v54 = vmul.f32 %v5843_v39, %v7096_v41 }
0x1133   :  { %v5845_v3 = vpop.eup %5844 }
0x1134   :  { %v4058_v11 = vadd.f32 %v4057_v31, %v4056_v54 }
0x1136   :  { %5846 = vtanh.f32 %v4058_v11 }
0x1140   :  { %v5847_v58 = vpop.eup %5846 }
0x1141   :  { %v4060_v22 = vmul.f32 %v5847_v58, %v5845_v3 }
0x1143   :  { %v4061_v12 = vmul.f32 %v7099_v15, %v4060_v22 }
0x1145   :  { %v4062_v63 = vsel %vm645_vm1, %v4061_v12, 0.0 }
0x1146   :  { %4063 = vadd.xlane.f32.xlu1 %v4062_v63 }
0x11d3   :  { %v4064_v30 = vpop.xlane.xlu1 %4063 }
0x11d4   :  { %v4065_v49 = vadd.f32 %v7171_v57, %v4064_v30 }
0x11d6   :  { %4066 = vst [vmem:[#allocation8 + $0x7] sm:$0x1] %v4065_v49 }
0x11d7   :  { %5929 = shalt.err (!%p5926_p0)
}
0x11d8   :  { %s5930_s26 = scalar_lea.hbm %s7202_s3, 128 }
0x11d9   :  { %p5931_p1 = scmp.ne.s32.totalorder %s7202_s3, %s5930_s26  ;;  %p5934_p2 = scmp.lt.u32.totalorder %s5930_s26, %s7202_s3 }
0x11db   :  { %p5936_p3 = pnand %p5934_p2, %p5931_p1 }
0x11dd   :  { %5939 = shalt.err (!%p5936_p3)
}
0x11de   :  { %4076 = dma.vmem_to_hbm [thread:$0]  %s4074_s22, 128, %s7202_s3, [#allocation4]  }
0x11df   :  { %5944 = dma.done.wait [#allocation4], 128  }
0x11e0   :  { %5945 = vsyncadd [#allocation4], 4294967168 }
0x11e1   :  { %4080 = vsyncpa [#allocation3], 1 }
0x11e2   :  { %4081 = vsyncpa [#allocation6], 1 }
0x11e3   :  { %4082 = vsyncpa [#allocation4], 1 }

</bundles_post_ra>
